<compile_context>
chip_gen: v7x
topology: tpu7x:2x2x1
jax: 0.10.0
libtpu: 0.0.40
codegen_flags: <defaults>
</compile_context>

<pallas_src>
import jax
import jax.numpy as jnp
from jax.experimental import pallas as pl
from jax.experimental.pallas import tpu as pltpu


def _gru_step(x, h, wih, whh, b_rz, bi_n, bh_n, E):
    """One PyTorch-semantics GRU cell step with fused gate matmuls.

    x, h: (B, E).  wih/whh: (E, 3E) = [W_r | W_z | W_n] (transposed so y = x@W).
    b_rz: (B, 2E) = (b_ih + b_hh) for the r/z gates (hoisted, pre-broadcast).
    bi_n, bh_n: (B, E) input/hidden biases for the n gate (kept separate,
    since n = tanh(gi_n + b_in + r * (gh_n + b_hn))).
    """
    gi = jnp.dot(x, wih, preferred_element_type=jnp.float32)   # (B, 3E)
    gh = jnp.dot(h, whh, preferred_element_type=jnp.float32)   # (B, 3E)
    rz = jax.nn.sigmoid(gi[:, :2 * E] + gh[:, :2 * E] + b_rz)  # (B, 2E)
    r = rz[:, :E]
    z = rz[:, E:]
    n = jnp.tanh(gi[:, 2 * E:] + bi_n + r * (gh[:, 2 * E:] + bh_n))
    return (1.0 - z) * n + z * h


def actor_kernel(coords_ref, wff_ref, bff_ref,
                 enc_wih_ref, enc_whh_ref, enc_bih_ref, enc_bhh_ref,
                 dec_wih_ref, dec_whh_ref, dec_bih_ref, dec_bhh_ref,
                 w1_ref, w2_ref, v_ref,
                 tours_ref, enc_out_ref):
    B, S, _ = coords_ref.shape
    E = wff_ref.shape[1]

    coords = coords_ref[...]            # (B, S, 2)
    wff = wff_ref[...]                  # (2, E)   (= ff_layer.weight.T)
    bff = bff_ref[...]                  # (1, E)

    # ---- ff_layer: one (B*S, 2) @ (2, E) MXU matmul ----
    embedded = (jnp.dot(coords.reshape(B * S, 2), wff,
                        preferred_element_type=jnp.float32) + bff).reshape(B, S, E)

    # ---- hoisted bias broadcasts (JAX does not CSE broadcast_in_dim) ----
    enc_bih = enc_bih_ref[...]          # (1, 3E)
    enc_bhh = enc_bhh_ref[...]
    dec_bih = dec_bih_ref[...]
    dec_bhh = dec_bhh_ref[...]
    enc_b_rz = jnp.broadcast_to(enc_bih[:, :2 * E] + enc_bhh[:, :2 * E], (B, 2 * E))
    enc_bi_n = jnp.broadcast_to(enc_bih[:, 2 * E:], (B, E))
    enc_bh_n = jnp.broadcast_to(enc_bhh[:, 2 * E:], (B, E))
    dec_b_rz = jnp.broadcast_to(dec_bih[:, :2 * E] + dec_bhh[:, :2 * E], (B, 2 * E))
    dec_bi_n = jnp.broadcast_to(dec_bih[:, 2 * E:], (B, E))
    dec_bh_n = jnp.broadcast_to(dec_bhh[:, 2 * E:], (B, E))

    enc_wih = enc_wih_ref[...]          # (E, 3E)
    enc_whh = enc_whh_ref[...]
    dec_wih = dec_wih_ref[...]
    dec_whh = dec_whh_ref[...]

    # ---- encoder GRU (unrolled over time, h0 = 0); buffer h_t, store once ----
    h = jnp.zeros((B, E), jnp.float32)
    h_list = []
    for t in range(S):
        h = _gru_step(embedded[:, t, :], h, enc_wih, enc_whh,
                      enc_b_rz, enc_bi_n, enc_bh_n, E)
        h_list.append(h)
    enc_out = jnp.stack(h_list, axis=1)                 # (B, S, E), in registers/VMEM

    # single lane-dense write: (B, S*E) with S*E a multiple of 128
    enc_out_ref[...] = jnp.concatenate(h_list, axis=1)  # (B, S*E)

    # ---- attention W1 projection is step-invariant -> one reshaped matmul ----
    w1 = w1_ref[...]                                    # (E, E) = W1.weight.T
    w2 = w2_ref[...]                                    # (E, E) = W2.weight.T
    v = v_ref[...]                                      # (1, E) = v.weight
    enc_proj = jnp.dot(enc_out.reshape(B * S, E), w1,
                       preferred_element_type=jnp.float32).reshape(B, S, E)

    # ---- greedy decoder loop ----
    col = jax.lax.broadcasted_iota(jnp.int32, (B, S), 1)
    mask = (col != 0).astype(jnp.float32)               # mask[:, 0] = 0
    tours = jnp.zeros((B, S), jnp.int32)                # tours[:, 0] = 0
    dec_in = embedded[:, 0, :]                          # decoder_input = embedded[:, 0, :]
    h_dec = h                                           # hidden = encoder final hidden

    for step in range(1, S):
        # single-step decoder GRU
        h_dec = _gru_step(dec_in, h_dec, dec_wih, dec_whh,
                          dec_b_rz, dec_bi_n, dec_bh_n, E)
        # additive attention score: v . tanh(W1*enc + W2*h_dec)
        q = jnp.dot(h_dec, w2, preferred_element_type=jnp.float32)   # (B, E)
        tanh_term = jnp.tanh(enc_proj + q[:, None, :])                # (B, S, E)
        score = jnp.sum(tanh_term * v[None, :, :], axis=-1)           # (B, S)
        score = jnp.where(mask > 0.0, score, -1.0e9)
        # argmax(softmax(score)) == argmax(score); first-occurrence tie-break
        mx = jnp.max(score, axis=-1, keepdims=True)                   # (B, 1)
        cand = jnp.where(score >= mx, col, S)
        sel = jnp.min(cand, axis=-1, keepdims=True)                   # (B, 1) int32
        onehot = (col == sel).astype(jnp.float32)                     # (B, S)
        tours = jnp.where(col == step, sel, tours)                    # tours[:, step] = sel
        mask = mask * (1.0 - onehot)                                  # scatter_(1, sel, 0)
        # decoder_input = gather(encoder_outputs, sel) via MXU (1,S)@(S,E) dots
        dec_rows = [jnp.dot(onehot[b:b + 1, :], enc_out[b],
                            preferred_element_type=jnp.float32) for b in range(B)]
        dec_in = jnp.concatenate(dec_rows, axis=0)                    # (B, E)

    tours_ref[...] = tours


def make_params(key, embedding_dim=32):
    """Deterministic synthetic parameters with the shapes implied by Actor.__init__.

    GRU weights are stored pre-fused: (E, 3E) = [W_r | W_z | W_n] transposed,
    biases (1, 3E).
    """
    E = embedding_dim  # hidden_dim == embedding_dim (encoder hidden feeds decoder)
    ks = jax.random.split(key, 13)

    def rnd(k, shape, scale=0.3):
        return (scale * jax.random.normal(k, shape)).astype(jnp.float32)

    return dict(
        wff=rnd(ks[0], (2, E)),            # ff_layer.weight.T
        bff=rnd(ks[1], (1, E)),            # ff_layer.bias
        enc_wih=rnd(ks[2], (E, 3 * E)),    # gru_encoder weight_ih [r|z|n], transposed
        enc_whh=rnd(ks[3], (E, 3 * E)),
        enc_bih=rnd(ks[4], (1, 3 * E)),
        enc_bhh=rnd(ks[5], (1, 3 * E)),
        dec_wih=rnd(ks[6], (E, 3 * E)),    # gru_decoder
        dec_whh=rnd(ks[7], (E, 3 * E)),
        dec_bih=rnd(ks[8], (1, 3 * E)),
        dec_bhh=rnd(ks[9], (1, 3 * E)),
        w1=rnd(ks[10], (E, E)),            # attention.W1.weight.T
        w2=rnd(ks[11], (E, E)),            # attention.W2.weight.T
        v=rnd(ks[12], (1, E)),             # attention.v.weight
    )


def actor_forward(coords, params):
    B, S, _ = coords.shape
    E = params["wff"].shape[1]
    args = (coords, params["wff"], params["bff"],
            params["enc_wih"], params["enc_whh"], params["enc_bih"], params["enc_bhh"],
            params["dec_wih"], params["dec_whh"], params["dec_bih"], params["dec_bhh"],
            params["w1"], params["w2"], params["v"])
    vmem = pl.BlockSpec(memory_space=pltpu.MemorySpace.VMEM)
    tours, enc_flat = pl.pallas_call(
        actor_kernel,
        out_shape=(jax.ShapeDtypeStruct((B, S), jnp.int32),
                   jax.ShapeDtypeStruct((B, S * E), jnp.float32)),  # lane-dense slab
        in_specs=[vmem] * len(args),
        out_specs=(vmem, vmem),
    )(*args)
    return tours, enc_flat.reshape(B, S, E)


if __name__ == "__main__":
    key = jax.random.PRNGKey(0)
    kc, kp = jax.random.split(key)
    B, S, E = 2, 8, 32        # small shapes: batch=2, seq_len=8, embedding/hidden=32
    coords = jax.random.uniform(kc, (B, S, 2), dtype=jnp.float32)
    params = make_params(kp, embedding_dim=E)

    tours, enc_out = actor_forward(coords, params)
    jax.block_until_ready((tours, enc_out))

    assert tours.shape == (B, S) and tours.dtype == jnp.int32
    assert enc_out.shape == (B, S, E) and enc_out.dtype == jnp.float32
    # Greedy pointer decode with masking must visit every node exactly once,
    # starting at node 0 — a float-noise-robust semantics check.
    t_host = jax.device_get(tours)
    for b in range(B):
        assert int(t_host[b, 0]) == 0
        assert sorted(int(i) for i in t_host[b]) == list(range(S)), t_host

    print("KERNEL_OK")
</pallas_src>

<mosaic_0001>
module attributes {stable_mosaic.version = 11 : i64} {
  func.func @actor_kernel(%arg0: memref<2x8x2xf32, #tpu.memory_space<vmem>>, %arg1: memref<2x32xf32, #tpu.memory_space<vmem>>, %arg2: memref<1x32xf32, #tpu.memory_space<vmem>>, %arg3: memref<32x96xf32, #tpu.memory_space<vmem>>, %arg4: memref<32x96xf32, #tpu.memory_space<vmem>>, %arg5: memref<1x96xf32, #tpu.memory_space<vmem>>, %arg6: memref<1x96xf32, #tpu.memory_space<vmem>>, %arg7: memref<32x96xf32, #tpu.memory_space<vmem>>, %arg8: memref<32x96xf32, #tpu.memory_space<vmem>>, %arg9: memref<1x96xf32, #tpu.memory_space<vmem>>, %arg10: memref<1x96xf32, #tpu.memory_space<vmem>>, %arg11: memref<32x32xf32, #tpu.memory_space<vmem>>, %arg12: memref<32x32xf32, #tpu.memory_space<vmem>>, %arg13: memref<1x32xf32, #tpu.memory_space<vmem>>, %arg14: memref<2x8xi32, #tpu.memory_space<vmem>>, %arg15: memref<2x256xf32, #tpu.memory_space<vmem>>) attributes {dimension_semantics = [], scalar_prefetch = 0 : i64, scratch_operands = 0 : i64, tpu.core_type = #tpu.core_type<tc>} {
    %c0 = arith.constant 0 : index
    %c0_0 = arith.constant 0 : index
    %c0_1 = arith.constant 0 : index
    %0 = vector.load %arg0[%c0, %c0_0, %c0_1] : memref<2x8x2xf32, #tpu.memory_space<vmem>>, vector<2x8x2xf32>
    %c0_2 = arith.constant 0 : index
    %c0_3 = arith.constant 0 : index
    %1 = vector.load %arg1[%c0_2, %c0_3] : memref<2x32xf32, #tpu.memory_space<vmem>>, vector<2x32xf32>
    %c0_4 = arith.constant 0 : index
    %c0_5 = arith.constant 0 : index
    %2 = vector.load %arg2[%c0_4, %c0_5] : memref<1x32xf32, #tpu.memory_space<vmem>>, vector<1x32xf32>
    %3 = vector.shape_cast %0 : vector<2x8x2xf32> to vector<16x2xf32>
    %cst = arith.constant dense<0.000000e+00> : vector<16x32xf32>
    %4 = tpu.matmul %3, %1, %cst {dimension_numbers = #tpu.dot_dimension_numbers<[1], [0], [0], [1], [0, 0, 1, 1], [], []>} : vector<16x2xf32>, vector<2x32xf32>, vector<16x32xf32> -> vector<16x32xf32>
    %5 = vector.broadcast %2 : vector<1x32xf32> to vector<16x32xf32>
    %6 = arith.addf %4, %5 : vector<16x32xf32>
    %7 = vector.shape_cast %6 : vector<16x32xf32> to vector<2x8x32xf32>
    %c0_6 = arith.constant 0 : index
    %c0_7 = arith.constant 0 : index
    %8 = vector.load %arg5[%c0_6, %c0_7] : memref<1x96xf32, #tpu.memory_space<vmem>>, vector<1x96xf32>
    %c0_8 = arith.constant 0 : index
    %c0_9 = arith.constant 0 : index
    %9 = vector.load %arg6[%c0_8, %c0_9] : memref<1x96xf32, #tpu.memory_space<vmem>>, vector<1x96xf32>
    %c0_10 = arith.constant 0 : index
    %c0_11 = arith.constant 0 : index
    %10 = vector.load %arg9[%c0_10, %c0_11] : memref<1x96xf32, #tpu.memory_space<vmem>>, vector<1x96xf32>
    %c0_12 = arith.constant 0 : index
    %c0_13 = arith.constant 0 : index
    %11 = vector.load %arg10[%c0_12, %c0_13] : memref<1x96xf32, #tpu.memory_space<vmem>>, vector<1x96xf32>
    %12 = vector.extract_strided_slice %8 {offsets = [0, 0], sizes = [1, 64], strides = [1, 1]} : vector<1x96xf32> to vector<1x64xf32>
    %13 = vector.extract_strided_slice %9 {offsets = [0, 0], sizes = [1, 64], strides = [1, 1]} : vector<1x96xf32> to vector<1x64xf32>
    %14 = arith.addf %12, %13 : vector<1x64xf32>
    %15 = vector.shape_cast %14 : vector<1x64xf32> to vector<1x64xf32>
    %16 = vector.broadcast %15 : vector<1x64xf32> to vector<2x64xf32>
    %17 = vector.extract_strided_slice %8 {offsets = [0, 64], sizes = [1, 32], strides = [1, 1]} : vector<1x96xf32> to vector<1x32xf32>
    %18 = vector.shape_cast %17 : vector<1x32xf32> to vector<1x32xf32>
    %19 = vector.broadcast %18 : vector<1x32xf32> to vector<2x32xf32>
    %20 = vector.extract_strided_slice %9 {offsets = [0, 64], sizes = [1, 32], strides = [1, 1]} : vector<1x96xf32> to vector<1x32xf32>
    %21 = vector.shape_cast %20 : vector<1x32xf32> to vector<1x32xf32>
    %22 = vector.broadcast %21 : vector<1x32xf32> to vector<2x32xf32>
    %23 = vector.extract_strided_slice %10 {offsets = [0, 0], sizes = [1, 64], strides = [1, 1]} : vector<1x96xf32> to vector<1x64xf32>
    %24 = vector.extract_strided_slice %11 {offsets = [0, 0], sizes = [1, 64], strides = [1, 1]} : vector<1x96xf32> to vector<1x64xf32>
    %25 = arith.addf %23, %24 : vector<1x64xf32>
    %26 = vector.shape_cast %25 : vector<1x64xf32> to vector<1x64xf32>
    %27 = vector.broadcast %26 : vector<1x64xf32> to vector<2x64xf32>
    %28 = vector.extract_strided_slice %10 {offsets = [0, 64], sizes = [1, 32], strides = [1, 1]} : vector<1x96xf32> to vector<1x32xf32>
    %29 = vector.shape_cast %28 : vector<1x32xf32> to vector<1x32xf32>
    %30 = vector.broadcast %29 : vector<1x32xf32> to vector<2x32xf32>
    %31 = vector.extract_strided_slice %11 {offsets = [0, 64], sizes = [1, 32], strides = [1, 1]} : vector<1x96xf32> to vector<1x32xf32>
    %32 = vector.shape_cast %31 : vector<1x32xf32> to vector<1x32xf32>
    %33 = vector.broadcast %32 : vector<1x32xf32> to vector<2x32xf32>
    %c0_14 = arith.constant 0 : index
    %c0_15 = arith.constant 0 : index
    %34 = vector.load %arg3[%c0_14, %c0_15] : memref<32x96xf32, #tpu.memory_space<vmem>>, vector<32x96xf32>
    %c0_16 = arith.constant 0 : index
    %c0_17 = arith.constant 0 : index
    %35 = vector.load %arg4[%c0_16, %c0_17] : memref<32x96xf32, #tpu.memory_space<vmem>>, vector<32x96xf32>
    %c0_18 = arith.constant 0 : index
    %c0_19 = arith.constant 0 : index
    %36 = vector.load %arg7[%c0_18, %c0_19] : memref<32x96xf32, #tpu.memory_space<vmem>>, vector<32x96xf32>
    %c0_20 = arith.constant 0 : index
    %c0_21 = arith.constant 0 : index
    %37 = vector.load %arg8[%c0_20, %c0_21] : memref<32x96xf32, #tpu.memory_space<vmem>>, vector<32x96xf32>
    %cst_22 = arith.constant 0.000000e+00 : f32
    %38 = vector.broadcast %cst_22 : f32 to vector<2x32xf32>
    %39 = vector.extract_strided_slice %7 {offsets = [0, 0, 0], sizes = [2, 1, 32], strides = [1, 1, 1]} : vector<2x8x32xf32> to vector<2x1x32xf32>
    %40 = vector.shape_cast %39 : vector<2x1x32xf32> to vector<2x32xf32>
    %cst_23 = arith.constant dense<0.000000e+00> : vector<2x96xf32>
    %41 = tpu.matmul %40, %34, %cst_23 {dimension_numbers = #tpu.dot_dimension_numbers<[1], [0], [0], [1], [0, 0, 1, 1], [], []>} : vector<2x32xf32>, vector<32x96xf32>, vector<2x96xf32> -> vector<2x96xf32>
    %cst_24 = arith.constant dense<0.000000e+00> : vector<2x96xf32>
    %42 = tpu.matmul %38, %35, %cst_24 {dimension_numbers = #tpu.dot_dimension_numbers<[1], [0], [0], [1], [0, 0, 1, 1], [], []>} : vector<2x32xf32>, vector<32x96xf32>, vector<2x96xf32> -> vector<2x96xf32>
    %43 = vector.extract_strided_slice %41 {offsets = [0, 0], sizes = [2, 64], strides = [1, 1]} : vector<2x96xf32> to vector<2x64xf32>
    %44 = vector.extract_strided_slice %42 {offsets = [0, 0], sizes = [2, 64], strides = [1, 1]} : vector<2x96xf32> to vector<2x64xf32>
    %45 = arith.addf %43, %44 : vector<2x64xf32>
    %46 = arith.addf %45, %16 : vector<2x64xf32>
    %47 = arith.negf %46 : vector<2x64xf32>
    %48 = math.exp %47 : vector<2x64xf32>
    %cst_25 = arith.constant 1.000000e+00 : f32
    %49 = vector.broadcast %cst_25 : f32 to vector<2x64xf32>
    %50 = arith.addf %49, %48 : vector<2x64xf32>
    %51 = arith.divf %49, %50 : vector<2x64xf32>
    %52 = vector.extract_strided_slice %51 {offsets = [0, 0], sizes = [2, 32], strides = [1, 1]} : vector<2x64xf32> to vector<2x32xf32>
    %53 = vector.extract_strided_slice %51 {offsets = [0, 32], sizes = [2, 32], strides = [1, 1]} : vector<2x64xf32> to vector<2x32xf32>
    %54 = vector.extract_strided_slice %41 {offsets = [0, 64], sizes = [2, 32], strides = [1, 1]} : vector<2x96xf32> to vector<2x32xf32>
    %55 = arith.addf %54, %19 : vector<2x32xf32>
    %56 = vector.extract_strided_slice %42 {offsets = [0, 64], sizes = [2, 32], strides = [1, 1]} : vector<2x96xf32> to vector<2x32xf32>
    %57 = arith.addf %56, %22 : vector<2x32xf32>
    %58 = arith.mulf %52, %57 : vector<2x32xf32>
    %59 = arith.addf %55, %58 : vector<2x32xf32>
    %60 = math.tanh %59 : vector<2x32xf32>
    %cst_26 = arith.constant 1.000000e+00 : f32
    %61 = vector.broadcast %cst_26 : f32 to vector<2x32xf32>
    %62 = arith.subf %61, %53 : vector<2x32xf32>
    %63 = arith.mulf %62, %60 : vector<2x32xf32>
    %64 = arith.mulf %53, %38 : vector<2x32xf32>
    %65 = arith.addf %63, %64 : vector<2x32xf32>
    %66 = vector.extract_strided_slice %7 {offsets = [0, 1, 0], sizes = [2, 1, 32], strides = [1, 1, 1]} : vector<2x8x32xf32> to vector<2x1x32xf32>
    %67 = vector.shape_cast %66 : vector<2x1x32xf32> to vector<2x32xf32>
    %cst_27 = arith.constant dense<0.000000e+00> : vector<2x96xf32>
    %68 = tpu.matmul %67, %34, %cst_27 {dimension_numbers = #tpu.dot_dimension_numbers<[1], [0], [0], [1], [0, 0, 1, 1], [], []>} : vector<2x32xf32>, vector<32x96xf32>, vector<2x96xf32> -> vector<2x96xf32>
    %cst_28 = arith.constant dense<0.000000e+00> : vector<2x96xf32>
    %69 = tpu.matmul %65, %35, %cst_28 {dimension_numbers = #tpu.dot_dimension_numbers<[1], [0], [0], [1], [0, 0, 1, 1], [], []>} : vector<2x32xf32>, vector<32x96xf32>, vector<2x96xf32> -> vector<2x96xf32>
    %70 = vector.extract_strided_slice %68 {offsets = [0, 0], sizes = [2, 64], strides = [1, 1]} : vector<2x96xf32> to vector<2x64xf32>
    %71 = vector.extract_strided_slice %69 {offsets = [0, 0], sizes = [2, 64], strides = [1, 1]} : vector<2x96xf32> to vector<2x64xf32>
    %72 = arith.addf %70, %71 : vector<2x64xf32>
    %73 = arith.addf %72, %16 : vector<2x64xf32>
    %74 = arith.negf %73 : vector<2x64xf32>
    %75 = math.exp %74 : vector<2x64xf32>
    %cst_29 = arith.constant 1.000000e+00 : f32
    %76 = vector.broadcast %cst_29 : f32 to vector<2x64xf32>
    %77 = arith.addf %76, %75 : vector<2x64xf32>
    %78 = arith.divf %76, %77 : vector<2x64xf32>
    %79 = vector.extract_strided_slice %78 {offsets = [0, 0], sizes = [2, 32], strides = [1, 1]} : vector<2x64xf32> to vector<2x32xf32>
    %80 = vector.extract_strided_slice %78 {offsets = [0, 32], sizes = [2, 32], strides = [1, 1]} : vector<2x64xf32> to vector<2x32xf32>
    %81 = vector.extract_strided_slice %68 {offsets = [0, 64], sizes = [2, 32], strides = [1, 1]} : vector<2x96xf32> to vector<2x32xf32>
    %82 = arith.addf %81, %19 : vector<2x32xf32>
    %83 = vector.extract_strided_slice %69 {offsets = [0, 64], sizes = [2, 32], strides = [1, 1]} : vector<2x96xf32> to vector<2x32xf32>
    %84 = arith.addf %83, %22 : vector<2x32xf32>
    %85 = arith.mulf %79, %84 : vector<2x32xf32>
    %86 = arith.addf %82, %85 : vector<2x32xf32>
    %87 = math.tanh %86 : vector<2x32xf32>
    %cst_30 = arith.constant 1.000000e+00 : f32
    %88 = vector.broadcast %cst_30 : f32 to vector<2x32xf32>
    %89 = arith.subf %88, %80 : vector<2x32xf32>
    %90 = arith.mulf %89, %87 : vector<2x32xf32>
    %91 = arith.mulf %80, %65 : vector<2x32xf32>
    %92 = arith.addf %90, %91 : vector<2x32xf32>
    %93 = vector.extract_strided_slice %7 {offsets = [0, 2, 0], sizes = [2, 1, 32], strides = [1, 1, 1]} : vector<2x8x32xf32> to vector<2x1x32xf32>
    %94 = vector.shape_cast %93 : vector<2x1x32xf32> to vector<2x32xf32>
    %cst_31 = arith.constant dense<0.000000e+00> : vector<2x96xf32>
    %95 = tpu.matmul %94, %34, %cst_31 {dimension_numbers = #tpu.dot_dimension_numbers<[1], [0], [0], [1], [0, 0, 1, 1], [], []>} : vector<2x32xf32>, vector<32x96xf32>, vector<2x96xf32> -> vector<2x96xf32>
    %cst_32 = arith.constant dense<0.000000e+00> : vector<2x96xf32>
    %96 = tpu.matmul %92, %35, %cst_32 {dimension_numbers = #tpu.dot_dimension_numbers<[1], [0], [0], [1], [0, 0, 1, 1], [], []>} : vector<2x32xf32>, vector<32x96xf32>, vector<2x96xf32> -> vector<2x96xf32>
    %97 = vector.extract_strided_slice %95 {offsets = [0, 0], sizes = [2, 64], strides = [1, 1]} : vector<2x96xf32> to vector<2x64xf32>
    %98 = vector.extract_strided_slice %96 {offsets = [0, 0], sizes = [2, 64], strides = [1, 1]} : vector<2x96xf32> to vector<2x64xf32>
    %99 = arith.addf %97, %98 : vector<2x64xf32>
    %100 = arith.addf %99, %16 : vector<2x64xf32>
    %101 = arith.negf %100 : vector<2x64xf32>
    %102 = math.exp %101 : vector<2x64xf32>
    %cst_33 = arith.constant 1.000000e+00 : f32
    %103 = vector.broadcast %cst_33 : f32 to vector<2x64xf32>
    %104 = arith.addf %103, %102 : vector<2x64xf32>
    %105 = arith.divf %103, %104 : vector<2x64xf32>
    %106 = vector.extract_strided_slice %105 {offsets = [0, 0], sizes = [2, 32], strides = [1, 1]} : vector<2x64xf32> to vector<2x32xf32>
    %107 = vector.extract_strided_slice %105 {offsets = [0, 32], sizes = [2, 32], strides = [1, 1]} : vector<2x64xf32> to vector<2x32xf32>
    %108 = vector.extract_strided_slice %95 {offsets = [0, 64], sizes = [2, 32], strides = [1, 1]} : vector<2x96xf32> to vector<2x32xf32>
    %109 = arith.addf %108, %19 : vector<2x32xf32>
    %110 = vector.extract_strided_slice %96 {offsets = [0, 64], sizes = [2, 32], strides = [1, 1]} : vector<2x96xf32> to vector<2x32xf32>
    %111 = arith.addf %110, %22 : vector<2x32xf32>
    %112 = arith.mulf %106, %111 : vector<2x32xf32>
    %113 = arith.addf %109, %112 : vector<2x32xf32>
    %114 = math.tanh %113 : vector<2x32xf32>
    %cst_34 = arith.constant 1.000000e+00 : f32
    %115 = vector.broadcast %cst_34 : f32 to vector<2x32xf32>
    %116 = arith.subf %115, %107 : vector<2x32xf32>
    %117 = arith.mulf %116, %114 : vector<2x32xf32>
    %118 = arith.mulf %107, %92 : vector<2x32xf32>
    %119 = arith.addf %117, %118 : vector<2x32xf32>
    %120 = vector.extract_strided_slice %7 {offsets = [0, 3, 0], sizes = [2, 1, 32], strides = [1, 1, 1]} : vector<2x8x32xf32> to vector<2x1x32xf32>
    %121 = vector.shape_cast %120 : vector<2x1x32xf32> to vector<2x32xf32>
    %cst_35 = arith.constant dense<0.000000e+00> : vector<2x96xf32>
    %122 = tpu.matmul %121, %34, %cst_35 {dimension_numbers = #tpu.dot_dimension_numbers<[1], [0], [0], [1], [0, 0, 1, 1], [], []>} : vector<2x32xf32>, vector<32x96xf32>, vector<2x96xf32> -> vector<2x96xf32>
    %cst_36 = arith.constant dense<0.000000e+00> : vector<2x96xf32>
    %123 = tpu.matmul %119, %35, %cst_36 {dimension_numbers = #tpu.dot_dimension_numbers<[1], [0], [0], [1], [0, 0, 1, 1], [], []>} : vector<2x32xf32>, vector<32x96xf32>, vector<2x96xf32> -> vector<2x96xf32>
    %124 = vector.extract_strided_slice %122 {offsets = [0, 0], sizes = [2, 64], strides = [1, 1]} : vector<2x96xf32> to vector<2x64xf32>
    %125 = vector.extract_strided_slice %123 {offsets = [0, 0], sizes = [2, 64], strides = [1, 1]} : vector<2x96xf32> to vector<2x64xf32>
    %126 = arith.addf %124, %125 : vector<2x64xf32>
    %127 = arith.addf %126, %16 : vector<2x64xf32>
    %128 = arith.negf %127 : vector<2x64xf32>
    %129 = math.exp %128 : vector<2x64xf32>
    %cst_37 = arith.constant 1.000000e+00 : f32
    %130 = vector.broadcast %cst_37 : f32 to vector<2x64xf32>
    %131 = arith.addf %130, %129 : vector<2x64xf32>
    %132 = arith.divf %130, %131 : vector<2x64xf32>
    %133 = vector.extract_strided_slice %132 {offsets = [0, 0], sizes = [2, 32], strides = [1, 1]} : vector<2x64xf32> to vector<2x32xf32>
    %134 = vector.extract_strided_slice %132 {offsets = [0, 32], sizes = [2, 32], strides = [1, 1]} : vector<2x64xf32> to vector<2x32xf32>
    %135 = vector.extract_strided_slice %122 {offsets = [0, 64], sizes = [2, 32], strides = [1, 1]} : vector<2x96xf32> to vector<2x32xf32>
    %136 = arith.addf %135, %19 : vector<2x32xf32>
    %137 = vector.extract_strided_slice %123 {offsets = [0, 64], sizes = [2, 32], strides = [1, 1]} : vector<2x96xf32> to vector<2x32xf32>
    %138 = arith.addf %137, %22 : vector<2x32xf32>
    %139 = arith.mulf %133, %138 : vector<2x32xf32>
    %140 = arith.addf %136, %139 : vector<2x32xf32>
    %141 = math.tanh %140 : vector<2x32xf32>
    %cst_38 = arith.constant 1.000000e+00 : f32
    %142 = vector.broadcast %cst_38 : f32 to vector<2x32xf32>
    %143 = arith.subf %142, %134 : vector<2x32xf32>
    %144 = arith.mulf %143, %141 : vector<2x32xf32>
    %145 = arith.mulf %134, %119 : vector<2x32xf32>
    %146 = arith.addf %144, %145 : vector<2x32xf32>
    %147 = vector.extract_strided_slice %7 {offsets = [0, 4, 0], sizes = [2, 1, 32], strides = [1, 1, 1]} : vector<2x8x32xf32> to vector<2x1x32xf32>
    %148 = vector.shape_cast %147 : vector<2x1x32xf32> to vector<2x32xf32>
    %cst_39 = arith.constant dense<0.000000e+00> : vector<2x96xf32>
    %149 = tpu.matmul %148, %34, %cst_39 {dimension_numbers = #tpu.dot_dimension_numbers<[1], [0], [0], [1], [0, 0, 1, 1], [], []>} : vector<2x32xf32>, vector<32x96xf32>, vector<2x96xf32> -> vector<2x96xf32>
    %cst_40 = arith.constant dense<0.000000e+00> : vector<2x96xf32>
    %150 = tpu.matmul %146, %35, %cst_40 {dimension_numbers = #tpu.dot_dimension_numbers<[1], [0], [0], [1], [0, 0, 1, 1], [], []>} : vector<2x32xf32>, vector<32x96xf32>, vector<2x96xf32> -> vector<2x96xf32>
    %151 = vector.extract_strided_slice %149 {offsets = [0, 0], sizes = [2, 64], strides = [1, 1]} : vector<2x96xf32> to vector<2x64xf32>
    %152 = vector.extract_strided_slice %150 {offsets = [0, 0], sizes = [2, 64], strides = [1, 1]} : vector<2x96xf32> to vector<2x64xf32>
    %153 = arith.addf %151, %152 : vector<2x64xf32>
    %154 = arith.addf %153, %16 : vector<2x64xf32>
    %155 = arith.negf %154 : vector<2x64xf32>
    %156 = math.exp %155 : vector<2x64xf32>
    %cst_41 = arith.constant 1.000000e+00 : f32
    %157 = vector.broadcast %cst_41 : f32 to vector<2x64xf32>
    %158 = arith.addf %157, %156 : vector<2x64xf32>
    %159 = arith.divf %157, %158 : vector<2x64xf32>
    %160 = vector.extract_strided_slice %159 {offsets = [0, 0], sizes = [2, 32], strides = [1, 1]} : vector<2x64xf32> to vector<2x32xf32>
    %161 = vector.extract_strided_slice %159 {offsets = [0, 32], sizes = [2, 32], strides = [1, 1]} : vector<2x64xf32> to vector<2x32xf32>
    %162 = vector.extract_strided_slice %149 {offsets = [0, 64], sizes = [2, 32], strides = [1, 1]} : vector<2x96xf32> to vector<2x32xf32>
    %163 = arith.addf %162, %19 : vector<2x32xf32>
    %164 = vector.extract_strided_slice %150 {offsets = [0, 64], sizes = [2, 32], strides = [1, 1]} : vector<2x96xf32> to vector<2x32xf32>
    %165 = arith.addf %164, %22 : vector<2x32xf32>
    %166 = arith.mulf %160, %165 : vector<2x32xf32>
    %167 = arith.addf %163, %166 : vector<2x32xf32>
    %168 = math.tanh %167 : vector<2x32xf32>
    %cst_42 = arith.constant 1.000000e+00 : f32
    %169 = vector.broadcast %cst_42 : f32 to vector<2x32xf32>
    %170 = arith.subf %169, %161 : vector<2x32xf32>
    %171 = arith.mulf %170, %168 : vector<2x32xf32>
    %172 = arith.mulf %161, %146 : vector<2x32xf32>
    %173 = arith.addf %171, %172 : vector<2x32xf32>
    %174 = vector.extract_strided_slice %7 {offsets = [0, 5, 0], sizes = [2, 1, 32], strides = [1, 1, 1]} : vector<2x8x32xf32> to vector<2x1x32xf32>
    %175 = vector.shape_cast %174 : vector<2x1x32xf32> to vector<2x32xf32>
    %cst_43 = arith.constant dense<0.000000e+00> : vector<2x96xf32>
    %176 = tpu.matmul %175, %34, %cst_43 {dimension_numbers = #tpu.dot_dimension_numbers<[1], [0], [0], [1], [0, 0, 1, 1], [], []>} : vector<2x32xf32>, vector<32x96xf32>, vector<2x96xf32> -> vector<2x96xf32>
    %cst_44 = arith.constant dense<0.000000e+00> : vector<2x96xf32>
    %177 = tpu.matmul %173, %35, %cst_44 {dimension_numbers = #tpu.dot_dimension_numbers<[1], [0], [0], [1], [0, 0, 1, 1], [], []>} : vector<2x32xf32>, vector<32x96xf32>, vector<2x96xf32> -> vector<2x96xf32>
    %178 = vector.extract_strided_slice %176 {offsets = [0, 0], sizes = [2, 64], strides = [1, 1]} : vector<2x96xf32> to vector<2x64xf32>
    %179 = vector.extract_strided_slice %177 {offsets = [0, 0], sizes = [2, 64], strides = [1, 1]} : vector<2x96xf32> to vector<2x64xf32>
    %180 = arith.addf %178, %179 : vector<2x64xf32>
    %181 = arith.addf %180, %16 : vector<2x64xf32>
    %182 = arith.negf %181 : vector<2x64xf32>
    %183 = math.exp %182 : vector<2x64xf32>
    %cst_45 = arith.constant 1.000000e+00 : f32
    %184 = vector.broadcast %cst_45 : f32 to vector<2x64xf32>
    %185 = arith.addf %184, %183 : vector<2x64xf32>
    %186 = arith.divf %184, %185 : vector<2x64xf32>
    %187 = vector.extract_strided_slice %186 {offsets = [0, 0], sizes = [2, 32], strides = [1, 1]} : vector<2x64xf32> to vector<2x32xf32>
    %188 = vector.extract_strided_slice %186 {offsets = [0, 32], sizes = [2, 32], strides = [1, 1]} : vector<2x64xf32> to vector<2x32xf32>
    %189 = vector.extract_strided_slice %176 {offsets = [0, 64], sizes = [2, 32], strides = [1, 1]} : vector<2x96xf32> to vector<2x32xf32>
    %190 = arith.addf %189, %19 : vector<2x32xf32>
    %191 = vector.extract_strided_slice %177 {offsets = [0, 64], sizes = [2, 32], strides = [1, 1]} : vector<2x96xf32> to vector<2x32xf32>
    %192 = arith.addf %191, %22 : vector<2x32xf32>
    %193 = arith.mulf %187, %192 : vector<2x32xf32>
    %194 = arith.addf %190, %193 : vector<2x32xf32>
    %195 = math.tanh %194 : vector<2x32xf32>
    %cst_46 = arith.constant 1.000000e+00 : f32
    %196 = vector.broadcast %cst_46 : f32 to vector<2x32xf32>
    %197 = arith.subf %196, %188 : vector<2x32xf32>
    %198 = arith.mulf %197, %195 : vector<2x32xf32>
    %199 = arith.mulf %188, %173 : vector<2x32xf32>
    %200 = arith.addf %198, %199 : vector<2x32xf32>
    %201 = vector.extract_strided_slice %7 {offsets = [0, 6, 0], sizes = [2, 1, 32], strides = [1, 1, 1]} : vector<2x8x32xf32> to vector<2x1x32xf32>
    %202 = vector.shape_cast %201 : vector<2x1x32xf32> to vector<2x32xf32>
    %cst_47 = arith.constant dense<0.000000e+00> : vector<2x96xf32>
    %203 = tpu.matmul %202, %34, %cst_47 {dimension_numbers = #tpu.dot_dimension_numbers<[1], [0], [0], [1], [0, 0, 1, 1], [], []>} : vector<2x32xf32>, vector<32x96xf32>, vector<2x96xf32> -> vector<2x96xf32>
    %cst_48 = arith.constant dense<0.000000e+00> : vector<2x96xf32>
    %204 = tpu.matmul %200, %35, %cst_48 {dimension_numbers = #tpu.dot_dimension_numbers<[1], [0], [0], [1], [0, 0, 1, 1], [], []>} : vector<2x32xf32>, vector<32x96xf32>, vector<2x96xf32> -> vector<2x96xf32>
    %205 = vector.extract_strided_slice %203 {offsets = [0, 0], sizes = [2, 64], strides = [1, 1]} : vector<2x96xf32> to vector<2x64xf32>
    %206 = vector.extract_strided_slice %204 {offsets = [0, 0], sizes = [2, 64], strides = [1, 1]} : vector<2x96xf32> to vector<2x64xf32>
    %207 = arith.addf %205, %206 : vector<2x64xf32>
    %208 = arith.addf %207, %16 : vector<2x64xf32>
    %209 = arith.negf %208 : vector<2x64xf32>
    %210 = math.exp %209 : vector<2x64xf32>
    %cst_49 = arith.constant 1.000000e+00 : f32
    %211 = vector.broadcast %cst_49 : f32 to vector<2x64xf32>
    %212 = arith.addf %211, %210 : vector<2x64xf32>
    %213 = arith.divf %211, %212 : vector<2x64xf32>
    %214 = vector.extract_strided_slice %213 {offsets = [0, 0], sizes = [2, 32], strides = [1, 1]} : vector<2x64xf32> to vector<2x32xf32>
    %215 = vector.extract_strided_slice %213 {offsets = [0, 32], sizes = [2, 32], strides = [1, 1]} : vector<2x64xf32> to vector<2x32xf32>
    %216 = vector.extract_strided_slice %203 {offsets = [0, 64], sizes = [2, 32], strides = [1, 1]} : vector<2x96xf32> to vector<2x32xf32>
    %217 = arith.addf %216, %19 : vector<2x32xf32>
    %218 = vector.extract_strided_slice %204 {offsets = [0, 64], sizes = [2, 32], strides = [1, 1]} : vector<2x96xf32> to vector<2x32xf32>
    %219 = arith.addf %218, %22 : vector<2x32xf32>
    %220 = arith.mulf %214, %219 : vector<2x32xf32>
    %221 = arith.addf %217, %220 : vector<2x32xf32>
    %222 = math.tanh %221 : vector<2x32xf32>
    %cst_50 = arith.constant 1.000000e+00 : f32
    %223 = vector.broadcast %cst_50 : f32 to vector<2x32xf32>
    %224 = arith.subf %223, %215 : vector<2x32xf32>
    %225 = arith.mulf %224, %222 : vector<2x32xf32>
    %226 = arith.mulf %215, %200 : vector<2x32xf32>
    %227 = arith.addf %225, %226 : vector<2x32xf32>
    %228 = vector.extract_strided_slice %7 {offsets = [0, 7, 0], sizes = [2, 1, 32], strides = [1, 1, 1]} : vector<2x8x32xf32> to vector<2x1x32xf32>
    %229 = vector.shape_cast %228 : vector<2x1x32xf32> to vector<2x32xf32>
    %cst_51 = arith.constant dense<0.000000e+00> : vector<2x96xf32>
    %230 = tpu.matmul %229, %34, %cst_51 {dimension_numbers = #tpu.dot_dimension_numbers<[1], [0], [0], [1], [0, 0, 1, 1], [], []>} : vector<2x32xf32>, vector<32x96xf32>, vector<2x96xf32> -> vector<2x96xf32>
    %cst_52 = arith.constant dense<0.000000e+00> : vector<2x96xf32>
    %231 = tpu.matmul %227, %35, %cst_52 {dimension_numbers = #tpu.dot_dimension_numbers<[1], [0], [0], [1], [0, 0, 1, 1], [], []>} : vector<2x32xf32>, vector<32x96xf32>, vector<2x96xf32> -> vector<2x96xf32>
    %232 = vector.extract_strided_slice %230 {offsets = [0, 0], sizes = [2, 64], strides = [1, 1]} : vector<2x96xf32> to vector<2x64xf32>
    %233 = vector.extract_strided_slice %231 {offsets = [0, 0], sizes = [2, 64], strides = [1, 1]} : vector<2x96xf32> to vector<2x64xf32>
    %234 = arith.addf %232, %233 : vector<2x64xf32>
    %235 = arith.addf %234, %16 : vector<2x64xf32>
    %236 = arith.negf %235 : vector<2x64xf32>
    %237 = math.exp %236 : vector<2x64xf32>
    %cst_53 = arith.constant 1.000000e+00 : f32
    %238 = vector.broadcast %cst_53 : f32 to vector<2x64xf32>
    %239 = arith.addf %238, %237 : vector<2x64xf32>
    %240 = arith.divf %238, %239 : vector<2x64xf32>
    %241 = vector.extract_strided_slice %240 {offsets = [0, 0], sizes = [2, 32], strides = [1, 1]} : vector<2x64xf32> to vector<2x32xf32>
    %242 = vector.extract_strided_slice %240 {offsets = [0, 32], sizes = [2, 32], strides = [1, 1]} : vector<2x64xf32> to vector<2x32xf32>
    %243 = vector.extract_strided_slice %230 {offsets = [0, 64], sizes = [2, 32], strides = [1, 1]} : vector<2x96xf32> to vector<2x32xf32>
    %244 = arith.addf %243, %19 : vector<2x32xf32>
    %245 = vector.extract_strided_slice %231 {offsets = [0, 64], sizes = [2, 32], strides = [1, 1]} : vector<2x96xf32> to vector<2x32xf32>
    %246 = arith.addf %245, %22 : vector<2x32xf32>
    %247 = arith.mulf %241, %246 : vector<2x32xf32>
    %248 = arith.addf %244, %247 : vector<2x32xf32>
    %249 = math.tanh %248 : vector<2x32xf32>
    %cst_54 = arith.constant 1.000000e+00 : f32
    %250 = vector.broadcast %cst_54 : f32 to vector<2x32xf32>
    %251 = arith.subf %250, %242 : vector<2x32xf32>
    %252 = arith.mulf %251, %249 : vector<2x32xf32>
    %253 = arith.mulf %242, %227 : vector<2x32xf32>
    %254 = arith.addf %252, %253 : vector<2x32xf32>
    %255 = vector.shape_cast %65 : vector<2x32xf32> to vector<2x1x32xf32>
    %256 = vector.shape_cast %92 : vector<2x32xf32> to vector<2x1x32xf32>
    %257 = vector.shape_cast %119 : vector<2x32xf32> to vector<2x1x32xf32>
    %258 = vector.shape_cast %146 : vector<2x32xf32> to vector<2x1x32xf32>
    %259 = vector.shape_cast %173 : vector<2x32xf32> to vector<2x1x32xf32>
    %260 = vector.shape_cast %200 : vector<2x32xf32> to vector<2x1x32xf32>
    %261 = vector.shape_cast %227 : vector<2x32xf32> to vector<2x1x32xf32>
    %262 = vector.shape_cast %254 : vector<2x32xf32> to vector<2x1x32xf32>
    %263 = tpu.concatenate %255, %256, %257, %258, %259, %260, %261, %262 in 1 : vector<2x1x32xf32>, vector<2x1x32xf32>, vector<2x1x32xf32>, vector<2x1x32xf32>, vector<2x1x32xf32>, vector<2x1x32xf32>, vector<2x1x32xf32>, vector<2x1x32xf32> -> vector<2x8x32xf32>
    %264 = tpu.concatenate %65, %92, %119, %146, %173, %200, %227, %254 in 1 : vector<2x32xf32>, vector<2x32xf32>, vector<2x32xf32>, vector<2x32xf32>, vector<2x32xf32>, vector<2x32xf32>, vector<2x32xf32>, vector<2x32xf32> -> vector<2x256xf32>
    %c0_55 = arith.constant 0 : index
    %c0_56 = arith.constant 0 : index
    %265 = vector.load %arg15[%c0_55, %c0_56] : memref<2x256xf32, #tpu.memory_space<vmem>>, vector<2x256xf32>
    tpu.vector_store %arg15[%c0_55, %c0_56], %264 {strides = array<i32>} : memref<2x256xf32, #tpu.memory_space<vmem>>, vector<2x256xf32>,
    %c0_57 = arith.constant 0 : index
    %c0_58 = arith.constant 0 : index
    %266 = vector.load %arg11[%c0_57, %c0_58] : memref<32x32xf32, #tpu.memory_space<vmem>>, vector<32x32xf32>
    %c0_59 = arith.constant 0 : index
    %c0_60 = arith.constant 0 : index
    %267 = vector.load %arg12[%c0_59, %c0_60] : memref<32x32xf32, #tpu.memory_space<vmem>>, vector<32x32xf32>
    %c0_61 = arith.constant 0 : index
    %c0_62 = arith.constant 0 : index
    %268 = vector.load %arg13[%c0_61, %c0_62] : memref<1x32xf32, #tpu.memory_space<vmem>>, vector<1x32xf32>
    %269 = vector.shape_cast %263 : vector<2x8x32xf32> to vector<16x32xf32>
    %cst_63 = arith.constant dense<0.000000e+00> : vector<16x32xf32>
    %270 = tpu.matmul %269, %266, %cst_63 {dimension_numbers = #tpu.dot_dimension_numbers<[1], [0], [0], [1], [0, 0, 1, 1], [], []>} : vector<16x32xf32>, vector<32x32xf32>, vector<16x32xf32> -> vector<16x32xf32>
    %271 = vector.shape_cast %270 : vector<16x32xf32> to vector<2x8x32xf32>
    %272 = tpu.iota {dimensions = array<i32: 1>} : vector<2x8xi32>
    %c0_i32 = arith.constant 0 : i32
    %273 = vector.broadcast %c0_i32 : i32 to vector<2x8xi32>
    %274 = arith.cmpi ne, %272, %273 : vector<2x8xi32>
    %275 = arith.extui %274 : vector<2x8xi1> to vector<2x8xi32>
    %276 = arith.sitofp %275 : vector<2x8xi32> to vector<2x8xf32>
    %c0_i32_64 = arith.constant 0 : i32
    %277 = vector.broadcast %c0_i32_64 : i32 to vector<2x8xi32>
    %278 = vector.extract_strided_slice %7 {offsets = [0, 0, 0], sizes = [2, 1, 32], strides = [1, 1, 1]} : vector<2x8x32xf32> to vector<2x1x32xf32>
    %279 = vector.shape_cast %278 : vector<2x1x32xf32> to vector<2x32xf32>
    %cst_65 = arith.constant dense<0.000000e+00> : vector<2x96xf32>
    %280 = tpu.matmul %279, %36, %cst_65 {dimension_numbers = #tpu.dot_dimension_numbers<[1], [0], [0], [1], [0, 0, 1, 1], [], []>} : vector<2x32xf32>, vector<32x96xf32>, vector<2x96xf32> -> vector<2x96xf32>
    %cst_66 = arith.constant dense<0.000000e+00> : vector<2x96xf32>
    %281 = tpu.matmul %254, %37, %cst_66 {dimension_numbers = #tpu.dot_dimension_numbers<[1], [0], [0], [1], [0, 0, 1, 1], [], []>} : vector<2x32xf32>, vector<32x96xf32>, vector<2x96xf32> -> vector<2x96xf32>
    %282 = vector.extract_strided_slice %280 {offsets = [0, 0], sizes = [2, 64], strides = [1, 1]} : vector<2x96xf32> to vector<2x64xf32>
    %283 = vector.extract_strided_slice %281 {offsets = [0, 0], sizes = [2, 64], strides = [1, 1]} : vector<2x96xf32> to vector<2x64xf32>
    %284 = arith.addf %282, %283 : vector<2x64xf32>
    %285 = arith.addf %284, %27 : vector<2x64xf32>
    %286 = arith.negf %285 : vector<2x64xf32>
    %287 = math.exp %286 : vector<2x64xf32>
    %cst_67 = arith.constant 1.000000e+00 : f32
    %288 = vector.broadcast %cst_67 : f32 to vector<2x64xf32>
    %289 = arith.addf %288, %287 : vector<2x64xf32>
    %290 = arith.divf %288, %289 : vector<2x64xf32>
    %291 = vector.extract_strided_slice %290 {offsets = [0, 0], sizes = [2, 32], strides = [1, 1]} : vector<2x64xf32> to vector<2x32xf32>
    %292 = vector.extract_strided_slice %290 {offsets = [0, 32], sizes = [2, 32], strides = [1, 1]} : vector<2x64xf32> to vector<2x32xf32>
    %293 = vector.extract_strided_slice %280 {offsets = [0, 64], sizes = [2, 32], strides = [1, 1]} : vector<2x96xf32> to vector<2x32xf32>
    %294 = arith.addf %293, %30 : vector<2x32xf32>
    %295 = vector.extract_strided_slice %281 {offsets = [0, 64], sizes = [2, 32], strides = [1, 1]} : vector<2x96xf32> to vector<2x32xf32>
    %296 = arith.addf %295, %33 : vector<2x32xf32>
    %297 = arith.mulf %291, %296 : vector<2x32xf32>
    %298 = arith.addf %294, %297 : vector<2x32xf32>
    %299 = math.tanh %298 : vector<2x32xf32>
    %cst_68 = arith.constant 1.000000e+00 : f32
    %300 = vector.broadcast %cst_68 : f32 to vector<2x32xf32>
    %301 = arith.subf %300, %292 : vector<2x32xf32>
    %302 = arith.mulf %301, %299 : vector<2x32xf32>
    %303 = arith.mulf %292, %254 : vector<2x32xf32>
    %304 = arith.addf %302, %303 : vector<2x32xf32>
    %cst_69 = arith.constant dense<0.000000e+00> : vector<2x32xf32>
    %305 = tpu.matmul %304, %267, %cst_69 {dimension_numbers = #tpu.dot_dimension_numbers<[1], [0], [0], [1], [0, 0, 1, 1], [], []>} : vector<2x32xf32>, vector<32x32xf32>, vector<2x32xf32> -> vector<2x32xf32>
    %306 = vector.shape_cast %305 : vector<2x32xf32> to vector<2x1x32xf32>
    %307 = vector.broadcast %306 : vector<2x1x32xf32> to vector<2x8x32xf32>
    %308 = arith.addf %271, %307 : vector<2x8x32xf32>
    %309 = math.tanh %308 : vector<2x8x32xf32>
    %310 = vector.shape_cast %268 : vector<1x32xf32> to vector<1x1x32xf32>
    %311 = vector.broadcast %310 : vector<1x1x32xf32> to vector<2x8x32xf32>
    %312 = arith.mulf %309, %311 : vector<2x8x32xf32>
    %cst_70 = arith.constant dense<0.000000e+00> : vector<2x8xf32>
    %313 = vector.multi_reduction <add>, %312, %cst_70 [2] : vector<2x8x32xf32> to vector<2x8xf32>
    %cst_71 = arith.constant 0.000000e+00 : f32
    %314 = vector.broadcast %cst_71 : f32 to vector<2x8xf32>
    %315 = arith.cmpf ogt, %276, %314 : vector<2x8xf32>
    %cst_72 = arith.constant -1.000000e+09 : f32
    %316 = vector.broadcast %cst_72 : f32 to vector<2x8xf32>
    %317 = arith.select %315, %313, %316 : vector<2x8xi1>, vector<2x8xf32>
    %cst_73 = arith.constant dense<0xFF800000> : vector<2xf32>
    %318 = vector.multi_reduction <maximumf>, %317, %cst_73 [1] : vector<2x8xf32> to vector<2xf32>
    %319 = vector.shape_cast %318 : vector<2xf32> to vector<2x1xf32>
    %320 = vector.broadcast %319 : vector<2x1xf32> to vector<2x8xf32>
    %321 = arith.cmpf oge, %317, %320 : vector<2x8xf32>
    %c8_i32 = arith.constant 8 : i32
    %322 = vector.broadcast %c8_i32 : i32 to vector<2x8xi32>
    %323 = arith.select %321, %272, %322 : vector<2x8xi1>, vector<2x8xi32>
    %cst_74 = arith.constant dense<2147483647> : vector<2xi32>
    %324 = vector.multi_reduction <minsi>, %323, %cst_74 [1] : vector<2x8xi32> to vector<2xi32>
    %325 = vector.shape_cast %324 : vector<2xi32> to vector<2x1xi32>
    %326 = vector.broadcast %325 : vector<2x1xi32> to vector<2x8xi32>
    %327 = arith.cmpi eq, %272, %326 : vector<2x8xi32>
    %328 = arith.extui %327 : vector<2x8xi1> to vector<2x8xi32>
    %329 = arith.sitofp %328 : vector<2x8xi32> to vector<2x8xf32>
    %c1_i32 = arith.constant 1 : i32
    %330 = vector.broadcast %c1_i32 : i32 to vector<2x8xi32>
    %331 = arith.cmpi eq, %272, %330 : vector<2x8xi32>
    %332 = vector.shape_cast %325 : vector<2x1xi32> to vector<2x1xi32>
    %333 = vector.broadcast %332 : vector<2x1xi32> to vector<2x8xi32>
    %334 = arith.select %331, %333, %277 : vector<2x8xi1>, vector<2x8xi32>
    %cst_75 = arith.constant 1.000000e+00 : f32
    %335 = vector.broadcast %cst_75 : f32 to vector<2x8xf32>
    %336 = arith.subf %335, %329 : vector<2x8xf32>
    %337 = arith.mulf %276, %336 : vector<2x8xf32>
    %338 = vector.extract_strided_slice %329 {offsets = [0, 0], sizes = [1, 8], strides = [1, 1]} : vector<2x8xf32> to vector<1x8xf32>
    %339 = vector.extract_strided_slice %263 {offsets = [0, 0, 0], sizes = [1, 8, 32], strides = [1, 1, 1]} : vector<2x8x32xf32> to vector<1x8x32xf32>
    %340 = vector.shape_cast %339 : vector<1x8x32xf32> to vector<8x32xf32>
    %cst_76 = arith.constant dense<0.000000e+00> : vector<1x32xf32>
    %341 = tpu.matmul %338, %340, %cst_76 {dimension_numbers = #tpu.dot_dimension_numbers<[1], [0], [0], [1], [0, 0, 1, 1], [], []>} : vector<1x8xf32>, vector<8x32xf32>, vector<1x32xf32> -> vector<1x32xf32>
    %342 = vector.extract_strided_slice %329 {offsets = [1, 0], sizes = [1, 8], strides = [1, 1]} : vector<2x8xf32> to vector<1x8xf32>
    %343 = vector.extract_strided_slice %263 {offsets = [1, 0, 0], sizes = [1, 8, 32], strides = [1, 1, 1]} : vector<2x8x32xf32> to vector<1x8x32xf32>
    %344 = vector.shape_cast %343 : vector<1x8x32xf32> to vector<8x32xf32>
    %cst_77 = arith.constant dense<0.000000e+00> : vector<1x32xf32>
    %345 = tpu.matmul %342, %344, %cst_77 {dimension_numbers = #tpu.dot_dimension_numbers<[1], [0], [0], [1], [0, 0, 1, 1], [], []>} : vector<1x8xf32>, vector<8x32xf32>, vector<1x32xf32> -> vector<1x32xf32>
    %346 = tpu.concatenate %341, %345 in 0 : vector<1x32xf32>, vector<1x32xf32> -> vector<2x32xf32>
    %cst_78 = arith.constant dense<0.000000e+00> : vector<2x96xf32>
    %347 = tpu.matmul %346, %36, %cst_78 {dimension_numbers = #tpu.dot_dimension_numbers<[1], [0], [0], [1], [0, 0, 1, 1], [], []>} : vector<2x32xf32>, vector<32x96xf32>, vector<2x96xf32> -> vector<2x96xf32>
    %cst_79 = arith.constant dense<0.000000e+00> : vector<2x96xf32>
    %348 = tpu.matmul %304, %37, %cst_79 {dimension_numbers = #tpu.dot_dimension_numbers<[1], [0], [0], [1], [0, 0, 1, 1], [], []>} : vector<2x32xf32>, vector<32x96xf32>, vector<2x96xf32> -> vector<2x96xf32>
    %349 = vector.extract_strided_slice %347 {offsets = [0, 0], sizes = [2, 64], strides = [1, 1]} : vector<2x96xf32> to vector<2x64xf32>
    %350 = vector.extract_strided_slice %348 {offsets = [0, 0], sizes = [2, 64], strides = [1, 1]} : vector<2x96xf32> to vector<2x64xf32>
    %351 = arith.addf %349, %350 : vector<2x64xf32>
    %352 = arith.addf %351, %27 : vector<2x64xf32>
    %353 = arith.negf %352 : vector<2x64xf32>
    %354 = math.exp %353 : vector<2x64xf32>
    %cst_80 = arith.constant 1.000000e+00 : f32
    %355 = vector.broadcast %cst_80 : f32 to vector<2x64xf32>
    %356 = arith.addf %355, %354 : vector<2x64xf32>
    %357 = arith.divf %355, %356 : vector<2x64xf32>
    %358 = vector.extract_strided_slice %357 {offsets = [0, 0], sizes = [2, 32], strides = [1, 1]} : vector<2x64xf32> to vector<2x32xf32>
    %359 = vector.extract_strided_slice %357 {offsets = [0, 32], sizes = [2, 32], strides = [1, 1]} : vector<2x64xf32> to vector<2x32xf32>
    %360 = vector.extract_strided_slice %347 {offsets = [0, 64], sizes = [2, 32], strides = [1, 1]} : vector<2x96xf32> to vector<2x32xf32>
    %361 = arith.addf %360, %30 : vector<2x32xf32>
    %362 = vector.extract_strided_slice %348 {offsets = [0, 64], sizes = [2, 32], strides = [1, 1]} : vector<2x96xf32> to vector<2x32xf32>
    %363 = arith.addf %362, %33 : vector<2x32xf32>
    %364 = arith.mulf %358, %363 : vector<2x32xf32>
    %365 = arith.addf %361, %364 : vector<2x32xf32>
    %366 = math.tanh %365 : vector<2x32xf32>
    %cst_81 = arith.constant 1.000000e+00 : f32
    %367 = vector.broadcast %cst_81 : f32 to vector<2x32xf32>
    %368 = arith.subf %367, %359 : vector<2x32xf32>
    %369 = arith.mulf %368, %366 : vector<2x32xf32>
    %370 = arith.mulf %359, %304 : vector<2x32xf32>
    %371 = arith.addf %369, %370 : vector<2x32xf32>
    %cst_82 = arith.constant dense<0.000000e+00> : vector<2x32xf32>
    %372 = tpu.matmul %371, %267, %cst_82 {dimension_numbers = #tpu.dot_dimension_numbers<[1], [0], [0], [1], [0, 0, 1, 1], [], []>} : vector<2x32xf32>, vector<32x32xf32>, vector<2x32xf32> -> vector<2x32xf32>
    %373 = vector.shape_cast %372 : vector<2x32xf32> to vector<2x1x32xf32>
    %374 = vector.broadcast %373 : vector<2x1x32xf32> to vector<2x8x32xf32>
    %375 = arith.addf %271, %374 : vector<2x8x32xf32>
    %376 = math.tanh %375 : vector<2x8x32xf32>
    %377 = vector.shape_cast %268 : vector<1x32xf32> to vector<1x1x32xf32>
    %378 = vector.broadcast %377 : vector<1x1x32xf32> to vector<2x8x32xf32>
    %379 = arith.mulf %376, %378 : vector<2x8x32xf32>
    %cst_83 = arith.constant dense<0.000000e+00> : vector<2x8xf32>
    %380 = vector.multi_reduction <add>, %379, %cst_83 [2] : vector<2x8x32xf32> to vector<2x8xf32>
    %cst_84 = arith.constant 0.000000e+00 : f32
    %381 = vector.broadcast %cst_84 : f32 to vector<2x8xf32>
    %382 = arith.cmpf ogt, %337, %381 : vector<2x8xf32>
    %cst_85 = arith.constant -1.000000e+09 : f32
    %383 = vector.broadcast %cst_85 : f32 to vector<2x8xf32>
    %384 = arith.select %382, %380, %383 : vector<2x8xi1>, vector<2x8xf32>
    %cst_86 = arith.constant dense<0xFF800000> : vector<2xf32>
    %385 = vector.multi_reduction <maximumf>, %384, %cst_86 [1] : vector<2x8xf32> to vector<2xf32>
    %386 = vector.shape_cast %385 : vector<2xf32> to vector<2x1xf32>
    %387 = vector.broadcast %386 : vector<2x1xf32> to vector<2x8xf32>
    %388 = arith.cmpf oge, %384, %387 : vector<2x8xf32>
    %c8_i32_87 = arith.constant 8 : i32
    %389 = vector.broadcast %c8_i32_87 : i32 to vector<2x8xi32>
    %390 = arith.select %388, %272, %389 : vector<2x8xi1>, vector<2x8xi32>
    %cst_88 = arith.constant dense<2147483647> : vector<2xi32>
    %391 = vector.multi_reduction <minsi>, %390, %cst_88 [1] : vector<2x8xi32> to vector<2xi32>
    %392 = vector.shape_cast %391 : vector<2xi32> to vector<2x1xi32>
    %393 = vector.broadcast %392 : vector<2x1xi32> to vector<2x8xi32>
    %394 = arith.cmpi eq, %272, %393 : vector<2x8xi32>
    %395 = arith.extui %394 : vector<2x8xi1> to vector<2x8xi32>
    %396 = arith.sitofp %395 : vector<2x8xi32> to vector<2x8xf32>
    %c2_i32 = arith.constant 2 : i32
    %397 = vector.broadcast %c2_i32 : i32 to vector<2x8xi32>
    %398 = arith.cmpi eq, %272, %397 : vector<2x8xi32>
    %399 = vector.shape_cast %392 : vector<2x1xi32> to vector<2x1xi32>
    %400 = vector.broadcast %399 : vector<2x1xi32> to vector<2x8xi32>
    %401 = arith.select %398, %400, %334 : vector<2x8xi1>, vector<2x8xi32>
    %cst_89 = arith.constant 1.000000e+00 : f32
    %402 = vector.broadcast %cst_89 : f32 to vector<2x8xf32>
    %403 = arith.subf %402, %396 : vector<2x8xf32>
    %404 = arith.mulf %337, %403 : vector<2x8xf32>
    %405 = vector.extract_strided_slice %396 {offsets = [0, 0], sizes = [1, 8], strides = [1, 1]} : vector<2x8xf32> to vector<1x8xf32>
    %406 = vector.extract_strided_slice %263 {offsets = [0, 0, 0], sizes = [1, 8, 32], strides = [1, 1, 1]} : vector<2x8x32xf32> to vector<1x8x32xf32>
    %407 = vector.shape_cast %406 : vector<1x8x32xf32> to vector<8x32xf32>
    %cst_90 = arith.constant dense<0.000000e+00> : vector<1x32xf32>
    %408 = tpu.matmul %405, %407, %cst_90 {dimension_numbers = #tpu.dot_dimension_numbers<[1], [0], [0], [1], [0, 0, 1, 1], [], []>} : vector<1x8xf32>, vector<8x32xf32>, vector<1x32xf32> -> vector<1x32xf32>
    %409 = vector.extract_strided_slice %396 {offsets = [1, 0], sizes = [1, 8], strides = [1, 1]} : vector<2x8xf32> to vector<1x8xf32>
    %410 = vector.extract_strided_slice %263 {offsets = [1, 0, 0], sizes = [1, 8, 32], strides = [1, 1, 1]} : vector<2x8x32xf32> to vector<1x8x32xf32>
    %411 = vector.shape_cast %410 : vector<1x8x32xf32> to vector<8x32xf32>
    %cst_91 = arith.constant dense<0.000000e+00> : vector<1x32xf32>
    %412 = tpu.matmul %409, %411, %cst_91 {dimension_numbers = #tpu.dot_dimension_numbers<[1], [0], [0], [1], [0, 0, 1, 1], [], []>} : vector<1x8xf32>, vector<8x32xf32>, vector<1x32xf32> -> vector<1x32xf32>
    %413 = tpu.concatenate %408, %412 in 0 : vector<1x32xf32>, vector<1x32xf32> -> vector<2x32xf32>
    %cst_92 = arith.constant dense<0.000000e+00> : vector<2x96xf32>
    %414 = tpu.matmul %413, %36, %cst_92 {dimension_numbers = #tpu.dot_dimension_numbers<[1], [0], [0], [1], [0, 0, 1, 1], [], []>} : vector<2x32xf32>, vector<32x96xf32>, vector<2x96xf32> -> vector<2x96xf32>
    %cst_93 = arith.constant dense<0.000000e+00> : vector<2x96xf32>
    %415 = tpu.matmul %371, %37, %cst_93 {dimension_numbers = #tpu.dot_dimension_numbers<[1], [0], [0], [1], [0, 0, 1, 1], [], []>} : vector<2x32xf32>, vector<32x96xf32>, vector<2x96xf32> -> vector<2x96xf32>
    %416 = vector.extract_strided_slice %414 {offsets = [0, 0], sizes = [2, 64], strides = [1, 1]} : vector<2x96xf32> to vector<2x64xf32>
    %417 = vector.extract_strided_slice %415 {offsets = [0, 0], sizes = [2, 64], strides = [1, 1]} : vector<2x96xf32> to vector<2x64xf32>
    %418 = arith.addf %416, %417 : vector<2x64xf32>
    %419 = arith.addf %418, %27 : vector<2x64xf32>
    %420 = arith.negf %419 : vector<2x64xf32>
    %421 = math.exp %420 : vector<2x64xf32>
    %cst_94 = arith.constant 1.000000e+00 : f32
    %422 = vector.broadcast %cst_94 : f32 to vector<2x64xf32>
    %423 = arith.addf %422, %421 : vector<2x64xf32>
    %424 = arith.divf %422, %423 : vector<2x64xf32>
    %425 = vector.extract_strided_slice %424 {offsets = [0, 0], sizes = [2, 32], strides = [1, 1]} : vector<2x64xf32> to vector<2x32xf32>
    %426 = vector.extract_strided_slice %424 {offsets = [0, 32], sizes = [2, 32], strides = [1, 1]} : vector<2x64xf32> to vector<2x32xf32>
    %427 = vector.extract_strided_slice %414 {offsets = [0, 64], sizes = [2, 32], strides = [1, 1]} : vector<2x96xf32> to vector<2x32xf32>
    %428 = arith.addf %427, %30 : vector<2x32xf32>
    %429 = vector.extract_strided_slice %415 {offsets = [0, 64], sizes = [2, 32], strides = [1, 1]} : vector<2x96xf32> to vector<2x32xf32>
    %430 = arith.addf %429, %33 : vector<2x32xf32>
    %431 = arith.mulf %425, %430 : vector<2x32xf32>
    %432 = arith.addf %428, %431 : vector<2x32xf32>
    %433 = math.tanh %432 : vector<2x32xf32>
    %cst_95 = arith.constant 1.000000e+00 : f32
    %434 = vector.broadcast %cst_95 : f32 to vector<2x32xf32>
    %435 = arith.subf %434, %426 : vector<2x32xf32>
    %436 = arith.mulf %435, %433 : vector<2x32xf32>
    %437 = arith.mulf %426, %371 : vector<2x32xf32>
    %438 = arith.addf %436, %437 : vector<2x32xf32>
    %cst_96 = arith.constant dense<0.000000e+00> : vector<2x32xf32>
    %439 = tpu.matmul %438, %267, %cst_96 {dimension_numbers = #tpu.dot_dimension_numbers<[1], [0], [0], [1], [0, 0, 1, 1], [], []>} : vector<2x32xf32>, vector<32x32xf32>, vector<2x32xf32> -> vector<2x32xf32>
    %440 = vector.shape_cast %439 : vector<2x32xf32> to vector<2x1x32xf32>
    %441 = vector.broadcast %440 : vector<2x1x32xf32> to vector<2x8x32xf32>
    %442 = arith.addf %271, %441 : vector<2x8x32xf32>
    %443 = math.tanh %442 : vector<2x8x32xf32>
    %444 = vector.shape_cast %268 : vector<1x32xf32> to vector<1x1x32xf32>
    %445 = vector.broadcast %444 : vector<1x1x32xf32> to vector<2x8x32xf32>
    %446 = arith.mulf %443, %445 : vector<2x8x32xf32>
    %cst_97 = arith.constant dense<0.000000e+00> : vector<2x8xf32>
    %447 = vector.multi_reduction <add>, %446, %cst_97 [2] : vector<2x8x32xf32> to vector<2x8xf32>
    %cst_98 = arith.constant 0.000000e+00 : f32
    %448 = vector.broadcast %cst_98 : f32 to vector<2x8xf32>
    %449 = arith.cmpf ogt, %404, %448 : vector<2x8xf32>
    %cst_99 = arith.constant -1.000000e+09 : f32
    %450 = vector.broadcast %cst_99 : f32 to vector<2x8xf32>
    %451 = arith.select %449, %447, %450 : vector<2x8xi1>, vector<2x8xf32>
    %cst_100 = arith.constant dense<0xFF800000> : vector<2xf32>
    %452 = vector.multi_reduction <maximumf>, %451, %cst_100 [1] : vector<2x8xf32> to vector<2xf32>
    %453 = vector.shape_cast %452 : vector<2xf32> to vector<2x1xf32>
    %454 = vector.broadcast %453 : vector<2x1xf32> to vector<2x8xf32>
    %455 = arith.cmpf oge, %451, %454 : vector<2x8xf32>
    %c8_i32_101 = arith.constant 8 : i32
    %456 = vector.broadcast %c8_i32_101 : i32 to vector<2x8xi32>
    %457 = arith.select %455, %272, %456 : vector<2x8xi1>, vector<2x8xi32>
    %cst_102 = arith.constant dense<2147483647> : vector<2xi32>
    %458 = vector.multi_reduction <minsi>, %457, %cst_102 [1] : vector<2x8xi32> to vector<2xi32>
    %459 = vector.shape_cast %458 : vector<2xi32> to vector<2x1xi32>
    %460 = vector.broadcast %459 : vector<2x1xi32> to vector<2x8xi32>
    %461 = arith.cmpi eq, %272, %460 : vector<2x8xi32>
    %462 = arith.extui %461 : vector<2x8xi1> to vector<2x8xi32>
    %463 = arith.sitofp %462 : vector<2x8xi32> to vector<2x8xf32>
    %c3_i32 = arith.constant 3 : i32
    %464 = vector.broadcast %c3_i32 : i32 to vector<2x8xi32>
    %465 = arith.cmpi eq, %272, %464 : vector<2x8xi32>
    %466 = vector.shape_cast %459 : vector<2x1xi32> to vector<2x1xi32>
    %467 = vector.broadcast %466 : vector<2x1xi32> to vector<2x8xi32>
    %468 = arith.select %465, %467, %401 : vector<2x8xi1>, vector<2x8xi32>
    %cst_103 = arith.constant 1.000000e+00 : f32
    %469 = vector.broadcast %cst_103 : f32 to vector<2x8xf32>
    %470 = arith.subf %469, %463 : vector<2x8xf32>
    %471 = arith.mulf %404, %470 : vector<2x8xf32>
    %472 = vector.extract_strided_slice %463 {offsets = [0, 0], sizes = [1, 8], strides = [1, 1]} : vector<2x8xf32> to vector<1x8xf32>
    %473 = vector.extract_strided_slice %263 {offsets = [0, 0, 0], sizes = [1, 8, 32], strides = [1, 1, 1]} : vector<2x8x32xf32> to vector<1x8x32xf32>
    %474 = vector.shape_cast %473 : vector<1x8x32xf32> to vector<8x32xf32>
    %cst_104 = arith.constant dense<0.000000e+00> : vector<1x32xf32>
    %475 = tpu.matmul %472, %474, %cst_104 {dimension_numbers = #tpu.dot_dimension_numbers<[1], [0], [0], [1], [0, 0, 1, 1], [], []>} : vector<1x8xf32>, vector<8x32xf32>, vector<1x32xf32> -> vector<1x32xf32>
    %476 = vector.extract_strided_slice %463 {offsets = [1, 0], sizes = [1, 8], strides = [1, 1]} : vector<2x8xf32> to vector<1x8xf32>
    %477 = vector.extract_strided_slice %263 {offsets = [1, 0, 0], sizes = [1, 8, 32], strides = [1, 1, 1]} : vector<2x8x32xf32> to vector<1x8x32xf32>
    %478 = vector.shape_cast %477 : vector<1x8x32xf32> to vector<8x32xf32>
    %cst_105 = arith.constant dense<0.000000e+00> : vector<1x32xf32>
    %479 = tpu.matmul %476, %478, %cst_105 {dimension_numbers = #tpu.dot_dimension_numbers<[1], [0], [0], [1], [0, 0, 1, 1], [], []>} : vector<1x8xf32>, vector<8x32xf32>, vector<1x32xf32> -> vector<1x32xf32>
    %480 = tpu.concatenate %475, %479 in 0 : vector<1x32xf32>, vector<1x32xf32> -> vector<2x32xf32>
    %cst_106 = arith.constant dense<0.000000e+00> : vector<2x96xf32>
    %481 = tpu.matmul %480, %36, %cst_106 {dimension_numbers = #tpu.dot_dimension_numbers<[1], [0], [0], [1], [0, 0, 1, 1], [], []>} : vector<2x32xf32>, vector<32x96xf32>, vector<2x96xf32> -> vector<2x96xf32>
    %cst_107 = arith.constant dense<0.000000e+00> : vector<2x96xf32>
    %482 = tpu.matmul %438, %37, %cst_107 {dimension_numbers = #tpu.dot_dimension_numbers<[1], [0], [0], [1], [0, 0, 1, 1], [], []>} : vector<2x32xf32>, vector<32x96xf32>, vector<2x96xf32> -> vector<2x96xf32>
    %483 = vector.extract_strided_slice %481 {offsets = [0, 0], sizes = [2, 64], strides = [1, 1]} : vector<2x96xf32> to vector<2x64xf32>
    %484 = vector.extract_strided_slice %482 {offsets = [0, 0], sizes = [2, 64], strides = [1, 1]} : vector<2x96xf32> to vector<2x64xf32>
    %485 = arith.addf %483, %484 : vector<2x64xf32>
    %486 = arith.addf %485, %27 : vector<2x64xf32>
    %487 = arith.negf %486 : vector<2x64xf32>
    %488 = math.exp %487 : vector<2x64xf32>
    %cst_108 = arith.constant 1.000000e+00 : f32
    %489 = vector.broadcast %cst_108 : f32 to vector<2x64xf32>
    %490 = arith.addf %489, %488 : vector<2x64xf32>
    %491 = arith.divf %489, %490 : vector<2x64xf32>
    %492 = vector.extract_strided_slice %491 {offsets = [0, 0], sizes = [2, 32], strides = [1, 1]} : vector<2x64xf32> to vector<2x32xf32>
    %493 = vector.extract_strided_slice %491 {offsets = [0, 32], sizes = [2, 32], strides = [1, 1]} : vector<2x64xf32> to vector<2x32xf32>
    %494 = vector.extract_strided_slice %481 {offsets = [0, 64], sizes = [2, 32], strides = [1, 1]} : vector<2x96xf32> to vector<2x32xf32>
    %495 = arith.addf %494, %30 : vector<2x32xf32>
    %496 = vector.extract_strided_slice %482 {offsets = [0, 64], sizes = [2, 32], strides = [1, 1]} : vector<2x96xf32> to vector<2x32xf32>
    %497 = arith.addf %496, %33 : vector<2x32xf32>
    %498 = arith.mulf %492, %497 : vector<2x32xf32>
    %499 = arith.addf %495, %498 : vector<2x32xf32>
    %500 = math.tanh %499 : vector<2x32xf32>
    %cst_109 = arith.constant 1.000000e+00 : f32
    %501 = vector.broadcast %cst_109 : f32 to vector<2x32xf32>
    %502 = arith.subf %501, %493 : vector<2x32xf32>
    %503 = arith.mulf %502, %500 : vector<2x32xf32>
    %504 = arith.mulf %493, %438 : vector<2x32xf32>
    %505 = arith.addf %503, %504 : vector<2x32xf32>
    %cst_110 = arith.constant dense<0.000000e+00> : vector<2x32xf32>
    %506 = tpu.matmul %505, %267, %cst_110 {dimension_numbers = #tpu.dot_dimension_numbers<[1], [0], [0], [1], [0, 0, 1, 1], [], []>} : vector<2x32xf32>, vector<32x32xf32>, vector<2x32xf32> -> vector<2x32xf32>
    %507 = vector.shape_cast %506 : vector<2x32xf32> to vector<2x1x32xf32>
    %508 = vector.broadcast %507 : vector<2x1x32xf32> to vector<2x8x32xf32>
    %509 = arith.addf %271, %508 : vector<2x8x32xf32>
    %510 = math.tanh %509 : vector<2x8x32xf32>
    %511 = vector.shape_cast %268 : vector<1x32xf32> to vector<1x1x32xf32>
    %512 = vector.broadcast %511 : vector<1x1x32xf32> to vector<2x8x32xf32>
    %513 = arith.mulf %510, %512 : vector<2x8x32xf32>
    %cst_111 = arith.constant dense<0.000000e+00> : vector<2x8xf32>
    %514 = vector.multi_reduction <add>, %513, %cst_111 [2] : vector<2x8x32xf32> to vector<2x8xf32>
    %cst_112 = arith.constant 0.000000e+00 : f32
    %515 = vector.broadcast %cst_112 : f32 to vector<2x8xf32>
    %516 = arith.cmpf ogt, %471, %515 : vector<2x8xf32>
    %cst_113 = arith.constant -1.000000e+09 : f32
    %517 = vector.broadcast %cst_113 : f32 to vector<2x8xf32>
    %518 = arith.select %516, %514, %517 : vector<2x8xi1>, vector<2x8xf32>
    %cst_114 = arith.constant dense<0xFF800000> : vector<2xf32>
    %519 = vector.multi_reduction <maximumf>, %518, %cst_114 [1] : vector<2x8xf32> to vector<2xf32>
    %520 = vector.shape_cast %519 : vector<2xf32> to vector<2x1xf32>
    %521 = vector.broadcast %520 : vector<2x1xf32> to vector<2x8xf32>
    %522 = arith.cmpf oge, %518, %521 : vector<2x8xf32>
    %c8_i32_115 = arith.constant 8 : i32
    %523 = vector.broadcast %c8_i32_115 : i32 to vector<2x8xi32>
    %524 = arith.select %522, %272, %523 : vector<2x8xi1>, vector<2x8xi32>
    %cst_116 = arith.constant dense<2147483647> : vector<2xi32>
    %525 = vector.multi_reduction <minsi>, %524, %cst_116 [1] : vector<2x8xi32> to vector<2xi32>
    %526 = vector.shape_cast %525 : vector<2xi32> to vector<2x1xi32>
    %527 = vector.broadcast %526 : vector<2x1xi32> to vector<2x8xi32>
    %528 = arith.cmpi eq, %272, %527 : vector<2x8xi32>
    %529 = arith.extui %528 : vector<2x8xi1> to vector<2x8xi32>
    %530 = arith.sitofp %529 : vector<2x8xi32> to vector<2x8xf32>
    %c4_i32 = arith.constant 4 : i32
    %531 = vector.broadcast %c4_i32 : i32 to vector<2x8xi32>
    %532 = arith.cmpi eq, %272, %531 : vector<2x8xi32>
    %533 = vector.shape_cast %526 : vector<2x1xi32> to vector<2x1xi32>
    %534 = vector.broadcast %533 : vector<2x1xi32> to vector<2x8xi32>
    %535 = arith.select %532, %534, %468 : vector<2x8xi1>, vector<2x8xi32>
    %cst_117 = arith.constant 1.000000e+00 : f32
    %536 = vector.broadcast %cst_117 : f32 to vector<2x8xf32>
    %537 = arith.subf %536, %530 : vector<2x8xf32>
    %538 = arith.mulf %471, %537 : vector<2x8xf32>
    %539 = vector.extract_strided_slice %530 {offsets = [0, 0], sizes = [1, 8], strides = [1, 1]} : vector<2x8xf32> to vector<1x8xf32>
    %540 = vector.extract_strided_slice %263 {offsets = [0, 0, 0], sizes = [1, 8, 32], strides = [1, 1, 1]} : vector<2x8x32xf32> to vector<1x8x32xf32>
    %541 = vector.shape_cast %540 : vector<1x8x32xf32> to vector<8x32xf32>
    %cst_118 = arith.constant dense<0.000000e+00> : vector<1x32xf32>
    %542 = tpu.matmul %539, %541, %cst_118 {dimension_numbers = #tpu.dot_dimension_numbers<[1], [0], [0], [1], [0, 0, 1, 1], [], []>} : vector<1x8xf32>, vector<8x32xf32>, vector<1x32xf32> -> vector<1x32xf32>
    %543 = vector.extract_strided_slice %530 {offsets = [1, 0], sizes = [1, 8], strides = [1, 1]} : vector<2x8xf32> to vector<1x8xf32>
    %544 = vector.extract_strided_slice %263 {offsets = [1, 0, 0], sizes = [1, 8, 32], strides = [1, 1, 1]} : vector<2x8x32xf32> to vector<1x8x32xf32>
    %545 = vector.shape_cast %544 : vector<1x8x32xf32> to vector<8x32xf32>
    %cst_119 = arith.constant dense<0.000000e+00> : vector<1x32xf32>
    %546 = tpu.matmul %543, %545, %cst_119 {dimension_numbers = #tpu.dot_dimension_numbers<[1], [0], [0], [1], [0, 0, 1, 1], [], []>} : vector<1x8xf32>, vector<8x32xf32>, vector<1x32xf32> -> vector<1x32xf32>
    %547 = tpu.concatenate %542, %546 in 0 : vector<1x32xf32>, vector<1x32xf32> -> vector<2x32xf32>
    %cst_120 = arith.constant dense<0.000000e+00> : vector<2x96xf32>
    %548 = tpu.matmul %547, %36, %cst_120 {dimension_numbers = #tpu.dot_dimension_numbers<[1], [0], [0], [1], [0, 0, 1, 1], [], []>} : vector<2x32xf32>, vector<32x96xf32>, vector<2x96xf32> -> vector<2x96xf32>
    %cst_121 = arith.constant dense<0.000000e+00> : vector<2x96xf32>
    %549 = tpu.matmul %505, %37, %cst_121 {dimension_numbers = #tpu.dot_dimension_numbers<[1], [0], [0], [1], [0, 0, 1, 1], [], []>} : vector<2x32xf32>, vector<32x96xf32>, vector<2x96xf32> -> vector<2x96xf32>
    %550 = vector.extract_strided_slice %548 {offsets = [0, 0], sizes = [2, 64], strides = [1, 1]} : vector<2x96xf32> to vector<2x64xf32>
    %551 = vector.extract_strided_slice %549 {offsets = [0, 0], sizes = [2, 64], strides = [1, 1]} : vector<2x96xf32> to vector<2x64xf32>
    %552 = arith.addf %550, %551 : vector<2x64xf32>
    %553 = arith.addf %552, %27 : vector<2x64xf32>
    %554 = arith.negf %553 : vector<2x64xf32>
    %555 = math.exp %554 : vector<2x64xf32>
    %cst_122 = arith.constant 1.000000e+00 : f32
    %556 = vector.broadcast %cst_122 : f32 to vector<2x64xf32>
    %557 = arith.addf %556, %555 : vector<2x64xf32>
    %558 = arith.divf %556, %557 : vector<2x64xf32>
    %559 = vector.extract_strided_slice %558 {offsets = [0, 0], sizes = [2, 32], strides = [1, 1]} : vector<2x64xf32> to vector<2x32xf32>
    %560 = vector.extract_strided_slice %558 {offsets = [0, 32], sizes = [2, 32], strides = [1, 1]} : vector<2x64xf32> to vector<2x32xf32>
    %561 = vector.extract_strided_slice %548 {offsets = [0, 64], sizes = [2, 32], strides = [1, 1]} : vector<2x96xf32> to vector<2x32xf32>
    %562 = arith.addf %561, %30 : vector<2x32xf32>
    %563 = vector.extract_strided_slice %549 {offsets = [0, 64], sizes = [2, 32], strides = [1, 1]} : vector<2x96xf32> to vector<2x32xf32>
    %564 = arith.addf %563, %33 : vector<2x32xf32>
    %565 = arith.mulf %559, %564 : vector<2x32xf32>
    %566 = arith.addf %562, %565 : vector<2x32xf32>
    %567 = math.tanh %566 : vector<2x32xf32>
    %cst_123 = arith.constant 1.000000e+00 : f32
    %568 = vector.broadcast %cst_123 : f32 to vector<2x32xf32>
    %569 = arith.subf %568, %560 : vector<2x32xf32>
    %570 = arith.mulf %569, %567 : vector<2x32xf32>
    %571 = arith.mulf %560, %505 : vector<2x32xf32>
    %572 = arith.addf %570, %571 : vector<2x32xf32>
    %cst_124 = arith.constant dense<0.000000e+00> : vector<2x32xf32>
    %573 = tpu.matmul %572, %267, %cst_124 {dimension_numbers = #tpu.dot_dimension_numbers<[1], [0], [0], [1], [0, 0, 1, 1], [], []>} : vector<2x32xf32>, vector<32x32xf32>, vector<2x32xf32> -> vector<2x32xf32>
    %574 = vector.shape_cast %573 : vector<2x32xf32> to vector<2x1x32xf32>
    %575 = vector.broadcast %574 : vector<2x1x32xf32> to vector<2x8x32xf32>
    %576 = arith.addf %271, %575 : vector<2x8x32xf32>
    %577 = math.tanh %576 : vector<2x8x32xf32>
    %578 = vector.shape_cast %268 : vector<1x32xf32> to vector<1x1x32xf32>
    %579 = vector.broadcast %578 : vector<1x1x32xf32> to vector<2x8x32xf32>
    %580 = arith.mulf %577, %579 : vector<2x8x32xf32>
    %cst_125 = arith.constant dense<0.000000e+00> : vector<2x8xf32>
    %581 = vector.multi_reduction <add>, %580, %cst_125 [2] : vector<2x8x32xf32> to vector<2x8xf32>
    %cst_126 = arith.constant 0.000000e+00 : f32
    %582 = vector.broadcast %cst_126 : f32 to vector<2x8xf32>
    %583 = arith.cmpf ogt, %538, %582 : vector<2x8xf32>
    %cst_127 = arith.constant -1.000000e+09 : f32
    %584 = vector.broadcast %cst_127 : f32 to vector<2x8xf32>
    %585 = arith.select %583, %581, %584 : vector<2x8xi1>, vector<2x8xf32>
    %cst_128 = arith.constant dense<0xFF800000> : vector<2xf32>
    %586 = vector.multi_reduction <maximumf>, %585, %cst_128 [1] : vector<2x8xf32> to vector<2xf32>
    %587 = vector.shape_cast %586 : vector<2xf32> to vector<2x1xf32>
    %588 = vector.broadcast %587 : vector<2x1xf32> to vector<2x8xf32>
    %589 = arith.cmpf oge, %585, %588 : vector<2x8xf32>
    %c8_i32_129 = arith.constant 8 : i32
    %590 = vector.broadcast %c8_i32_129 : i32 to vector<2x8xi32>
    %591 = arith.select %589, %272, %590 : vector<2x8xi1>, vector<2x8xi32>
    %cst_130 = arith.constant dense<2147483647> : vector<2xi32>
    %592 = vector.multi_reduction <minsi>, %591, %cst_130 [1] : vector<2x8xi32> to vector<2xi32>
    %593 = vector.shape_cast %592 : vector<2xi32> to vector<2x1xi32>
    %594 = vector.broadcast %593 : vector<2x1xi32> to vector<2x8xi32>
    %595 = arith.cmpi eq, %272, %594 : vector<2x8xi32>
    %596 = arith.extui %595 : vector<2x8xi1> to vector<2x8xi32>
    %597 = arith.sitofp %596 : vector<2x8xi32> to vector<2x8xf32>
    %c5_i32 = arith.constant 5 : i32
    %598 = vector.broadcast %c5_i32 : i32 to vector<2x8xi32>
    %599 = arith.cmpi eq, %272, %598 : vector<2x8xi32>
    %600 = vector.shape_cast %593 : vector<2x1xi32> to vector<2x1xi32>
    %601 = vector.broadcast %600 : vector<2x1xi32> to vector<2x8xi32>
    %602 = arith.select %599, %601, %535 : vector<2x8xi1>, vector<2x8xi32>
    %cst_131 = arith.constant 1.000000e+00 : f32
    %603 = vector.broadcast %cst_131 : f32 to vector<2x8xf32>
    %604 = arith.subf %603, %597 : vector<2x8xf32>
    %605 = arith.mulf %538, %604 : vector<2x8xf32>
    %606 = vector.extract_strided_slice %597 {offsets = [0, 0], sizes = [1, 8], strides = [1, 1]} : vector<2x8xf32> to vector<1x8xf32>
    %607 = vector.extract_strided_slice %263 {offsets = [0, 0, 0], sizes = [1, 8, 32], strides = [1, 1, 1]} : vector<2x8x32xf32> to vector<1x8x32xf32>
    %608 = vector.shape_cast %607 : vector<1x8x32xf32> to vector<8x32xf32>
    %cst_132 = arith.constant dense<0.000000e+00> : vector<1x32xf32>
    %609 = tpu.matmul %606, %608, %cst_132 {dimension_numbers = #tpu.dot_dimension_numbers<[1], [0], [0], [1], [0, 0, 1, 1], [], []>} : vector<1x8xf32>, vector<8x32xf32>, vector<1x32xf32> -> vector<1x32xf32>
    %610 = vector.extract_strided_slice %597 {offsets = [1, 0], sizes = [1, 8], strides = [1, 1]} : vector<2x8xf32> to vector<1x8xf32>
    %611 = vector.extract_strided_slice %263 {offsets = [1, 0, 0], sizes = [1, 8, 32], strides = [1, 1, 1]} : vector<2x8x32xf32> to vector<1x8x32xf32>
    %612 = vector.shape_cast %611 : vector<1x8x32xf32> to vector<8x32xf32>
    %cst_133 = arith.constant dense<0.000000e+00> : vector<1x32xf32>
    %613 = tpu.matmul %610, %612, %cst_133 {dimension_numbers = #tpu.dot_dimension_numbers<[1], [0], [0], [1], [0, 0, 1, 1], [], []>} : vector<1x8xf32>, vector<8x32xf32>, vector<1x32xf32> -> vector<1x32xf32>
    %614 = tpu.concatenate %609, %613 in 0 : vector<1x32xf32>, vector<1x32xf32> -> vector<2x32xf32>
    %cst_134 = arith.constant dense<0.000000e+00> : vector<2x96xf32>
    %615 = tpu.matmul %614, %36, %cst_134 {dimension_numbers = #tpu.dot_dimension_numbers<[1], [0], [0], [1], [0, 0, 1, 1], [], []>} : vector<2x32xf32>, vector<32x96xf32>, vector<2x96xf32> -> vector<2x96xf32>
    %cst_135 = arith.constant dense<0.000000e+00> : vector<2x96xf32>
    %616 = tpu.matmul %572, %37, %cst_135 {dimension_numbers = #tpu.dot_dimension_numbers<[1], [0], [0], [1], [0, 0, 1, 1], [], []>} : vector<2x32xf32>, vector<32x96xf32>, vector<2x96xf32> -> vector<2x96xf32>
    %617 = vector.extract_strided_slice %615 {offsets = [0, 0], sizes = [2, 64], strides = [1, 1]} : vector<2x96xf32> to vector<2x64xf32>
    %618 = vector.extract_strided_slice %616 {offsets = [0, 0], sizes = [2, 64], strides = [1, 1]} : vector<2x96xf32> to vector<2x64xf32>
    %619 = arith.addf %617, %618 : vector<2x64xf32>
    %620 = arith.addf %619, %27 : vector<2x64xf32>
    %621 = arith.negf %620 : vector<2x64xf32>
    %622 = math.exp %621 : vector<2x64xf32>
    %cst_136 = arith.constant 1.000000e+00 : f32
    %623 = vector.broadcast %cst_136 : f32 to vector<2x64xf32>
    %624 = arith.addf %623, %622 : vector<2x64xf32>
    %625 = arith.divf %623, %624 : vector<2x64xf32>
    %626 = vector.extract_strided_slice %625 {offsets = [0, 0], sizes = [2, 32], strides = [1, 1]} : vector<2x64xf32> to vector<2x32xf32>
    %627 = vector.extract_strided_slice %625 {offsets = [0, 32], sizes = [2, 32], strides = [1, 1]} : vector<2x64xf32> to vector<2x32xf32>
    %628 = vector.extract_strided_slice %615 {offsets = [0, 64], sizes = [2, 32], strides = [1, 1]} : vector<2x96xf32> to vector<2x32xf32>
    %629 = arith.addf %628, %30 : vector<2x32xf32>
    %630 = vector.extract_strided_slice %616 {offsets = [0, 64], sizes = [2, 32], strides = [1, 1]} : vector<2x96xf32> to vector<2x32xf32>
    %631 = arith.addf %630, %33 : vector<2x32xf32>
    %632 = arith.mulf %626, %631 : vector<2x32xf32>
    %633 = arith.addf %629, %632 : vector<2x32xf32>
    %634 = math.tanh %633 : vector<2x32xf32>
    %cst_137 = arith.constant 1.000000e+00 : f32
    %635 = vector.broadcast %cst_137 : f32 to vector<2x32xf32>
    %636 = arith.subf %635, %627 : vector<2x32xf32>
    %637 = arith.mulf %636, %634 : vector<2x32xf32>
    %638 = arith.mulf %627, %572 : vector<2x32xf32>
    %639 = arith.addf %637, %638 : vector<2x32xf32>
    %cst_138 = arith.constant dense<0.000000e+00> : vector<2x32xf32>
    %640 = tpu.matmul %639, %267, %cst_138 {dimension_numbers = #tpu.dot_dimension_numbers<[1], [0], [0], [1], [0, 0, 1, 1], [], []>} : vector<2x32xf32>, vector<32x32xf32>, vector<2x32xf32> -> vector<2x32xf32>
    %641 = vector.shape_cast %640 : vector<2x32xf32> to vector<2x1x32xf32>
    %642 = vector.broadcast %641 : vector<2x1x32xf32> to vector<2x8x32xf32>
    %643 = arith.addf %271, %642 : vector<2x8x32xf32>
    %644 = math.tanh %643 : vector<2x8x32xf32>
    %645 = vector.shape_cast %268 : vector<1x32xf32> to vector<1x1x32xf32>
    %646 = vector.broadcast %645 : vector<1x1x32xf32> to vector<2x8x32xf32>
    %647 = arith.mulf %644, %646 : vector<2x8x32xf32>
    %cst_139 = arith.constant dense<0.000000e+00> : vector<2x8xf32>
    %648 = vector.multi_reduction <add>, %647, %cst_139 [2] : vector<2x8x32xf32> to vector<2x8xf32>
    %cst_140 = arith.constant 0.000000e+00 : f32
    %649 = vector.broadcast %cst_140 : f32 to vector<2x8xf32>
    %650 = arith.cmpf ogt, %605, %649 : vector<2x8xf32>
    %cst_141 = arith.constant -1.000000e+09 : f32
    %651 = vector.broadcast %cst_141 : f32 to vector<2x8xf32>
    %652 = arith.select %650, %648, %651 : vector<2x8xi1>, vector<2x8xf32>
    %cst_142 = arith.constant dense<0xFF800000> : vector<2xf32>
    %653 = vector.multi_reduction <maximumf>, %652, %cst_142 [1] : vector<2x8xf32> to vector<2xf32>
    %654 = vector.shape_cast %653 : vector<2xf32> to vector<2x1xf32>
    %655 = vector.broadcast %654 : vector<2x1xf32> to vector<2x8xf32>
    %656 = arith.cmpf oge, %652, %655 : vector<2x8xf32>
    %c8_i32_143 = arith.constant 8 : i32
    %657 = vector.broadcast %c8_i32_143 : i32 to vector<2x8xi32>
    %658 = arith.select %656, %272, %657 : vector<2x8xi1>, vector<2x8xi32>
    %cst_144 = arith.constant dense<2147483647> : vector<2xi32>
    %659 = vector.multi_reduction <minsi>, %658, %cst_144 [1] : vector<2x8xi32> to vector<2xi32>
    %660 = vector.shape_cast %659 : vector<2xi32> to vector<2x1xi32>
    %661 = vector.broadcast %660 : vector<2x1xi32> to vector<2x8xi32>
    %662 = arith.cmpi eq, %272, %661 : vector<2x8xi32>
    %663 = arith.extui %662 : vector<2x8xi1> to vector<2x8xi32>
    %664 = arith.sitofp %663 : vector<2x8xi32> to vector<2x8xf32>
    %c6_i32 = arith.constant 6 : i32
    %665 = vector.broadcast %c6_i32 : i32 to vector<2x8xi32>
    %666 = arith.cmpi eq, %272, %665 : vector<2x8xi32>
    %667 = vector.shape_cast %660 : vector<2x1xi32> to vector<2x1xi32>
    %668 = vector.broadcast %667 : vector<2x1xi32> to vector<2x8xi32>
    %669 = arith.select %666, %668, %602 : vector<2x8xi1>, vector<2x8xi32>
    %cst_145 = arith.constant 1.000000e+00 : f32
    %670 = vector.broadcast %cst_145 : f32 to vector<2x8xf32>
    %671 = arith.subf %670, %664 : vector<2x8xf32>
    %672 = arith.mulf %605, %671 : vector<2x8xf32>
    %673 = vector.extract_strided_slice %664 {offsets = [0, 0], sizes = [1, 8], strides = [1, 1]} : vector<2x8xf32> to vector<1x8xf32>
    %674 = vector.extract_strided_slice %263 {offsets = [0, 0, 0], sizes = [1, 8, 32], strides = [1, 1, 1]} : vector<2x8x32xf32> to vector<1x8x32xf32>
    %675 = vector.shape_cast %674 : vector<1x8x32xf32> to vector<8x32xf32>
    %cst_146 = arith.constant dense<0.000000e+00> : vector<1x32xf32>
    %676 = tpu.matmul %673, %675, %cst_146 {dimension_numbers = #tpu.dot_dimension_numbers<[1], [0], [0], [1], [0, 0, 1, 1], [], []>} : vector<1x8xf32>, vector<8x32xf32>, vector<1x32xf32> -> vector<1x32xf32>
    %677 = vector.extract_strided_slice %664 {offsets = [1, 0], sizes = [1, 8], strides = [1, 1]} : vector<2x8xf32> to vector<1x8xf32>
    %678 = vector.extract_strided_slice %263 {offsets = [1, 0, 0], sizes = [1, 8, 32], strides = [1, 1, 1]} : vector<2x8x32xf32> to vector<1x8x32xf32>
    %679 = vector.shape_cast %678 : vector<1x8x32xf32> to vector<8x32xf32>
    %cst_147 = arith.constant dense<0.000000e+00> : vector<1x32xf32>
    %680 = tpu.matmul %677, %679, %cst_147 {dimension_numbers = #tpu.dot_dimension_numbers<[1], [0], [0], [1], [0, 0, 1, 1], [], []>} : vector<1x8xf32>, vector<8x32xf32>, vector<1x32xf32> -> vector<1x32xf32>
    %681 = tpu.concatenate %676, %680 in 0 : vector<1x32xf32>, vector<1x32xf32> -> vector<2x32xf32>
    %cst_148 = arith.constant dense<0.000000e+00> : vector<2x96xf32>
    %682 = tpu.matmul %681, %36, %cst_148 {dimension_numbers = #tpu.dot_dimension_numbers<[1], [0], [0], [1], [0, 0, 1, 1], [], []>} : vector<2x32xf32>, vector<32x96xf32>, vector<2x96xf32> -> vector<2x96xf32>
    %cst_149 = arith.constant dense<0.000000e+00> : vector<2x96xf32>
    %683 = tpu.matmul %639, %37, %cst_149 {dimension_numbers = #tpu.dot_dimension_numbers<[1], [0], [0], [1], [0, 0, 1, 1], [], []>} : vector<2x32xf32>, vector<32x96xf32>, vector<2x96xf32> -> vector<2x96xf32>
    %684 = vector.extract_strided_slice %682 {offsets = [0, 0], sizes = [2, 64], strides = [1, 1]} : vector<2x96xf32> to vector<2x64xf32>
    %685 = vector.extract_strided_slice %683 {offsets = [0, 0], sizes = [2, 64], strides = [1, 1]} : vector<2x96xf32> to vector<2x64xf32>
    %686 = arith.addf %684, %685 : vector<2x64xf32>
    %687 = arith.addf %686, %27 : vector<2x64xf32>
    %688 = arith.negf %687 : vector<2x64xf32>
    %689 = math.exp %688 : vector<2x64xf32>
    %cst_150 = arith.constant 1.000000e+00 : f32
    %690 = vector.broadcast %cst_150 : f32 to vector<2x64xf32>
    %691 = arith.addf %690, %689 : vector<2x64xf32>
    %692 = arith.divf %690, %691 : vector<2x64xf32>
    %693 = vector.extract_strided_slice %692 {offsets = [0, 0], sizes = [2, 32], strides = [1, 1]} : vector<2x64xf32> to vector<2x32xf32>
    %694 = vector.extract_strided_slice %692 {offsets = [0, 32], sizes = [2, 32], strides = [1, 1]} : vector<2x64xf32> to vector<2x32xf32>
    %695 = vector.extract_strided_slice %682 {offsets = [0, 64], sizes = [2, 32], strides = [1, 1]} : vector<2x96xf32> to vector<2x32xf32>
    %696 = arith.addf %695, %30 : vector<2x32xf32>
    %697 = vector.extract_strided_slice %683 {offsets = [0, 64], sizes = [2, 32], strides = [1, 1]} : vector<2x96xf32> to vector<2x32xf32>
    %698 = arith.addf %697, %33 : vector<2x32xf32>
    %699 = arith.mulf %693, %698 : vector<2x32xf32>
    %700 = arith.addf %696, %699 : vector<2x32xf32>
    %701 = math.tanh %700 : vector<2x32xf32>
    %cst_151 = arith.constant 1.000000e+00 : f32
    %702 = vector.broadcast %cst_151 : f32 to vector<2x32xf32>
    %703 = arith.subf %702, %694 : vector<2x32xf32>
    %704 = arith.mulf %703, %701 : vector<2x32xf32>
    %705 = arith.mulf %694, %639 : vector<2x32xf32>
    %706 = arith.addf %704, %705 : vector<2x32xf32>
    %cst_152 = arith.constant dense<0.000000e+00> : vector<2x32xf32>
    %707 = tpu.matmul %706, %267, %cst_152 {dimension_numbers = #tpu.dot_dimension_numbers<[1], [0], [0], [1], [0, 0, 1, 1], [], []>} : vector<2x32xf32>, vector<32x32xf32>, vector<2x32xf32> -> vector<2x32xf32>
    %708 = vector.shape_cast %707 : vector<2x32xf32> to vector<2x1x32xf32>
    %709 = vector.broadcast %708 : vector<2x1x32xf32> to vector<2x8x32xf32>
    %710 = arith.addf %271, %709 : vector<2x8x32xf32>
    %711 = math.tanh %710 : vector<2x8x32xf32>
    %712 = vector.shape_cast %268 : vector<1x32xf32> to vector<1x1x32xf32>
    %713 = vector.broadcast %712 : vector<1x1x32xf32> to vector<2x8x32xf32>
    %714 = arith.mulf %711, %713 : vector<2x8x32xf32>
    %cst_153 = arith.constant dense<0.000000e+00> : vector<2x8xf32>
    %715 = vector.multi_reduction <add>, %714, %cst_153 [2] : vector<2x8x32xf32> to vector<2x8xf32>
    %cst_154 = arith.constant 0.000000e+00 : f32
    %716 = vector.broadcast %cst_154 : f32 to vector<2x8xf32>
    %717 = arith.cmpf ogt, %672, %716 : vector<2x8xf32>
    %cst_155 = arith.constant -1.000000e+09 : f32
    %718 = vector.broadcast %cst_155 : f32 to vector<2x8xf32>
    %719 = arith.select %717, %715, %718 : vector<2x8xi1>, vector<2x8xf32>
    %cst_156 = arith.constant dense<0xFF800000> : vector<2xf32>
    %720 = vector.multi_reduction <maximumf>, %719, %cst_156 [1] : vector<2x8xf32> to vector<2xf32>
    %721 = vector.shape_cast %720 : vector<2xf32> to vector<2x1xf32>
    %722 = vector.broadcast %721 : vector<2x1xf32> to vector<2x8xf32>
    %723 = arith.cmpf oge, %719, %722 : vector<2x8xf32>
    %c8_i32_157 = arith.constant 8 : i32
    %724 = vector.broadcast %c8_i32_157 : i32 to vector<2x8xi32>
    %725 = arith.select %723, %272, %724 : vector<2x8xi1>, vector<2x8xi32>
    %cst_158 = arith.constant dense<2147483647> : vector<2xi32>
    %726 = vector.multi_reduction <minsi>, %725, %cst_158 [1] : vector<2x8xi32> to vector<2xi32>
    %727 = vector.shape_cast %726 : vector<2xi32> to vector<2x1xi32>
    %c7_i32 = arith.constant 7 : i32
    %728 = vector.broadcast %c7_i32 : i32 to vector<2x8xi32>
    %729 = arith.cmpi eq, %272, %728 : vector<2x8xi32>
    %730 = vector.shape_cast %727 : vector<2x1xi32> to vector<2x1xi32>
    %731 = vector.broadcast %730 : vector<2x1xi32> to vector<2x8xi32>
    %732 = arith.select %729, %731, %669 : vector<2x8xi1>, vector<2x8xi32>
    %c0_159 = arith.constant 0 : index
    %c0_160 = arith.constant 0 : index
    %733 = vector.load %arg14[%c0_159, %c0_160] : memref<2x8xi32, #tpu.memory_space<vmem>>, vector<2x8xi32>
    tpu.vector_store %arg14[%c0_159, %c0_160], %732 {strides = array<i32>} : memref<2x8xi32, #tpu.memory_space<vmem>>, vector<2x8xi32>,
    return
  }
}

</mosaic_0001>

<bundles_post_ra>
// kernel: tpu_custom_call.1
= control target key start
LH: loop header
LB: loop body
LE: loop exit
PB: predicated region body
PF: predicated region fallthrough
CT: control target
= control target key end

     0   :  { %s8035_s0 = inlined_call_operand.vmem [shape: f32[2,8,2], index: 0, kind: input, shape index: {}]   ;;  %s8036_s1 = inlined_call_operand.hbm [shape: f32[2,32], index: 1, kind: input, shape index: {}]   ;;  %s8037_s2 = inlined_call_operand.vmem [shape: f32[1,32], index: 2, kind: input, shape index: {}]   ;;  %s8038_s3 = inlined_call_operand.hbm [shape: f32[32,96], index: 3, kind: input, shape index: {}]   ;;  %s8039_s4 = inlined_call_operand.vmem [shape: f32[32,96], index: 4, kind: input, shape index: {}]   ;;  %s8040_s5 = inlined_call_operand.hbm [shape: f32[1,96], index: 5, kind: input, shape index: {}]   ;;  %s8041_s6 = inlined_call_operand.hbm [shape: f32[1,96], index: 6, kind: input, shape index: {}]   ;;  %s8042_s7 = inlined_call_operand.hbm [shape: f32[32,96], index: 7, kind: input, shape index: {}]   ;;  %s8043_s8 = inlined_call_operand.hbm [shape: f32[32,96], index: 8, kind: input, shape index: {}]   ;;  %s8044_s9 = inlined_call_operand.hbm [shape: f32[1,96], index: 9, kind: input, shape index: {}]   ;;  %s8045_s10 = inlined_call_operand.hbm [shape: f32[1,96], index: 10, kind: input, shape index: {}]   ;;  %s8046_s11 = inlined_call_operand.hbm [shape: f32[32,32], index: 11, kind: input, shape index: {}]   ;;  %s8047_s12 = inlined_call_operand.vmem [shape: f32[32,32], index: 12, kind: input, shape index: {}]   ;;  %s8048_s13 = inlined_call_operand.vmem [shape: f32[1,32], index: 13, kind: input, shape index: {}]   ;;  %s8049_s14 = inlined_call_operand.hbm [shape: s32[2,8], index: 14, kind: output, shape index: {0}]   ;;  %s8050_s15 = inlined_call_operand.hbm [shape: f32[2,256], index: 15, kind: output, shape index: {1}]  }
   0x1   :  { %8052 = sst [smem:[#allocation27_spill]] %s8050_s15 }
   0x2   :  { %21 = vsyncpa [#allocation3], 0 }
   0x3   :  { %22 = vsyncpa [#allocation6], 0 }
   0x4   :  { %23 = vsyncpa [#allocation9], 0 }
   0x5   :  { %24 = vsyncpa [#allocation12], 0 }
   0x6   :  { %25 = vsyncpa [#allocation15], 0 }
   0x7   :  { %26 = vsyncpa [#allocation4], 0 }
   0x8   :  { %27 = vsyncpa [#allocation19], 0  ;;  %s6826_s18 = smov [#allocation5]   ;;  %s6570_s22 = scalar_lea.hbm %s8038_s3, 512 }
   0x9   :  { %s47_s19 = sshll.u32 %s6826_s18, 4  ;;  %p6571_p0 = scmp.ne.s32.totalorder %s8038_s3, %s6570_s22  ;;  %s48_s19 = int_to_ptr.vmem [resolvable:$true] %s47_s19 }
   0xa   :  { %p6574_p1 = scmp.lt.u32.totalorder %s6570_s22, %s8038_s3 }
   0xc   :  { %p6576_p2 = pnand %p6574_p1, %p6571_p0 }
   0xe   :  { %6579 = shalt.err (!%p6576_p2)
}
   0xf   :  { %s6580_s27 = scalar_lea.vmem %s48_s19, 512  ;;  %p6585_p4 = scmp.lt.s32.totalorder %s48_s19, %s48_s19 }
  0x10   :  { %p6581_p3 = scmp.ne.s32.totalorder %s48_s19, %s6580_s27  ;;  %p6586_p5 = scmp.lt.s32.totalorder %s6580_s27, %s6580_s27 }
  0x12   :  { %p6587_p6 = por %p6586_p5, %p6585_p4 }
  0x14   :  { %p6588_p7 = pnand %p6587_p6, %p6581_p3 }
  0x16   :  { %6591 = shalt.err (!%p6588_p7)
}
  0x17   :  { %s6827_s28 = smov 128   ;;  %s6828_s29 = smov 8  }
  0x18   :  { %53 = dma.hbm_to_vmem [thread:$0]  %s8038_s3, 512, %s48_s19, [#allocation6], %s6827_s28, %s6827_s28, %s6828_s29  }
  0x19   :  { %s6829_s17 = smov [#allocation8]   ;;  %s6830_s20 = smov [#allocation11]  }
  0x1a   :  { %s72_s18 = sshll.u32 %s6829_s17, 4  ;;  %s93_s21 = sshll.u32 %s6830_s20, 4  ;;  %s73_s18 = int_to_ptr.vmem [resolvable:$true] %s72_s18  ;;  %s94_s21 = int_to_ptr.vmem [resolvable:$true] %s93_s21 }
  0x1b   :  { %s6592_s24 = scalar_lea.hbm %s8041_s6, 16 }
  0x1c   :  { %p6593_p8 = scmp.ne.s32.totalorder %s8041_s6, %s6592_s24  ;;  %p6596_p9 = scmp.lt.u32.totalorder %s6592_s24, %s8041_s6 }
  0x1e   :  { %p6598_p10 = pnand %p6596_p9, %p6593_p8 }
  0x20   :  { %6601 = shalt.err (!%p6598_p10)
}
  0x21   :  { %s6602_s3 = scalar_lea.vmem %s73_s18, 16  ;;  %s6606_s19 = scalar_lea.vmem %s73_s18, 32 }
  0x22   :  { %p6603_p11 = scmp.ne.s32.totalorder %s73_s18, %s6602_s3  ;;  %p6607_p12 = scmp.lt.s32.totalorder %s73_s18, %s73_s18 }
  0x23   :  { %p6608_p13 = scmp.lt.s32.totalorder %s6606_s19, %s6602_s3 }
  0x25   :  { %p6609_p0 = por %p6608_p13, %p6607_p12 }
  0x27   :  { %p6610_p1 = pnand %p6609_p0, %p6603_p11 }
  0x29   :  { %6613 = shalt.err (!%p6610_p1)
}
  0x2a   :  { %75 = dma.hbm_to_vmem [thread:$0]  %s8041_s6, 16, %s73_s18, [#allocation9]  }
  0x2b   :  { %s6614_s15 = scalar_lea.hbm %s8043_s8, 512 }
  0x2c   :  { %p6615_p2 = scmp.ne.s32.totalorder %s8043_s8, %s6614_s15  ;;  %p6618_p3 = scmp.lt.u32.totalorder %s6614_s15, %s8043_s8 }
  0x2e   :  { %p6620_p4 = pnand %p6618_p3, %p6615_p2 }
  0x30   :  { %6623 = shalt.err (!%p6620_p4)
}
  0x31   :  { %s6624_s26 = scalar_lea.vmem %s94_s21, 512  ;;  %p6629_p6 = scmp.lt.s32.totalorder %s94_s21, %s94_s21 }
  0x32   :  { %p6625_p5 = scmp.ne.s32.totalorder %s94_s21, %s6624_s26  ;;  %p6630_p7 = scmp.lt.s32.totalorder %s6624_s26, %s6624_s26 }
  0x34   :  { %p6631_p8 = por %p6630_p7, %p6629_p6 }
  0x36   :  { %p6632_p9 = pnand %p6631_p8, %p6625_p5 }
  0x38   :  { %6635 = shalt.err (!%p6632_p9)
}
  0x39   :  { %99 = dma.hbm_to_vmem [thread:$0]  %s8043_s8, 512, %s94_s21, [#allocation12], %s6827_s28, %s6827_s28, %s6828_s29  }
  0x3a   :  { %s6831_s27 = smov [#allocation14]   ;;  %s6832_s19 = smov [#allocation2]  }
  0x3b   :  { %s116_s3 = sshll.u32 %s6831_s27, 4  ;;  %s36_s30 = sshll.u32 %s6832_s19, 4  ;;  %s117_s3 = int_to_ptr.vmem [resolvable:$true] %s116_s3  ;;  %s37_s30 = int_to_ptr.vmem [resolvable:$true] %s36_s30 }
  0x3c   :  { %s6636_s20 = scalar_lea.hbm %s8045_s10, 16 }
  0x3d   :  { %p6637_p10 = scmp.ne.s32.totalorder %s8045_s10, %s6636_s20  ;;  %p6640_p11 = scmp.lt.u32.totalorder %s6636_s20, %s8045_s10 }
  0x3f   :  { %p6642_p12 = pnand %p6640_p11, %p6637_p10 }
  0x41   :  { %6645 = shalt.err (!%p6642_p12)
}
  0x42   :  { %s6646_s8 = scalar_lea.vmem %s117_s3, 16  ;;  %s6650_s21 = scalar_lea.vmem %s117_s3, 32 }
  0x43   :  { %p6647_p13 = scmp.ne.s32.totalorder %s117_s3, %s6646_s8  ;;  %p6651_p0 = scmp.lt.s32.totalorder %s117_s3, %s117_s3 }
  0x44   :  { %p6652_p1 = scmp.lt.s32.totalorder %s6650_s21, %s6646_s8 }
  0x46   :  { %p6653_p2 = por %p6652_p1, %p6651_p0 }
  0x48   :  { %p6654_p3 = pnand %p6653_p2, %p6647_p13 }
  0x4a   :  { %6657 = shalt.err (!%p6654_p3)
}
  0x4b   :  { %119 = dma.hbm_to_vmem [thread:$0]  %s8045_s10, 16, %s117_s3, [#allocation15]  }
  0x4c   :  { %s6658_s27 = scalar_lea.hbm %s8036_s1, 32 }
  0x4d   :  { %p6659_p4 = scmp.ne.s32.totalorder %s8036_s1, %s6658_s27  ;;  %p6662_p5 = scmp.lt.u32.totalorder %s6658_s27, %s8036_s1 }
  0x4f   :  { %p6664_p6 = pnand %p6662_p5, %p6659_p4 }
  0x51   :  { %6667 = shalt.err (!%p6664_p6)
}
  0x52   :  { %s6668_s15 = scalar_lea.vmem %s37_s30, 32  ;;  %p6673_p8 = scmp.lt.s32.totalorder %s37_s30, %s37_s30 }
  0x53   :  { %p6669_p7 = scmp.ne.s32.totalorder %s37_s30, %s6668_s15  ;;  %p6674_p9 = scmp.lt.s32.totalorder %s6668_s15, %s6668_s15 }
  0x55   :  { %p6675_p10 = por %p6674_p9, %p6673_p8 }
  0x57   :  { %p6676_p11 = pnand %p6675_p10, %p6669_p7 }
  0x59   :  { %6679 = shalt.err (!%p6676_p11)
}
  0x5a   :  { %39 = dma.hbm_to_vmem [thread:$0]  %s8036_s1, 32, %s37_s30, [#allocation3]  }
  0x5b   :  { %s6833_s22 = smov [#allocation7]   ;;  %s6834_s24 = smov [#allocation10]  }
  0x5c   :  { %s62_s23 = sshll.u32 %s6833_s22, 4  ;;  %s81_s8 = sshll.u32 %s6834_s24, 4  ;;  %s63_s23 = int_to_ptr.vmem [resolvable:$true] %s62_s23  ;;  %s82_s8 = int_to_ptr.vmem [resolvable:$true] %s81_s8 }
  0x5d   :  { %s6680_s26 = scalar_lea.hbm %s8040_s5, 16 }
  0x5e   :  { %p6681_p12 = scmp.ne.s32.totalorder %s8040_s5, %s6680_s26  ;;  %p6684_p13 = scmp.lt.u32.totalorder %s6680_s26, %s8040_s5 }
  0x60   :  { %p6686_p0 = pnand %p6684_p13, %p6681_p12 }
  0x62   :  { %6689 = shalt.err (!%p6686_p0)
}
  0x63   :  { %s6690_s1 = scalar_lea.vmem %s63_s23, 16  ;;  %s6694_s30 = scalar_lea.vmem %s63_s23, 32 }
  0x64   :  { %p6691_p1 = scmp.ne.s32.totalorder %s63_s23, %s6690_s1  ;;  %p6695_p2 = scmp.lt.s32.totalorder %s63_s23, %s63_s23 }
  0x65   :  { %p6696_p3 = scmp.lt.s32.totalorder %s6694_s30, %s6690_s1 }
  0x67   :  { %p6697_p4 = por %p6696_p3, %p6695_p2 }
  0x69   :  { %p6698_p5 = pnand %p6697_p4, %p6691_p1 }
  0x6b   :  { %6701 = shalt.err (!%p6698_p5)
}
  0x6c   :  { %65 = dma.hbm_to_vmem [thread:$0]  %s8040_s5, 16, %s63_s23, [#allocation6]  }
  0x6d   :  { %s6702_s10 = scalar_lea.hbm %s8042_s7, 512 }
  0x6e   :  { %p6703_p6 = scmp.ne.s32.totalorder %s8042_s7, %s6702_s10  ;;  %p6706_p7 = scmp.lt.u32.totalorder %s6702_s10, %s8042_s7 }
  0x70   :  { %p6708_p8 = pnand %p6706_p7, %p6703_p6 }
  0x72   :  { %6711 = shalt.err (!%p6708_p8)
}
  0x73   :  { %s6712_s25 = scalar_lea.vmem %s82_s8, 512  ;;  %p6717_p10 = scmp.lt.s32.totalorder %s82_s8, %s82_s8 }
  0x74   :  { %p6713_p9 = scmp.ne.s32.totalorder %s82_s8, %s6712_s25  ;;  %p6718_p11 = scmp.lt.s32.totalorder %s6712_s25, %s6712_s25 }
  0x76   :  { %p6719_p12 = por %p6718_p11, %p6717_p10 }
  0x78   :  { %p6720_p13 = pnand %p6719_p12, %p6713_p9 }
  0x7a   :  { %6723 = shalt.err (!%p6720_p13)
}
  0x7b   :  { %87 = dma.hbm_to_vmem [thread:$0]  %s8042_s7, 512, %s82_s8, [#allocation9], %s6827_s28, %s6827_s28, %s6828_s29  }
  0x7c   :  { %s6835_s26 = smov [#allocation13]   ;;  %s6836_s18 = smov [#allocation16]  }
  0x7d   :  { %s106_s6 = sshll.u32 %s6835_s26, 4  ;;  %s125_s27 = sshll.u32 %s6836_s18, 4  ;;  %s107_s6 = int_to_ptr.vmem [resolvable:$true] %s106_s6  ;;  %s126_s27 = int_to_ptr.vmem [resolvable:$true] %s125_s27 }
  0x7e   :  { %s6724_s30 = scalar_lea.hbm %s8044_s9, 16 }
  0x7f   :  { %p6725_p0 = scmp.ne.s32.totalorder %s8044_s9, %s6724_s30  ;;  %p6728_p1 = scmp.lt.u32.totalorder %s6724_s30, %s8044_s9 }
  0x81   :  { %p6730_p2 = pnand %p6728_p1, %p6725_p0 }
  0x83   :  { %6733 = shalt.err (!%p6730_p2)
}
  0x84   :  { %s6734_s7 = scalar_lea.vmem %s107_s6, 16  ;;  %s6738_s8 = scalar_lea.vmem %s107_s6, 32 }
  0x85   :  { %p6735_p3 = scmp.ne.s32.totalorder %s107_s6, %s6734_s7  ;;  %p6739_p4 = scmp.lt.s32.totalorder %s107_s6, %s107_s6 }
  0x86   :  { %p6740_p5 = scmp.lt.s32.totalorder %s6738_s8, %s6734_s7 }
  0x88   :  { %p6741_p6 = por %p6740_p5, %p6739_p4 }
  0x8a   :  { %p6742_p7 = pnand %p6741_p6, %p6735_p3 }
  0x8c   :  { %6745 = shalt.err (!%p6742_p7)
}
  0x8d   :  { %109 = dma.hbm_to_vmem [thread:$0]  %s8044_s9, 16, %s107_s6, [#allocation12]  }
  0x8e   :  { %s6746_s21 = scalar_lea.hbm %s8046_s11, 512 }
  0x8f   :  { %p6747_p8 = scmp.ne.s32.totalorder %s8046_s11, %s6746_s21  ;;  %p6750_p9 = scmp.lt.u32.totalorder %s6746_s21, %s8046_s11 }
  0x91   :  { %p6752_p10 = pnand %p6750_p9, %p6747_p8 }
  0x93   :  { %6755 = shalt.err (!%p6752_p10)
}
  0x94   :  { %s6756_s18 = scalar_lea.vmem %s126_s27, 512  ;;  %p6761_p12 = scmp.lt.s32.totalorder %s126_s27, %s126_s27 }
  0x95   :  { %p6757_p11 = scmp.ne.s32.totalorder %s126_s27, %s6756_s18  ;;  %p6762_p13 = scmp.lt.s32.totalorder %s6756_s18, %s6756_s18 }
  0x97   :  { %p6763_p0 = por %p6762_p13, %p6761_p12 }
  0x99   :  { %p6764_p1 = pnand %p6763_p0, %p6757_p11 }
  0x9b   :  { %6767 = shalt.err (!%p6764_p1)
}
  0x9c   :  { %131 = dma.hbm_to_vmem [thread:$0]  %s8046_s11, 512, %s126_s27, [#allocation15], %s6827_s28, %s6827_s28, %s6828_s29  }
  0x9d   :  { %6812 = dma.done.wait [#allocation3], 32  }
  0x9e   :  { %6813 = vsyncadd [#allocation3], 4294967264 }
  0x9f   :  { %6814 = dma.done.wait [#allocation6], 528  }
  0xa0   :  { %6815 = vsyncadd [#allocation6], 4294966768 }
  0xa1   :  { %6816 = dma.done.wait [#allocation9], 528  }
  0xa2   :  { %6817 = vsyncadd [#allocation9], 4294966768 }
  0xa3   :  { %6818 = dma.done.wait [#allocation12], 528  }
  0xa4   :  { %6819 = vsyncadd [#allocation12], 4294966768 }
  0xa5   :  { %6820 = dma.done.wait [#allocation15], 528  }
  0xa6   :  { %6821 = vsyncadd [#allocation15], 4294966768  ;;  %v6837_v0 = vmov 0.0|0.0   ;;  %vm6838_vm0 = vmmov 0   ;;  %v6839_v1 = vmov 0.0   ;;  %vm180_vm1 = vcmask 1041408  }
  0xa7   :  { %6201 = vmatprep.subr.bf16.mxu1 %v6837_v0  ;;  %5731 = vmatprep.mubr.msk.f32.mxu1 %vm6838_vm0, %v6839_v1  ;;  %vm173_vm2 = vcmask 15360   ;;  %v165_v2 = vld [vmem:[#allocation2] sm:$0x3]  ;;  %v164_v4 = vld [vmem:[%s8035_s0 + $0x8] sm:$0xff]  ;;  %v307_v7 = vld [vmem:[%s8039_s4 + $0x10] sm:$0xff]  ;;  %v265_v17 = vlaneseq  ;;  %vm320_vm3 = vcmask 1041409  }
  0xa8   :  { %v163_v3 = vld [vmem:[%s8035_s0] sm:$0xff]  ;;  %5718 = vmatprep.subr.msk.mxu0 %vm180_vm1, %v165_v2  ;;  %v306_v6 = vld [vmem:[%s8039_s4 + $0x8] sm:$0xff]  ;;  %v308_v9 = vld [vmem:[%s8039_s4 + $0x18] sm:$0xff]  ;;  %vm322_vm4 = vcmask 261120   ;;  %s6841_s8 = smov 96   ;;  %vm1998_vm5 = vcmask 1040384  }
  0xa9   :  { %5720 = vmatprep.mubr.msk.f32.mxu0 %vm173_vm2, %v163_v3  ;;  %v305_v5 = vld [vmem:[%s8039_s4] sm:$0xff]  ;;  %5719 = vmatpush3.msk.msra.mxu0 %vm180_vm1, %v165_v2  ;;  %v302_v11 = vld [vmem:[#allocation5 + $0x8] sm:$0xff]  ;;  %v7075_v13 = vpack.c.bf16 %v308_v9, %v307_v7  ;;  %v303_v14 = vld [vmem:[#allocation5 + $0x10] sm:$0xff]  ;;  %v7096_v18 = vshrl.u32 %v265_v17, 7  ;;  %vm2003_vm6 = vcmask 1042432   ;;  %vm2006_vm7 = vcmask 1043456  }
  0xaa   :  { %v7066_v8 = vpack.c.bf16 %v306_v6, %v305_v5  ;;  %v301_v10 = vld [vmem:[#allocation5] sm:$0xff]  ;;  %5721 = vmatmul.mubr.msk.f32.vlgmr.msra.gmra.mrb[0].mxu0 %vm173_vm2, %v164_v4  ;;  %6207 = vmatprep.subr.bf16.mxu0 %v6837_v0  ;;  %v304_v15 = vld [vmem:[#allocation5 + $0x18] sm:$0xff]  ;;  %vm2009_vm8 = vcmask 1044480   ;;  %vm2012_vm9 = vcmask 1045504   ;;  %vm2015_vm10 = vcmask 1046528   ;;  %s6844_s6 = smov [#allocation17]  }
  0xab   :  { %v7072_v12 = vpack.c.bf16 %v302_v11, %v301_v10  ;;  %5742 = vmatprep.mubr.msk.f32.mxu0 %vm6838_vm0, %v6839_v1  ;;  %v7091_v16 = vpack.c.bf16 %v304_v15, %v303_v14  ;;  %v5422_v19 = vld [vmem:[%s8037_s2] ss:$0 sm:$0xff]  ;;  %v7102_v20 = vsub.s32 0, %v7096_v18  ;;  %v7104_v21 = vld [vmem:[#allocation8] sm:$0x1]  ;;  %s6840_s2 = smov 64  }
  0xac   :  { %6209 = vmatpush3.bf16.msra.mxu0 %v7066_v8  ;;  %v259_v52 = vld [vmem:[#allocation7] sm:$0x1]  ;;  %vm2464_vm13 = vcmask 58368   ;;  %s5395_s11 = sshll.u32 %s6844_s6, 4  ;;  %s6845_s28 = smov [#allocation18]   ;;  %s5396_s11 = int_to_ptr.vmem [resolvable:$true] %s5395_s11 }
  0xad   :  { %6210 = vmatprep.subr.bf16.mxu0 %v6837_v0  ;;  %6203 = vmatpush3.bf16.msra.mxu1 %v7072_v12  ;;  %v7108_v26 = vrot.slane %v7104_v21, %v7102_v20  ;;  %v263_v53 = vadd.f32 %v7104_v21, %v259_v52  ;;  %v274_v54 = vrot.slane %v259_v52, %v7102_v20  ;;  %s5405_s29 = sshll.u32 %s6845_s28, 4  ;;  %s6768_s27 = scalar_lea.vmem %s5396_s11, 32  ;;  %s5406_s29 = int_to_ptr.vmem [resolvable:$true] %s5405_s29 }
  0xae   :  { %6204 = vmatprep.subr.bf16.mxu1 %v6837_v0  ;;  %p6769_p2 = scmp.ne.s32.totalorder %s5396_s11, %s6768_s27  ;;  %p6773_p3 = scmp.lt.s32.totalorder %s5396_s11, %s5396_s11 }
  0xaf   :  { %v7175_v55 = vrot.slane %v263_v53, %v7102_v20  ;;  %p6774_p4 = scmp.lt.s32.totalorder %s6768_s27, %s6768_s27 }
  0xb0   :  { %6212 = vmatpush3.bf16.msra.mxu0 %v7075_v13 }
  0xb1   :  { %6219 = vmatprep.subr.bf16.mxu0 %v6837_v0  ;;  %6206 = vmatpush3.bf16.msra.mxu1 %v7091_v16  ;;  %p6775_p5 = por %p6774_p4, %p6773_p3 }
  0xb2   :  { %6213 = vmatprep.subr.bf16.mxu1 %v6837_v0 }
  0xb3   :  { %5743 = vmatmul.mubr.f32.vlgmr.msra.gmra.mrb[2].mxu0 %v6839_v1  ;;  %p6776_p6 = pnand %p6775_p5, %p6769_p2 }
  0xb4   :  { %6221 = vmatpush3.bf16.msra.mxu0 %v7066_v8  ;;  %5764 = vmatprep.mubr.msk.f32.mxu0 %vm6838_vm0, %v6839_v1 }
  0xb5   :  { %6222 = vmatprep.subr.bf16.mxu0 %v6837_v0 }
  0xb8   :  { %6224 = vmatpush3.bf16.msra.mxu0 %v7075_v13 }
  0xb9   :  { %6231 = vmatprep.subr.bf16.mxu0 %v6837_v0 }
 0x17d   :  { %v5722_v22 = vpop.f32.mrb[0].mxu0 }
 0x17e   :  { %v256_v23 = vadd.f32 %v5722_v22, %v5422_v19  ;;  %v250_v24 = vpop.f32.mrb[1].mxu0 }
 0x17f   :  { %v251_v25 = vadd.f32 %v5422_v19, %v250_v24 }
 0x180   :  { %v319_v27 = vrot.slane %v256_v23, 7  ;;  %v676_v28 = vrot.slane %v256_v23, 1  ;;  %v855_v29 = vrot.slane %v256_v23, 2  ;;  %v1034_v30 = vrot.slane %v256_v23, 3 }
 0x181   :  { %v497_v31 = vrot.slane %v251_v25, 1  ;;  %v675_v32 = vrot.slane %v251_v25, 2  ;;  %v854_v33 = vrot.slane %v251_v25, 3  ;;  %v1033_v34 = vrot.slane %v251_v25, 4 }
 0x182   :  { %v7111_v35 = vsel %vm320_vm3, %v319_v27, %v251_v25  ;;  %v1212_v36 = vrot.slane %v251_v25, 5  ;;  %v1213_v37 = vrot.slane %v256_v23, 4  ;;  %v1391_v38 = vrot.slane %v251_v25, 6 }
 0x183   :  { %5732 = vmatmul.mubr.msk.f32.vlgmr.msra.gmra.mrb[0].mxu1 %vm322_vm4, %v7111_v35  ;;  %v498_v39 = vsel %vm320_vm3, %v256_v23, %v497_v31  ;;  %v677_v40 = vsel %vm320_vm3, %v676_v28, %v675_v32  ;;  %v856_v41 = vsel %vm320_vm3, %v855_v29, %v854_v33  ;;  %v1035_v42 = vsel %vm320_vm3, %v1034_v30, %v1033_v34 }
 0x184   :  { %6215 = vmatpush3.bf16.msra.mxu1 %v7072_v12  ;;  %5753 = vmatprep.mubr.msk.f32.mxu1 %vm6838_vm0, %v6839_v1  ;;  %v1214_v43 = vsel %vm320_vm3, %v1213_v37, %v1212_v36  ;;  %v1392_v44 = vrot.slane %v256_v23, 5  ;;  %v1570_v45 = vrot.slane %v251_v25, 7  ;;  %v1571_v46 = vrot.slane %v256_v23, 6 }
 0x185   :  { %6216 = vmatprep.subr.bf16.mxu1 %v6837_v0 }
 0x186   :  { %v464_v47 = vpop.f32.mrb[2].mxu0  ;;  %v1393_v48 = vsel %vm320_vm3, %v1392_v44, %v1391_v38  ;;  %v1572_v49 = vsel %vm320_vm3, %v1571_v46, %v1570_v45 }
 0x187   :  { %v5744_v50 = vpop.f32.mrb[3].mxu0  ;;  %v477_v51 = vadd.f32 %v464_v47, %v7108_v26 }
 0x188   :  { %6218 = vmatpush3.bf16.msra.mxu1 %v7091_v16 }
 0x189   :  { %479 = vrot.lane.b32.xlu0 %v477_v51, %s6840_s2  ;;  %6225 = vmatprep.subr.bf16.mxu1 %v6837_v0 }
 0x18b   :  { %5754 = vmatmul.mubr.msk.f32.vlgmr.msra.gmra.mrb[2].mxu1 %vm322_vm4, %v498_v39 }
 0x18c   :  { %6227 = vmatpush3.bf16.msra.mxu1 %v7072_v12  ;;  %5775 = vmatprep.mubr.msk.f32.mxu1 %vm6838_vm0, %v6839_v1 }
 0x18d   :  { %6228 = vmatprep.subr.bf16.mxu1 %v6837_v0 }
 0x190   :  { %6230 = vmatpush3.bf16.msra.mxu1 %v7091_v16 }
 0x191   :  { %6237 = vmatprep.subr.bf16.mxu1 %v6837_v0 }
 0x193   :  { %5776 = vmatmul.mubr.msk.f32.vlgmr.msra.gmra.mrb[4].mxu1 %vm322_vm4, %v677_v40 }
 0x194   :  { %6239 = vmatpush3.bf16.msra.mxu1 %v7072_v12  ;;  %5797 = vmatprep.mubr.msk.f32.mxu1 %vm6838_vm0, %v6839_v1 }
 0x195   :  { %6240 = vmatprep.subr.bf16.mxu1 %v6837_v0 }
 0x198   :  { %6242 = vmatpush3.bf16.msra.mxu1 %v7091_v16 }
 0x199   :  { %6249 = vmatprep.subr.bf16.mxu1 %v6837_v0 }
 0x19b   :  { %5798 = vmatmul.mubr.msk.f32.vlgmr.msra.gmra.mrb[6].mxu1 %vm322_vm4, %v856_v41 }
 0x19c   :  { %6251 = vmatpush3.bf16.msra.mxu1 %v7072_v12  ;;  %5819 = vmatprep.mubr.msk.f32.mxu1 %vm6838_vm0, %v6839_v1 }
 0x19d   :  { %6252 = vmatprep.subr.bf16.mxu1 %v6837_v0 }
 0x1a0   :  { %6254 = vmatpush3.bf16.msra.mxu1 %v7091_v16 }
 0x1a1   :  { %6261 = vmatprep.subr.bf16.mxu1 %v6837_v0 }
 0x1a3   :  { %5820 = vmatmul.mubr.msk.f32.vlgmr.msra.gmra.mrb[8].mxu1 %vm322_vm4, %v1035_v42 }
 0x1a4   :  { %6263 = vmatpush3.bf16.msra.mxu1 %v7072_v12  ;;  %5841 = vmatprep.mubr.msk.f32.mxu1 %vm6838_vm0, %v6839_v1 }
 0x1a5   :  { %6264 = vmatprep.subr.bf16.mxu1 %v6837_v0 }
 0x1a8   :  { %6266 = vmatpush3.bf16.msra.mxu1 %v7091_v16 }
 0x1a9   :  { %6273 = vmatprep.subr.bf16.mxu1 %v6837_v0 }
 0x1ab   :  { %5842 = vmatmul.mubr.msk.f32.vlgmr.msra.gmra.mrb[10].mxu1 %vm322_vm4, %v1214_v43 }
 0x1ac   :  { %6275 = vmatpush3.bf16.msra.mxu1 %v7072_v12  ;;  %5863 = vmatprep.mubr.msk.f32.mxu1 %vm6838_vm0, %v6839_v1 }
 0x1ad   :  { %6276 = vmatprep.subr.bf16.mxu1 %v6837_v0 }
 0x1b0   :  { %6278 = vmatpush3.bf16.msra.mxu1 %v7091_v16 }
 0x1b1   :  { %6285 = vmatprep.subr.bf16.mxu1 %v6837_v0 }
 0x1b3   :  { %5864 = vmatmul.mubr.msk.f32.vlgmr.msra.gmra.mrb[12].mxu1 %vm322_vm4, %v1393_v48 }
 0x1b4   :  { %6287 = vmatpush3.bf16.msra.mxu1 %v7072_v12  ;;  %5885 = vmatprep.mubr.msk.f32.mxu1 %vm6838_vm0, %v6839_v1 }
 0x1b5   :  { %6288 = vmatprep.subr.bf16.mxu1 %v6837_v0 }
 0x1b8   :  { %6290 = vmatpush3.bf16.msra.mxu1 %v7091_v16 }
 0x1bb   :  { %5886 = vmatmul.mubr.msk.f32.vlgmr.msra.gmra.mrb[14].mxu1 %vm322_vm4, %v1572_v49 }
 0x1fb   :  { %v480_v12 = vpop.permute.xlu0 %479 }
 0x256   :  { %v391_v56 = vpop.f32.mrb[0].mxu1 }
 0x257   :  { %v468_v57 = vadd.f32 %v464_v47, %v391_v56  ;;  %v476_v58 = vadd.f32 %v391_v56, %v274_v54  ;;  %v5733_v59 = vpop.f32.mrb[1].mxu1 }
 0x259   :  { %v469_v60 = vadd.f32 %v468_v57, %v7175_v55 }
 0x25b   :  { %v5427_v61 = vmul.f32 -1.442695, %v469_v60 }
 0x25d   :  { %6451 = vpow2.f32 %v5427_v61 }
 0x25e   :  { %v567_v62 = vpop.f32.mrb[2].mxu1 }
 0x25f   :  { %v654_v63 = vadd.f32 %v567_v62, %v274_v54  ;;  %v5755_v2 = vpop.f32.mrb[3].mxu1 }
 0x266   :  { %v7178_v3 = vpop.f32.mrb[4].mxu1 }
 0x267   :  { %v6452_v4 = vpop.eup %6451  ;;  %v7181_v5 = vadd.f32 %v7178_v3, %v274_v54  ;;  %v5777_v6 = vpop.f32.mrb[5].mxu1 }
 0x268   :  { %v473_v7 = vadd.f32 1.0, %v6452_v4 }
 0x26a   :  { %6453 = vrcp.f32 %v473_v7 }
 0x26e   :  { %v7183_v9 = vpop.f32.mrb[6].mxu1 }
 0x26f   :  { %v7186_v10 = vadd.f32 %v7183_v9, %v274_v54  ;;  %v5799_v11 = vpop.f32.mrb[7].mxu1 }
 0x274   :  { %v6454_v14 = vpop.eup %6453 }
 0x275   :  { %v482_v15 = vmul.f32 %v6454_v14, %v480_v12  ;;  %v489_v36 = vsub.f32 1.0, %v6454_v14  ;;  %v495_v38 = vmul.f32 0.0, %v6454_v14 }
 0x276   :  { %v7188_v16 = vpop.f32.mrb[8].mxu1 }
 0x277   :  { %v7191_v19 = vadd.f32 %v7188_v16, %v274_v54  ;;  %v5821_v21 = vpop.f32.mrb[9].mxu1  ;;  %484 = vrot.lane.b32.xlu0 %v482_v15, %s6840_s2 }
 0x27e   :  { %v7194_v22 = vpop.f32.mrb[10].mxu1 }
 0x27f   :  { %v7197_v23 = vadd.f32 %v7194_v22, %v274_v54  ;;  %v5843_v24 = vpop.f32.mrb[11].mxu1 }
 0x286   :  { %v7199_v25 = vpop.f32.mrb[12].mxu1 }
 0x287   :  { %v7202_v27 = vadd.f32 %v7199_v25, %v274_v54  ;;  %v5865_v28 = vpop.f32.mrb[13].mxu1 }
 0x28e   :  { %v7204_v29 = vpop.f32.mrb[14].mxu1 }
 0x28f   :  { %v7207_v30 = vadd.f32 %v7204_v29, %v274_v54  ;;  %v5887_v31 = vpop.f32.mrb[15].mxu1 }
 0x2e9   :  { %v485_v32 = vpop.permute.xlu0 %484 }
 0x2ea   :  { %v487_v33 = vadd.f32 %v485_v32, %v476_v58 }
 0x2ec   :  { %6455 = vtanh.f32 %v487_v33 }
 0x2f6   :  { %v6456_v34 = vpop.eup %6455 }
 0x2f7   :  { %491 = vrot.lane.b32.xlu1 %v6456_v34, %s6841_s8 }
 0x369   :  { %v492_v37 = vpop.permute.xlu1 %491 }
 0x36a   :  { %v494_v39 = vmul.f32 %v492_v37, %v489_v36 }
 0x36c   :  { %v7210_v40 = vadd.f32 %v495_v38, %v494_v39 }
 0x36e   :  { %572 = vrot.lane.b32.xlu1 %v7210_v40, %s6841_s8 }
 0x3e0   :  { %v7214_v41 = vpop.permute.xlu1 %572 }
 0x3e1   :  { %5765 = vmatmul.mubr.msk.f32.vlgmr.msra.gmra.mrb[4].mxu0 %vm322_vm4, %v7214_v41 }
 0x3e2   :  { %6233 = vmatpush3.bf16.msra.mxu0 %v7066_v8  ;;  %5786 = vmatprep.mubr.msk.f32.mxu0 %vm6838_vm0, %v6839_v1 }
 0x3e3   :  { %6234 = vmatprep.subr.bf16.mxu0 %v6837_v0 }
 0x3e6   :  { %6236 = vmatpush3.bf16.msra.mxu0 %v7075_v13 }
 0x3e7   :  { %6243 = vmatprep.subr.bf16.mxu0 %v6837_v0 }
 0x4b4   :  { %v642_v42 = vpop.f32.mrb[4].mxu0 }
 0x4b5   :  { %v646_v43 = vadd.f32 %v642_v42, %v567_v62  ;;  %v655_v44 = vadd.f32 %v642_v42, %v7108_v26  ;;  %v5766_v45 = vpop.f32.mrb[5].mxu0 }
 0x4b7   :  { %657 = vrot.lane.b32.xlu0 %v655_v44, %s6840_s2  ;;  %v647_v46 = vadd.f32 %v646_v43, %v7175_v55 }
 0x4b9   :  { %v5430_v47 = vmul.f32 -1.442695, %v647_v46 }
 0x4bb   :  { %6457 = vpow2.f32 %v5430_v47 }
 0x4c5   :  { %v6458_v48 = vpop.eup %6457 }
 0x4c6   :  { %v651_v49 = vadd.f32 1.0, %v6458_v48 }
 0x4c8   :  { %6459 = vrcp.f32 %v651_v49 }
 0x4d2   :  { %v6460_v50 = vpop.eup %6459 }
 0x4d3   :  { %v667_v57 = vsub.f32 1.0, %v6460_v50  ;;  %v673_v59 = vmul.f32 %v6460_v50, %v7210_v40 }
 0x529   :  { %v658_v51 = vpop.permute.xlu0 %657 }
 0x52a   :  { %v660_v52 = vmul.f32 %v6460_v50, %v658_v51 }
 0x52c   :  { %662 = vrot.lane.b32.xlu1 %v660_v52, %s6840_s2 }
 0x59e   :  { %v663_v53 = vpop.permute.xlu1 %662 }
 0x59f   :  { %v665_v54 = vadd.f32 %v663_v53, %v654_v63 }
 0x5a1   :  { %6461 = vtanh.f32 %v665_v54 }
 0x5ab   :  { %v6462_v56 = vpop.eup %6461 }
 0x5ac   :  { %669 = vrot.lane.b32.xlu0 %v6462_v56, %s6841_s8 }
 0x61e   :  { %v670_v58 = vpop.permute.xlu0 %669 }
 0x61f   :  { %v672_v60 = vmul.f32 %v670_v58, %v667_v57 }
 0x621   :  { %v7230_v61 = vadd.f32 %v673_v59, %v672_v60 }
 0x623   :  { %751 = vrot.lane.b32.xlu1 %v7230_v61, %s6841_s8 }
 0x695   :  { %v752_v62 = vpop.permute.xlu1 %751 }
 0x696   :  { %5787 = vmatmul.mubr.msk.f32.vlgmr.msra.gmra.mrb[6].mxu0 %vm322_vm4, %v752_v62 }
 0x697   :  { %6245 = vmatpush3.bf16.msra.mxu0 %v7066_v8  ;;  %5808 = vmatprep.mubr.msk.f32.mxu0 %vm6838_vm0, %v6839_v1 }
 0x698   :  { %6246 = vmatprep.subr.bf16.mxu0 %v6837_v0 }
 0x69b   :  { %6248 = vmatpush3.bf16.msra.mxu0 %v7075_v13 }
 0x69c   :  { %6255 = vmatprep.subr.bf16.mxu0 %v6837_v0 }
 0x769   :  { %v821_v63 = vpop.f32.mrb[6].mxu0 }
 0x76a   :  { %v825_v2 = vadd.f32 %v821_v63, %v7178_v3  ;;  %v834_v4 = vadd.f32 %v821_v63, %v7108_v26  ;;  %v5788_v6 = vpop.f32.mrb[7].mxu0 }
 0x76c   :  { %836 = vrot.lane.b32.xlu0 %v834_v4, %s6840_s2  ;;  %v826_v7 = vadd.f32 %v825_v2, %v7175_v55 }
 0x76e   :  { %v5433_v11 = vmul.f32 -1.442695, %v826_v7 }
 0x770   :  { %6463 = vpow2.f32 %v5433_v11 }
 0x77a   :  { %v6464_v12 = vpop.eup %6463 }
 0x77b   :  { %v830_v14 = vadd.f32 1.0, %v6464_v12 }
 0x77d   :  { %6465 = vrcp.f32 %v830_v14 }
 0x787   :  { %v6466_v15 = vpop.eup %6465 }
 0x788   :  { %v846_v32 = vsub.f32 1.0, %v6466_v15  ;;  %v852_v34 = vmul.f32 %v6466_v15, %v7230_v61 }
 0x7de   :  { %v837_v21 = vpop.permute.xlu0 %836 }
 0x7df   :  { %v839_v24 = vmul.f32 %v6466_v15, %v837_v21 }
 0x7e1   :  { %841 = vrot.lane.b32.xlu1 %v839_v24, %s6840_s2 }
 0x853   :  { %v842_v28 = vpop.permute.xlu1 %841 }
 0x854   :  { %v844_v3 = vadd.f32 %v842_v28, %v7181_v5 }
 0x856   :  { %6467 = vtanh.f32 %v844_v3 }
 0x860   :  { %v6468_v31 = vpop.eup %6467 }
 0x861   :  { %848 = vrot.lane.b32.xlu0 %v6468_v31, %s6841_s8 }
 0x8d3   :  { %v849_v33 = vpop.permute.xlu0 %848 }
 0x8d4   :  { %v851_v36 = vmul.f32 %v849_v33, %v846_v32 }
 0x8d6   :  { %v7249_v37 = vadd.f32 %v852_v34, %v851_v36 }
 0x8d8   :  { %930 = vrot.lane.b32.xlu1 %v7249_v37, %s6841_s8 }
 0x94a   :  { %v931_v38 = vpop.permute.xlu1 %930 }
 0x94b   :  { %5809 = vmatmul.mubr.msk.f32.vlgmr.msra.gmra.mrb[8].mxu0 %vm322_vm4, %v931_v38 }
 0x94c   :  { %6257 = vmatpush3.bf16.msra.mxu0 %v7066_v8  ;;  %5830 = vmatprep.mubr.msk.f32.mxu0 %vm6838_vm0, %v6839_v1 }
 0x94d   :  { %6258 = vmatprep.subr.bf16.mxu0 %v6837_v0 }
 0x950   :  { %6260 = vmatpush3.bf16.msra.mxu0 %v7075_v13 }
 0x951   :  { %6267 = vmatprep.subr.bf16.mxu0 %v6837_v0 }
 0xa1e   :  { %v1000_v5 = vpop.f32.mrb[8].mxu0 }
 0xa1f   :  { %v1004_v39 = vadd.f32 %v1000_v5, %v7183_v9  ;;  %v1013_v42 = vadd.f32 %v1000_v5, %v7108_v26  ;;  %v5810_v43 = vpop.f32.mrb[9].mxu0 }
 0xa21   :  { %1015 = vrot.lane.b32.xlu0 %v1013_v42, %s6840_s2  ;;  %v1005_v44 = vadd.f32 %v1004_v39, %v7175_v55 }
 0xa23   :  { %v5436_v45 = vmul.f32 -1.442695, %v1005_v44 }
 0xa25   :  { %6469 = vpow2.f32 %v5436_v45 }
 0xa2f   :  { %v6470_v46 = vpop.eup %6469 }
 0xa30   :  { %v1009_v47 = vadd.f32 1.0, %v6470_v46 }
 0xa32   :  { %6471 = vrcp.f32 %v1009_v47 }
 0xa3c   :  { %v6472_v48 = vpop.eup %6471 }
 0xa3d   :  { %v1025_v53 = vsub.f32 1.0, %v6472_v48  ;;  %v1031_v56 = vmul.f32 %v6472_v48, %v7249_v37 }
 0xa93   :  { %v1016_v49 = vpop.permute.xlu0 %1015 }
 0xa94   :  { %v1018_v50 = vmul.f32 %v6472_v48, %v1016_v49 }
 0xa96   :  { %1020 = vrot.lane.b32.xlu1 %v1018_v50, %s6840_s2 }
 0xb08   :  { %v1021_v51 = vpop.permute.xlu1 %1020 }
 0xb09   :  { %v1023_v9 = vadd.f32 %v1021_v51, %v7186_v10 }
 0xb0b   :  { %6473 = vtanh.f32 %v1023_v9 }
 0xb15   :  { %v6474_v52 = vpop.eup %6473 }
 0xb16   :  { %1027 = vrot.lane.b32.xlu0 %v6474_v52, %s6841_s8 }
 0xb88   :  { %v1028_v54 = vpop.permute.xlu0 %1027 }
 0xb89   :  { %v1030_v57 = vmul.f32 %v1028_v54, %v1025_v53 }
 0xb8b   :  { %v7268_v58 = vadd.f32 %v1031_v56, %v1030_v57 }
 0xb8d   :  { %1109 = vrot.lane.b32.xlu1 %v7268_v58, %s6841_s8 }
 0xbff   :  { %v1110_v59 = vpop.permute.xlu1 %1109 }
 0xc00   :  { %5831 = vmatmul.mubr.msk.f32.vlgmr.msra.gmra.mrb[10].mxu0 %vm322_vm4, %v1110_v59 }
 0xc01   :  { %6269 = vmatpush3.bf16.msra.mxu0 %v7066_v8  ;;  %5852 = vmatprep.mubr.msk.f32.mxu0 %vm6838_vm0, %v6839_v1 }
 0xc02   :  { %6270 = vmatprep.subr.bf16.mxu0 %v6837_v0 }
 0xc05   :  { %6272 = vmatpush3.bf16.msra.mxu0 %v7075_v13 }
 0xc06   :  { %6279 = vmatprep.subr.bf16.mxu0 %v6837_v0 }
 0xcd3   :  { %v1179_v10 = vpop.f32.mrb[10].mxu0 }
 0xcd4   :  { %v1183_v60 = vadd.f32 %v1179_v10, %v7188_v16  ;;  %v1192_v62 = vadd.f32 %v1179_v10, %v7108_v26  ;;  %v5832_v63 = vpop.f32.mrb[11].mxu0 }
 0xcd6   :  { %1194 = vrot.lane.b32.xlu0 %v1192_v62, %s6840_s2  ;;  %v1184_v2 = vadd.f32 %v1183_v60, %v7175_v55 }
 0xcd8   :  { %v5439_v4 = vmul.f32 -1.442695, %v1184_v2 }
 0xcda   :  { %6475 = vpow2.f32 %v5439_v4 }
 0xce4   :  { %v6476_v6 = vpop.eup %6475 }
 0xce5   :  { %v1188_v7 = vadd.f32 1.0, %v6476_v6 }
 0xce7   :  { %6477 = vrcp.f32 %v1188_v7 }
 0xcf1   :  { %v6478_v11 = vpop.eup %6477 }
 0xcf2   :  { %v1204_v24 = vsub.f32 1.0, %v6478_v11  ;;  %v1210_v3 = vmul.f32 %v6478_v11, %v7268_v58 }
 0xd48   :  { %v1195_v12 = vpop.permute.xlu0 %1194 }
 0xd49   :  { %v1197_v14 = vmul.f32 %v6478_v11, %v1195_v12 }
 0xd4b   :  { %1199 = vrot.lane.b32.xlu1 %v1197_v14, %s6840_s2 }
 0xdbd   :  { %v1200_v15 = vpop.permute.xlu1 %1199 }
 0xdbe   :  { %v1202_v16 = vadd.f32 %v1200_v15, %v7191_v19  ;;  %v309_v15 = vld [vmem:[#allocation10] sm:$0xff] }
 0xdc0   :  { %6479 = vtanh.f32 %v1202_v16  ;;  %v310_v16 = vld [vmem:[#allocation10 + $0x8] sm:$0xff] }
 0xdca   :  { %v6480_v21 = vpop.eup %6479 }
 0xdcb   :  { %1206 = vrot.lane.b32.xlu0 %v6480_v21, %s6841_s8  ;;  %v7332_v21 = vpack.c.bf16 %v310_v16, %v309_v15 }
 0xe3d   :  { %v1207_v28 = vpop.permute.xlu0 %1206 }
 0xe3e   :  { %v1209_v31 = vmul.f32 %v1207_v28, %v1204_v24  ;;  %v311_v24 = vld [vmem:[#allocation10 + $0x10] sm:$0xff] }
 0xe40   :  { %v7287_v32 = vadd.f32 %v1210_v3, %v1209_v31 }
 0xe42   :  { %1288 = vrot.lane.b32.xlu1 %v7287_v32, %s6841_s8 }
 0xeb4   :  { %v7291_v33 = vpop.permute.xlu1 %1288 }
 0xeb5   :  { %5853 = vmatmul.mubr.msk.f32.vlgmr.msra.gmra.mrb[12].mxu0 %vm322_vm4, %v7291_v33 }
 0xeb6   :  { %6281 = vmatpush3.bf16.msra.mxu0 %v7066_v8  ;;  %5874 = vmatprep.mubr.msk.f32.mxu0 %vm6838_vm0, %v6839_v1 }
 0xeb7   :  { %6282 = vmatprep.subr.bf16.mxu0 %v6837_v0 }
 0xeba   :  { %6284 = vmatpush3.bf16.msra.mxu0 %v7075_v13 }
 0xebb   :  { %6291 = vmatprep.subr.bf16.mxu0 %v6837_v0 }
 0xf88   :  { %v1358_v19 = vpop.f32.mrb[12].mxu0 }
 0xf89   :  { %v1362_v34 = vadd.f32 %v1358_v19, %v7194_v22  ;;  %v1371_v36 = vadd.f32 %v1358_v19, %v7108_v26  ;;  %v5854_v38 = vpop.f32.mrb[13].mxu0 }
 0xf8b   :  { %1373 = vrot.lane.b32.xlu0 %v1371_v36, %s6840_s2  ;;  %v1363_v5 = vadd.f32 %v1362_v34, %v7175_v55 }
 0xf8d   :  { %v5442_v39 = vmul.f32 -1.442695, %v1363_v5 }
 0xf8f   :  { %6481 = vpow2.f32 %v5442_v39 }
 0xf99   :  { %v6482_v42 = vpop.eup %6481 }
 0xf9a   :  { %v1367_v43 = vadd.f32 1.0, %v6482_v42 }
 0xf9c   :  { %6483 = vrcp.f32 %v1367_v43 }
 0xfa6   :  { %v6484_v44 = vpop.eup %6483 }
 0xfa7   :  { %v1383_v49 = vsub.f32 1.0, %v6484_v44  ;;  %v1389_v51 = vmul.f32 %v6484_v44, %v7287_v32 }
 0xffd   :  { %v1374_v45 = vpop.permute.xlu0 %1373 }
 0xffe   :  { %v1376_v46 = vmul.f32 %v6484_v44, %v1374_v45 }
0x1000   :  { %1378 = vrot.lane.b32.xlu1 %v1376_v46, %s6840_s2 }
0x1072   :  { %v1379_v47 = vpop.permute.xlu1 %1378 }
0x1073   :  { %v1381_v22 = vadd.f32 %v1379_v47, %v7197_v23 }
0x1075   :  { %6485 = vtanh.f32 %v1381_v22  ;;  %v2052_v22 = vld [vmem:[#allocation16] sm:$0xff] }
0x107f   :  { %v6486_v48 = vpop.eup %6485 }
0x1080   :  { %1385 = vrot.lane.b32.xlu0 %v6486_v48, %s6841_s8  ;;  %v2053_v48 = vld [vmem:[#allocation16 + $0x8] sm:$0xff] }
0x10f2   :  { %v1386_v50 = vpop.permute.xlu0 %1385 }
0x10f3   :  { %v1388_v9 = vmul.f32 %v1386_v50, %v1383_v49  ;;  %v6297_v49 = vpack.c.bf16 %v2053_v48, %v2052_v22  ;;  %v2055_v50 = vld [vmem:[#allocation16 + $0x18] sm:$0xff] }
0x10f5   :  { %v7309_v52 = vadd.f32 %v1389_v51, %v1388_v9  ;;  %6298 = vmatprep.subr.bf16.mxu1 %v6297_v49  ;;  %v6842_v9 = vmov 1966171168  }
0x10f6   :  { %6300 = vmatpush3.bf16.msra.mxu1 %v6297_v49 }
0x10f7   :  { %1467 = vrot.lane.b32.xlu1 %v7309_v52, %s6841_s8 }
0x1169   :  { %v1468_v53 = vpop.permute.xlu1 %1467 }
0x116a   :  { %5875 = vmatmul.mubr.msk.f32.vlgmr.msra.gmra.mrb[14].mxu0 %vm322_vm4, %v1468_v53  ;;  %v1750_v53 = vunpack.c.l.s4 %v6842_v9 }
0x116b   :  { %6293 = vmatpush3.bf16.msra.mxu0 %v7066_v8  ;;  %5896 = vmatprep.mubr.msk.f32.mxu0 %vm6838_vm0, %v6839_v1 }
0x116c   :  { %6294 = vmatprep.subr.bf16.mxu0 %v6837_v0 }
0x116f   :  { %6296 = vmatpush3.bf16.msra.mxu0 %v7075_v13 }
0x1170   :  { %6305 = vmatprep.subr.bf16.mxu0 %v6837_v0 }
0x123d   :  { %v1537_v23 = vpop.f32.mrb[14].mxu0 }
0x123e   :  { %v1541_v54 = vadd.f32 %v1537_v23, %v7199_v25  ;;  %v1550_v56 = vadd.f32 %v1537_v23, %v7108_v26  ;;  %v5876_v57 = vpop.f32.mrb[15].mxu0  ;;  %v1751_v23 = vunpack.c.0.s8 %v1750_v53 }
0x1240   :  { %1552 = vrot.lane.b32.xlu0 %v1550_v56, %s6840_s2  ;;  %v1542_v59 = vadd.f32 %v1541_v54, %v7175_v55 }
0x1242   :  { %v5445_v8 = vmul.f32 -1.442695, %v1542_v59 }
0x1244   :  { %6487 = vpow2.f32 %v5445_v8 }
0x124e   :  { %v6488_v10 = vpop.eup %6487 }
0x124f   :  { %v1546_v60 = vadd.f32 1.0, %v6488_v10 }
0x1251   :  { %6489 = vrcp.f32 %v1546_v60 }
0x125b   :  { %v6490_v62 = vpop.eup %6489 }
0x125c   :  { %v1562_v6 = vsub.f32 1.0, %v6490_v62  ;;  %v1568_v11 = vmul.f32 %v6490_v62, %v7309_v52 }
0x12b2   :  { %v1553_v63 = vpop.permute.xlu0 %1552 }
0x12b3   :  { %v1555_v13 = vmul.f32 %v6490_v62, %v1553_v63 }
0x12b5   :  { %1557 = vrot.lane.b32.xlu1 %v1555_v13, %s6840_s2 }
0x1327   :  { %v1558_v2 = vpop.permute.xlu1 %1557 }
0x1328   :  { %v1560_v25 = vadd.f32 %v1558_v2, %v7202_v27  ;;  %v312_v27 = vld [vmem:[#allocation10 + $0x18] sm:$0xff] }
0x1329   :  { %v7336_v3 = vpack.c.bf16 %v312_v27, %v311_v24 }
0x132a   :  { %6491 = vtanh.f32 %v1560_v25 }
0x1334   :  { %v6492_v4 = vpop.eup %6491 }
0x1335   :  { %1564 = vrot.lane.b32.xlu0 %v6492_v4, %s6841_s8 }
0x13a7   :  { %v1565_v7 = vpop.permute.xlu0 %1564 }
0x13a8   :  { %v1567_v12 = vmul.f32 %v1565_v7, %v1562_v6 }
0x13aa   :  { %v7328_v14 = vadd.f32 %v1568_v11, %v1567_v12 }
0x13ac   :  { %1646 = vrot.lane.b32.xlu1 %v7328_v14, %s6841_s8 }
0x141e   :  { %v1647_v28 = vpop.permute.xlu1 %1646 }
0x141f   :  { %5897 = vmatmul.mubr.msk.f32.vlgmr.msra.gmra.mrb[16].mxu0 %vm322_vm4, %v1647_v28 }
0x1420   :  { %6307 = vmatpush3.bf16.msra.mxu0 %v7332_v21  ;;  %5918 = vmatprep.mubr.msk.f32.mxu0 %vm6838_vm0, %v6839_v1 }
0x1421   :  { %6308 = vmatprep.subr.bf16.mxu0 %v6837_v0 }
0x1424   :  { %6310 = vmatpush3.bf16.msra.mxu0 %v7336_v3 }
0x1425   :  { %6317 = vmatprep.subr.bf16.mxu0 %v6837_v0 }
0x1427   :  { %5919 = vmatmul.mubr.msk.f32.vlgmr.msra.gmra.mrb[18].mxu0 %vm322_vm4, %v7111_v35 }
0x1428   :  { %5940 = vmatprep.mubr.msk.f32.mxu0 %vm6838_vm0, %v6839_v1 }
0x14f2   :  { %v1716_v31 = vpop.f32.mrb[16].mxu0 }
0x14f3   :  { %v1720_v19 = vadd.f32 %v1716_v31, %v7204_v29  ;;  %v1729_v34 = vadd.f32 %v1716_v31, %v7108_v26  ;;  %v5898_v36 = vpop.f32.mrb[17].mxu0 }
0x14f5   :  { %1731 = vrot.lane.b32.xlu0 %v1729_v34, %s6840_s2  ;;  %v1721_v39 = vadd.f32 %v1720_v19, %v7175_v55  ;;  %v2054_v55 = vld [vmem:[#allocation16 + $0x10] sm:$0xff] }
0x14f6   :  { %v6301_v51 = vpack.c.bf16 %v2055_v50, %v2054_v55 }
0x14f7   :  { %v5448_v42 = vmul.f32 -1.442695, %v1721_v39 }
0x14f8   :  { %6302 = vmatprep.subr.bf16.mxu1 %v6301_v51 }
0x14f9   :  { %6493 = vpow2.f32 %v5448_v42  ;;  %6304 = vmatpush3.bf16.msra.mxu1 %v6301_v51 }
0x14fa   :  { %v7350_v38 = vpop.f32.mrb[18].mxu0  ;;  %6311 = vmatprep.subr.bf16.mxu1 %v6837_v0 }
0x14fb   :  { %v5920_v5 = vpop.f32.mrb[19].mxu0 }
0x1503   :  { %v6494_v43 = vpop.eup %6493 }
0x1504   :  { %v1725_v35 = vadd.f32 1.0, %v6494_v43 }
0x1506   :  { %6495 = vrcp.f32 %v1725_v35 }
0x1510   :  { %v6496_v44 = vpop.eup %6495 }
0x1511   :  { %v1741_v24 = vsub.f32 1.0, %v6496_v44  ;;  %v1747_v39 = vmul.f32 %v6496_v44, %v7328_v14 }
0x1567   :  { %v1732_v45 = vpop.permute.xlu0 %1731 }
0x1568   :  { %v1734_v46 = vmul.f32 %v6496_v44, %v1732_v45 }
0x156a   :  { %1736 = vrot.lane.b32.xlu1 %v1734_v46, %s6840_s2 }
0x15dc   :  { %v1737_v29 = vpop.permute.xlu1 %1736 }
0x15dd   :  { %v1739_v26 = vadd.f32 %v1737_v29, %v7207_v30  ;;  %v7358_v30 = vsub.s32 %v1751_v23, %v7096_v18 }
0x15df   :  { %6497 = vtanh.f32 %v1739_v26  ;;  %v1779_v54 = vrot.slane %v7230_v61, %v7358_v30  ;;  %v1755_v56 = vrot.slane %v7210_v40, %v7358_v30  ;;  %v1801_v59 = vrot.slane %v7249_v37, %v7358_v30 }
0x15e0   :  { %v1823_v8 = vrot.slane %v7268_v58, %v7358_v30  ;;  %v1845_v62 = vrot.slane %v7287_v32, %v7358_v30  ;;  %v1867_v13 = vrot.slane %v7309_v52, %v7358_v30  ;;  %v1889_v25 = vrot.slane %v7328_v14, %v7358_v30 }
0x15e1   :  { %v1780_v57 = vcombine.high %v1779_v54, %v1779_v54  ;;  %v1756_v10 = vcombine.high %v1755_v56, %v1755_v56  ;;  %v1787_v60 = vrot.slane %v1779_v54, %v7358_v30  ;;  %v1802_v2 = vcombine.high %v1801_v59, %v1801_v59 }
0x15e2   :  { %v1809_v40 = vrot.slane %v1801_v59, %v7358_v30  ;;  %v1763_v4 = vrot.slane %v1755_v56, %v7358_v30  ;;  %v1824_v6 = vcombine.high %v1823_v8, %v1823_v8  ;;  %v1831_v32 = vrot.slane %v1823_v8, %v7358_v30 }
0x15e3   :  { %v1794_v63 = vrot.slane %v1780_v57, %v7358_v30  ;;  %v1770_v7 = vrot.slane %v1756_v10, %v7358_v30  ;;  %v1931_v11 = vrot.slane %v1787_v60, %v7102_v20  ;;  %v1846_v12 = vcombine.high %v1845_v62, %v1845_v62 }
0x15e4   :  { %v1868_v16 = vcombine.high %v1867_v13, %v1867_v13  ;;  %v1816_v27 = vrot.slane %v1802_v2, %v7358_v30  ;;  %v1941_v28 = vrot.slane %v1809_v40, %v7102_v20  ;;  %v1853_v31 = vrot.slane %v1845_v62, %v7358_v30 }
0x15e5   :  { %v1935_v15 = vrot.slane %v1794_v63, %v7102_v20  ;;  %v1890_v34 = vcombine.high %v1889_v25, %v1889_v25  ;;  %v1838_v36 = vrot.slane %v1824_v6, %v7358_v30  ;;  %v1875_v5 = vrot.slane %v1867_v13, %v7358_v30 }
0x15e6   :  { %v1951_v43 = vrot.slane %v1831_v32, %v7102_v20  ;;  %v1860_v35 = vrot.slane %v1846_v12, %v7358_v30  ;;  %v1897_v45 = vrot.slane %v1889_v25, %v7358_v30  ;;  %v1999_v46 = vsel %vm1998_vm5, %v1763_v4, %v1931_v11  ;;  %v313_v32 = vld [vmem:[#allocation11] sm:$0xff]  ;;  %v314_v12 = vld [vmem:[#allocation11 + $0x8] sm:$0xff] }
0x15e7   :  { %v1882_v26 = vrot.slane %v1868_v16, %v7358_v30  ;;  %v1945_v22 = vrot.slane %v1816_v27, %v7102_v20  ;;  %v1961_v44 = vrot.slane %v1853_v31, %v7102_v20  ;;  %v2001_v48 = vsel %vm180_vm1, %v1999_v46, %v1941_v28  ;;  %v316_v27 = vld [vmem:[#allocation11 + $0x18] sm:$0xff]  ;;  %v261_v46 = vld [vmem:[#allocation13] sm:$0x1] }
0x15e8   :  { %v1904_v55 = vrot.slane %v1890_v34, %v7358_v30  ;;  %v1971_v50 = vrot.slane %v1875_v5, %v7102_v20  ;;  %v1955_v51 = vrot.slane %v1838_v36, %v7102_v20  ;;  %v1981_v9 = vrot.slane %v1897_v45, %v7102_v20  ;;  %v262_v5 = vld [vmem:[#allocation14] sm:$0x1] }
0x15e9   :  { %v6498_v47 = vpop.eup %6497  ;;  %v2004_v53 = vsel %vm2003_vm6, %v2001_v48, %v1951_v43  ;;  %v1965_v23 = vrot.slane %v1860_v35, %v7102_v20  ;;  %v1975_v57 = vrot.slane %v1882_v26, %v7102_v20  ;;  %v7427_v16 = vpack.c.bf16 %v314_v12, %v313_v32 }
0x15ea   :  { %1743 = vrot.lane.b32.xlu0 %v6498_v47, %s6841_s8  ;;  %v2000_v47 = vsel %vm1998_vm5, %v1770_v7, %v1935_v15  ;;  %v2007_v59 = vsel %vm2006_vm7, %v2004_v53, %v1961_v44  ;;  %v1985_v8 = vrot.slane %v1904_v55, %v7102_v20  ;;  %v282_v26 = vadd.f32 %v262_v5, %v261_v46 }
0x15eb   :  { %v2002_v10 = vsel %vm180_vm1, %v2000_v47, %v1945_v22  ;;  %v2010_v62 = vsel %vm2009_vm8, %v2007_v59, %v1971_v50  ;;  %v2058_v59 = vld [vmem:[%s8047_s12 + $0x10] sm:$0xff]  ;;  %vm2493_vm1 = vcmask 64512  }
0x15ec   :  { %v2005_v13 = vsel %vm2003_vm6, %v2002_v10, %v1955_v51  ;;  %v2013_v2 = vsel %vm2012_vm9, %v2010_v62, %v1981_v9  ;;  %v7461_v47 = vrot.slane %v282_v26, %v7102_v20  ;;  %v7466_v9 = vrot.slane %v261_v46, %v7102_v20 }
0x15ed   :  { %v2008_v40 = vsel %vm2006_vm7, %v2005_v13, %v1965_v23 }
0x15ee   :  { %v2011_v6 = vsel %vm2009_vm8, %v2008_v40, %v1975_v57  ;;  %v2303_v53 = vadd.f32 %v7350_v38, %v7466_v9  ;;  %v2057_v57 = vld [vmem:[%s8047_s12 + $0x8] sm:$0xff] }
0x15ef   :  { %v2014_v7 = vsel %vm2012_vm9, %v2011_v6, %v1985_v8 }
0x165c   :  { %v1744_v19 = vpop.permute.xlu0 %1743 }
0x165d   :  { %v1746_v42 = vmul.f32 %v1744_v19, %v1741_v24  ;;  %v315_v24 = vld [vmem:[#allocation11 + $0x10] sm:$0xff] }
0x165e   :  { %v7436_v31 = vpack.c.bf16 %v316_v27, %v315_v24 }
0x165f   :  { %v7392_v29 = vadd.f32 %v1747_v39, %v1746_v42  ;;  %v7455_v39 = vrot.slane %v262_v5, %v7102_v20 }
0x1661   :  { %v1912_v49 = vrot.slane %v7392_v29, %v7358_v30 }
0x1663   :  { %v1920_v54 = vrot.slane %v1912_v49, %v7358_v30  ;;  %v1913_v56 = vcombine.high %v1912_v49, %v1912_v49 }
0x1665   :  { %v1991_v60 = vrot.slane %v1920_v54, %v7102_v20  ;;  %v1927_v63 = vrot.slane %v1913_v56, %v7358_v30  ;;  %v2056_v56 = vld [vmem:[%s8047_s12] sm:$0xff] }
0x1666   :  { %v7479_v8 = vpack.c.bf16 %v2057_v57, %v2056_v56 }
0x1667   :  { %v2016_v25 = vsel %vm2015_vm10, %v2013_v2, %v1991_v60  ;;  %v1995_v4 = vrot.slane %v1927_v63, %v7102_v20 }
0x1668   :  { %2063 = vrot.lane.b32.xlu1 %v2016_v25, %s6841_s8  ;;  %6319 = vmatpush3.bf16.msra.mxu0 %v7479_v8 }
0x1669   :  { %v2017_v11 = vsel %vm2015_vm10, %v2014_v7, %v1995_v4  ;;  %6320 = vmatprep.subr.bf16.mxu0 %v6837_v0 }
0x166a   :  { %2065 = vrot.lane.b32.xlu0 %v2017_v11, %s6841_s8 }
0x166c   :  { %2221 = vrot.lane.b32.xlu1 %v7392_v29, %s6841_s8 }
0x16da   :  { %v7425_v15 = vpop.permute.xlu1 %2063 }
0x16db   :  { %5907 = vmatprep.mubr.msk.f32.mxu1 %vm322_vm4, %v7425_v15 }
0x16dc   :  { %v7431_v28 = vpop.permute.xlu0 %2065 }
0x16dd   :  { %5908 = vmatmul.mubr.msk.f32.vlgmr.msra.gmra.mrb[16].mxu1 %vm322_vm4, %v7431_v28 }
0x16de   :  { %6313 = vmatpush3.bf16.msra.mxu1 %v7427_v16  ;;  %5929 = vmatprep.mubr.msk.f32.mxu1 %vm6838_vm0, %v6839_v1  ;;  %v2222_v19 = vpop.permute.xlu1 %2221 }
0x16df   :  { %6314 = vmatprep.subr.bf16.mxu1 %v6837_v0 }
0x16e2   :  { %6316 = vmatpush3.bf16.msra.mxu1 %v7436_v31 }
0x16e3   :  { %6323 = vmatprep.subr.bf16.mxu1 %v6837_v0 }
0x16e5   :  { %5930 = vmatmul.mubr.msk.f32.vlgmr.msra.gmra.mrb[18].mxu1 %vm322_vm4, %v2222_v19 }
0x16e6   :  { %6325 = vmatpush3.bf16.msra.mxu1 %v7332_v21  ;;  %5961 = vmatprep.mubr.msk.f32.mxu1 %vm6838_vm0, %v6839_v1 }
0x16e7   :  { %6326 = vmatprep.subr.bf16.mxu1 %v6837_v0 }
0x16ea   :  { %6328 = vmatpush3.bf16.msra.mxu1 %v7336_v3 }
0x16eb   :  { %6335 = vmatprep.subr.bf16.mxu1 %v6837_v0 }
0x17b0   :  { %v7450_v34 = vpop.f32.mrb[16].mxu1 }
0x17b1   :  { %v7452_v36 = vpop.f32.mrb[17].mxu1 }
0x17b8   :  { %v2291_v42 = vpop.f32.mrb[18].mxu1 }
0x17b9   :  { %v2295_v43 = vadd.f32 %v2291_v42, %v7350_v38  ;;  %v2304_v35 = vadd.f32 %v2291_v42, %v7455_v39  ;;  %v5931_v45 = vpop.f32.mrb[19].mxu1  ;;  %v2059_v38 = vld [vmem:[%s8047_s12 + $0x18] sm:$0xff]  ;;  %v7514_v42 = vld [vmem:[%s8048_s13] ss:$0 sm:$0xff] }
0x17ba   :  { %v7485_v10 = vpack.c.bf16 %v2059_v38, %v2058_v59 }
0x17bb   :  { %2306 = vrot.lane.b32.xlu0 %v2304_v35, %s6840_s2  ;;  %v2296_v22 = vadd.f32 %v2295_v43, %v7461_v47 }
0x17bc   :  { %6322 = vmatpush3.bf16.msra.mxu0 %v7485_v10 }
0x17bd   :  { %v5455_v44 = vmul.f32 -1.442695, %v2296_v22  ;;  %5943 = vmatprep.subr.mxu0 %v6839_v1 }
0x17bf   :  { %6499 = vpow2.f32 %v5455_v44  ;;  %v7521_v44 = vand.u32 127, %v265_v17 }
0x17c1   :  { %vm2148_vm11 = vcmp.ne.s32.totalorder %v7521_v44, 0  ;;  %vm2488_vm9 = vcmp.eq.s32.totalorder %v7521_v44, 1  ;;  %vm2974_vm10 = vcmp.eq.s32.totalorder %v7521_v44, 2 }
0x17c9   :  { %v6500_v48 = vpop.eup %6499 }
0x17ca   :  { %v2300_v55 = vadd.f32 1.0, %v6500_v48  ;;  %v7526_v48 = vsub.s32 %v7521_v44, %v7096_v18 }
0x17cc   :  { %6501 = vrcp.f32 %v2300_v55 }
0x17d6   :  { %v6502_v49 = vpop.eup %6501 }
0x17d7   :  { %v2316_v62 = vsub.f32 1.0, %v6502_v49  ;;  %v2322_v13 = vmul.f32 %v6502_v49, %v7392_v29 }
0x182d   :  { %v2307_v50 = vpop.permute.xlu0 %2306 }
0x182e   :  { %v2309_v51 = vmul.f32 %v6502_v49, %v2307_v50  ;;  %v7529_v49 = vsel %vm2148_vm11, 1.0, %v6839_v1 }
0x182f   :  { %vm2450_vm12 = vcmp.gt.f32.partialorder %v7529_v49, 0.0 }
0x1830   :  { %2311 = vrot.lane.b32.xlu1 %v2309_v51, %s6840_s2 }
0x18a2   :  { %v2312_v23 = vpop.permute.xlu1 %2311 }
0x18a3   :  { %v2314_v54 = vadd.f32 %v2312_v23, %v2303_v53 }
0x18a5   :  { %6503 = vtanh.f32 %v2314_v54 }
0x18af   :  { %v6504_v60 = vpop.eup %6503 }
0x18b0   :  { %2318 = vrot.lane.b32.xlu0 %v6504_v60, %s6841_s8 }
0x1922   :  { %v2319_v63 = vpop.permute.xlu0 %2318 }
0x1923   :  { %v2321_v2 = vmul.f32 %v2319_v63, %v2316_v62 }
0x1925   :  { %v7492_v40 = vadd.f32 %v2322_v13, %v2321_v2 }
0x1927   :  { %2325 = vrot.lane.b32.xlu1 %v7492_v40, %s6841_s8 }
0x1999   :  { %v7496_v25 = vpop.permute.xlu1 %2325 }
0x199a   :  { %5941 = vmatmul.mubr.msk.f32.vlgmr.msra.gmra.mrb[20].mxu0 %vm322_vm4, %v7496_v25 }
0x199b   :  { %5944 = vmatpush3.msra.mxu0 %v7425_v15  ;;  %5945 = vmatprep.mubr.msk.f32.mxu0 %vm6838_vm0, %v6839_v1 }
0x199c   :  { %5948 = vmatprep.subr.mxu0 %v6839_v1 }
0x1a6d   :  { %v2395_v4 = vpop.f32.mrb[20].mxu0 }
0x1a6e   :  { %v2406_v6 = vrot.slane %v2395_v4, %v7358_v30  ;;  %v5942_v7 = vpop.f32.mrb[21].mxu0 }
0x1a70   :  { %v2407_v11 = vcombine.high %v2406_v6, %v2406_v6  ;;  %v2414_v32 = vrot.slane %v2406_v6, %v7358_v30 }
0x1a72   :  { %v2421_v12 = vrot.slane %v2407_v11, %v7358_v30  ;;  %v2425_v24 = vrot.slane %v2414_v32, %v7102_v20 }
0x1a74   :  { %v2429_v27 = vrot.slane %v2421_v12, %v7102_v20  ;;  %v2432_v19 = vadd.f32 %v2425_v24, %v7452_v36 }
0x1a76   :  { %v2433_v5 = vadd.f32 %v7450_v34, %v2429_v27  ;;  %6505 = vtanh.f32 %v2432_v19 }
0x1a78   :  { %6507 = vtanh.f32 %v2433_v5 }
0x1a80   :  { %v6506_v43 = vpop.eup %6505 }
0x1a81   :  { %v2442_v35 = vmul.f32 %v6506_v43, %v7514_v42 }
0x1a82   :  { %v6508_v45 = vpop.eup %6507 }
0x1a83   :  { %v2444_v46 = vsel %vm322_vm4, %v2442_v35, 0.0  ;;  %v2443_v26 = vmul.f32 %v6508_v45, %v7514_v42 }
0x1a84   :  { %2445 = vadd.xlane.f32.xlu0 %v2444_v46 }
0x1a85   :  { %v2447_v22 = vsel %vm322_vm4, %v2443_v26, 0.0 }
0x1a86   :  { %2448 = vadd.xlane.f32.xlu1 %v2447_v22 }
0x1b11   :  { %v2446_v55 = vpop.xlane.xlu0 %2445 }
0x1b12   :  { %v2456_v51 = vrot.slane %v2446_v55, %v7526_v48 }
0x1b13   :  { %v2449_v50 = vpop.xlane.xlu1 %2448 }
0x1b14   :  { %v2460_v53 = vrot.slane %v2449_v50, %v7526_v48 }
0x1b16   :  { %v2461_v17 = vsel %vm320_vm3, %v2460_v53, %v2456_v51 }
0x1b17   :  { %v2463_v23 = vsel %vm2450_vm12, %v2461_v17, -1e+09 }
0x1b18   :  { %v2465_v54 = vsel %vm2464_vm13, %v2463_v23, -inf }
0x1b19   :  { %2466 = vmax.xlane.f32.xlu0 %v2465_v54 }
0x1ba6   :  { %v2467_v18 = vpop.xlane.xlu0 %2466 }
0x1ba7   :  { %vm2468_vm14 = vcmp.ge.f32.partialorder %v2463_v23, %v2467_v18 }
0x1ba8   :  { %v2469_v56 = vsel %vm2468_vm14, %v7521_v44, 8 }
0x1ba9   :  { %v2470_v57 = vsel %vm2464_vm13, %v2469_v56, 2147483647 }
0x1baa   :  { %v2472_v59 = vshra.s32 %v2470_v57, 16  ;;  %v2471_v60 = vand.u32 65535, %v2470_v57 }
0x1bac   :  { %v2474_v38 = vcvt.s32.f32 %v2472_v59  ;;  %v2473_v63 = vcvt.s32.f32 %v2471_v60 }
0x1bae   :  { %2475 = vmin.xlane.f32.xlu0 %v2474_v38 }
0x1c3b   :  { %v2476_v62 = vpop.xlane.xlu0 %2475 }
0x1c3c   :  { %vm2477_vm15 = vcmp.eq.f32.partialorder %v2474_v38, %v2476_v62  ;;  %v2482_v2 = vcvt.f32.s32 %v2476_v62 }
0x1c3d   :  { %v2478_v13 = vsel %vm2477_vm15, %v2473_v63, inf }
0x1c3e   :  { %2479 = vmin.xlane.f32.xlu1 %v2478_v13  ;;  %v2483_v6 = vshll.u32 %v2482_v2, 16 }
0x1ccb   :  { %v2480_v4 = vpop.xlane.xlu1 %2479 }
0x1ccc   :  { %v2481_v7 = vcvt.f32.s32 %v2480_v4 }
0x1cce   :  { %v7538_v11 = vadd.s32 %v2483_v6, %v2481_v7 }
0x1cd0   :  { %vm2485_vm2 = vcmp.eq.s32.totalorder %v7521_v44, %v7538_v11 }
0x1cd1   :  { %v7543_v32 = vsel %vm2485_vm2, 1.0, %v6839_v1  ;;  %vm3457_vm2 = vcmp.eq.s32.totalorder %v7521_v44, 3 }
0x1cd2   :  { %5946 = vmatmul.mubr.msk.f32.vlgmr.msra.gmra.mrb[22].mxu0 %vm2493_vm1, %v7543_v32  ;;  %v2567_v12 = vrot.slane %v7543_v32, 1 }
0x1cd3   :  { %5949 = vmatpush3.msra.mxu0 %v7431_v28  ;;  %5950 = vmatprep.mubr.msk.f32.mxu0 %vm6838_vm0, %v6839_v1 }
0x1cd4   :  { %6329 = vmatprep.subr.bf16.mxu0 %v6837_v0 }
0x1cd6   :  { %5951 = vmatmul.mubr.msk.f32.vlgmr.msra.gmra.mrb[24].mxu0 %vm2493_vm1, %v2567_v12 }
0x1cd7   :  { %6331 = vmatpush3.bf16.msra.mxu0 %v7427_v16  ;;  %5972 = vmatprep.mubr.msk.f32.mxu0 %vm6838_vm0, %v6839_v1 }
0x1cd8   :  { %6332 = vmatprep.subr.bf16.mxu0 %v6837_v0 }
0x1cdb   :  { %6334 = vmatpush3.bf16.msra.mxu0 %v7436_v31 }
0x1cdc   :  { %5986 = vmatprep.subr.mxu0 %v6839_v1 }
0x1cde   :  { %5973 = vmatmul.mubr.msk.f32.vlgmr.msra.gmra.mrb[26].mxu0 %vm322_vm4, %v7496_v25 }
0x1cdf   :  { %5987 = vmatpush3.msra.mxu0 %v7425_v15  ;;  %5988 = vmatprep.mubr.msk.f32.mxu0 %vm6838_vm0, %v6839_v1 }
0x1ce0   :  { %5991 = vmatprep.subr.mxu0 %v6839_v1 }
0x1da5   :  { %v2563_v24 = vpop.f32.mrb[22].mxu0 }
0x1da6   :  { %v5947_v27 = vpop.f32.mrb[23].mxu0 }
0x1da9   :  { %v2637_v19 = vpop.f32.mrb[24].mxu0 }
0x1daa   :  { %v2642_v5 = vrot.slane %v2637_v19, 7  ;;  %v5952_v43 = vpop.f32.mrb[25].mxu0 }
0x1dac   :  { %v2644_v35 = vsel %vm1998_vm5, %v2563_v24, %v2642_v5 }
0x1dad   :  { %5962 = vmatmul.mubr.msk.f32.vlgmr.msra.gmra.mrb[20].mxu1 %vm322_vm4, %v2644_v35 }
0x1dae   :  { %6337 = vmatpush3.bf16.msra.mxu1 %v7479_v8  ;;  %5983 = vmatprep.mubr.msk.f32.mxu1 %vm6838_vm0, %v6839_v1 }
0x1daf   :  { %6338 = vmatprep.subr.bf16.mxu1 %v6837_v0 }
0x1db1   :  { %v2784_v25 = vpop.f32.mrb[26].mxu0 }
0x1db2   :  { %v2797_v45 = vadd.f32 %v2784_v25, %v7455_v39  ;;  %v5974_v46 = vpop.f32.mrb[27].mxu0  ;;  %6340 = vmatpush3.bf16.msra.mxu1 %v7485_v10 }
0x1db3   :  { %6341 = vmatprep.subr.bf16.mxu1 %v6837_v0 }
0x1db4   :  { %2799 = vrot.lane.b32.xlu0 %v2797_v45, %s6840_s2 }
0x1e26   :  { %v2800_v54 = vpop.permute.xlu0 %2799 }
0x1e80   :  { %v2714_v26 = vpop.f32.mrb[20].mxu1 }
0x1e81   :  { %v2788_v22 = vadd.f32 %v2784_v25, %v2714_v26  ;;  %v5963_v55 = vpop.f32.mrb[21].mxu1  ;;  %v2796_v56 = vadd.f32 %v2714_v26, %v7466_v9 }
0x1e83   :  { %v2789_v50 = vadd.f32 %v2788_v22, %v7461_v47 }
0x1e85   :  { %v5463_v51 = vmul.f32 -1.442695, %v2789_v50  ;;  %v2490_v50 = vsub.f32 1.0, %v7543_v32 }
0x1e87   :  { %6509 = vpow2.f32 %v5463_v51 }
0x1e91   :  { %v6510_v53 = vpop.eup %6509 }
0x1e92   :  { %v2793_v17 = vadd.f32 1.0, %v6510_v53  ;;  %v7607_v53 = vmul.f32 %v7529_v49, %v2490_v50 }
0x1e94   :  { %6511 = vrcp.f32 %v2793_v17  ;;  %vm2937_vm6 = vcmp.gt.f32.partialorder %v7607_v53, 0.0 }
0x1e9e   :  { %v6512_v23 = vpop.eup %6511 }
0x1e9f   :  { %v2802_v18 = vmul.f32 %v6512_v23, %v2800_v54  ;;  %v2809_v60 = vsub.f32 1.0, %v6512_v23  ;;  %v2815_v63 = vmul.f32 %v6512_v23, %v7492_v40 }
0x1ea1   :  { %2804 = vrot.lane.b32.xlu1 %v2802_v18, %s6840_s2 }
0x1f13   :  { %v2805_v57 = vpop.permute.xlu1 %2804 }
0x1f14   :  { %v2807_v59 = vadd.f32 %v2805_v57, %v2796_v56 }
0x1f16   :  { %6513 = vtanh.f32 %v2807_v59 }
0x1f20   :  { %v6514_v38 = vpop.eup %6513 }
0x1f21   :  { %2811 = vrot.lane.b32.xlu1 %v6514_v38, %s6841_s8 }
0x1f93   :  { %v2812_v62 = vpop.permute.xlu1 %2811 }
0x1f94   :  { %v2814_v13 = vmul.f32 %v2812_v62, %v2809_v60 }
0x1f96   :  { %v7580_v2 = vadd.f32 %v2815_v63, %v2814_v13 }
0x1f98   :  { %2818 = vrot.lane.b32.xlu0 %v7580_v2, %s6841_s8 }
0x200a   :  { %v7584_v4 = vpop.permute.xlu0 %2818 }
0x200b   :  { %5984 = vmatmul.mubr.msk.f32.vlgmr.msra.gmra.mrb[22].mxu1 %vm322_vm4, %v7584_v4 }
0x200c   :  { %6343 = vmatpush3.bf16.msra.mxu1 %v7332_v21  ;;  %6004 = vmatprep.mubr.msk.f32.mxu1 %vm6838_vm0, %v6839_v1 }
0x200d   :  { %6344 = vmatprep.subr.bf16.mxu1 %v6837_v0 }
0x2010   :  { %6346 = vmatpush3.bf16.msra.mxu1 %v7336_v3 }
0x2011   :  { %6353 = vmatprep.subr.bf16.mxu1 %v6837_v0 }
0x20de   :  { %v2888_v40 = vpop.f32.mrb[22].mxu1 }
0x20df   :  { %v2899_v6 = vrot.slane %v2888_v40, %v7358_v30  ;;  %v5985_v7 = vpop.f32.mrb[23].mxu1 }
0x20e1   :  { %v2900_v12 = vcombine.high %v2899_v6, %v2899_v6  ;;  %v2907_v24 = vrot.slane %v2899_v6, %v7358_v30 }
0x20e3   :  { %v2914_v27 = vrot.slane %v2900_v12, %v7358_v30  ;;  %v2918_v19 = vrot.slane %v2907_v24, %v7102_v20 }
0x20e5   :  { %v2922_v5 = vrot.slane %v2914_v27, %v7102_v20  ;;  %v2925_v43 = vadd.f32 %v2918_v19, %v7452_v36  ;;  %v2489_v19 = vsel %vm2488_vm9, %v7538_v11, 0 }
0x20e7   :  { %v2926_v35 = vadd.f32 %v7450_v34, %v2922_v5  ;;  %6515 = vtanh.f32 %v2925_v43 }
0x20e9   :  { %6517 = vtanh.f32 %v2926_v35 }
0x20f1   :  { %v6516_v25 = vpop.eup %6515 }
0x20f2   :  { %v2929_v45 = vmul.f32 %v6516_v25, %v7514_v42 }
0x20f3   :  { %v6518_v46 = vpop.eup %6517 }
0x20f4   :  { %v2931_v26 = vsel %vm322_vm4, %v2929_v45, 0.0  ;;  %v2930_v22 = vmul.f32 %v6518_v46, %v7514_v42 }
0x20f5   :  { %2932 = vadd.xlane.f32.xlu1 %v2931_v26 }
0x20f6   :  { %v2934_v55 = vsel %vm322_vm4, %v2930_v22, 0.0 }
0x20f7   :  { %2935 = vadd.xlane.f32.xlu0 %v2934_v55 }
0x2182   :  { %v2933_v51 = vpop.xlane.xlu1 %2932 }
0x2183   :  { %v2943_v23 = vrot.slane %v2933_v51, %v7526_v48 }
0x2184   :  { %v2936_v17 = vpop.xlane.xlu0 %2935 }
0x2185   :  { %v2947_v54 = vrot.slane %v2936_v17, %v7526_v48 }
0x2187   :  { %v2948_v18 = vsel %vm320_vm3, %v2947_v54, %v2943_v23 }
0x2188   :  { %v2950_v56 = vsel %vm2937_vm6, %v2948_v18, -1e+09 }
0x2189   :  { %v2951_v57 = vsel %vm2464_vm13, %v2950_v56, -inf }
0x218a   :  { %2952 = vmax.xlane.f32.xlu0 %v2951_v57 }
0x2217   :  { %v2953_v59 = vpop.xlane.xlu0 %2952 }
0x2218   :  { %vm2954_vm7 = vcmp.ge.f32.partialorder %v2950_v56, %v2953_v59 }
0x2219   :  { %v2955_v32 = vsel %vm2954_vm7, %v7521_v44, 8 }
0x221a   :  { %v2956_v49 = vsel %vm2464_vm13, %v2955_v32, 2147483647 }
0x221b   :  { %v2958_v38 = vshra.s32 %v2956_v49, 16  ;;  %v2957_v62 = vand.u32 65535, %v2956_v49 }
0x221d   :  { %v2960_v60 = vcvt.s32.f32 %v2958_v38  ;;  %v2959_v13 = vcvt.s32.f32 %v2957_v62 }
0x221f   :  { %2961 = vmin.xlane.f32.xlu1 %v2960_v60 }
0x22ac   :  { %v2962_v63 = vpop.xlane.xlu1 %2961 }
0x22ad   :  { %vm2963_vm8 = vcmp.eq.f32.partialorder %v2960_v60, %v2962_v63  ;;  %v2968_v6 = vcvt.f32.s32 %v2962_v63 }
0x22ae   :  { %v2964_v40 = vsel %vm2963_vm8, %v2959_v13, inf }
0x22af   :  { %2965 = vmin.xlane.f32.xlu0 %v2964_v40  ;;  %v2969_v12 = vshll.u32 %v2968_v6, 16 }
0x233c   :  { %v2966_v7 = vpop.xlane.xlu0 %2965 }
0x233d   :  { %v2967_v24 = vcvt.f32.s32 %v2966_v7 }
0x233f   :  { %v2970_v27 = vadd.s32 %v2969_v12, %v2967_v24 }
0x2341   :  { %vm2971_vm11 = vcmp.eq.s32.totalorder %v7521_v44, %v2970_v27  ;;  %v7620_v5 = vsel %vm2974_vm10, %v2970_v27, %v2489_v19  ;;  %vm3940_vm10 = vcmp.eq.s32.totalorder %v7521_v44, 4 }
0x2342   :  { %v7623_v43 = vsel %vm2971_vm11, 1.0, %v6839_v1 }
0x2343   :  { %5989 = vmatmul.mubr.msk.f32.vlgmr.msra.gmra.mrb[28].mxu0 %vm2493_vm1, %v7623_v43  ;;  %v3051_v35 = vrot.slane %v7623_v43, 1 }
0x2344   :  { %5992 = vmatpush3.msra.mxu0 %v7431_v28  ;;  %5993 = vmatprep.mubr.msk.f32.mxu0 %vm6838_vm0, %v6839_v1 }
0x2345   :  { %6347 = vmatprep.subr.bf16.mxu0 %v6837_v0 }
0x2347   :  { %5994 = vmatmul.mubr.msk.f32.vlgmr.msra.gmra.mrb[30].mxu0 %vm2493_vm1, %v3051_v35 }
0x2348   :  { %6349 = vmatpush3.bf16.msra.mxu0 %v7427_v16  ;;  %6015 = vmatprep.mubr.msk.f32.mxu0 %vm6838_vm0, %v6839_v1 }
0x2349   :  { %6350 = vmatprep.subr.bf16.mxu0 %v6837_v0 }
0x234c   :  { %6352 = vmatpush3.bf16.msra.mxu0 %v7436_v31 }
0x234d   :  { %6029 = vmatprep.subr.mxu0 %v6839_v1 }
0x234f   :  { %6016 = vmatmul.mubr.msk.f32.vlgmr.msra.gmra.mrb[32].mxu0 %vm322_vm4, %v7584_v4 }
0x2350   :  { %6030 = vmatpush3.msra.mxu0 %v7425_v15  ;;  %6031 = vmatprep.mubr.msk.f32.mxu0 %vm6838_vm0, %v6839_v1 }
0x2351   :  { %6034 = vmatprep.subr.mxu0 %v6839_v1 }
0x2416   :  { %v3047_v11 = vpop.f32.mrb[28].mxu0 }
0x2417   :  { %v5990_v25 = vpop.f32.mrb[29].mxu0 }
0x241a   :  { %v3120_v45 = vpop.f32.mrb[30].mxu0 }
0x241b   :  { %v3125_v46 = vrot.slane %v3120_v45, 7  ;;  %v5995_v26 = vpop.f32.mrb[31].mxu0 }
0x241d   :  { %v3127_v22 = vsel %vm1998_vm5, %v3047_v11, %v3125_v46 }
0x241e   :  { %6005 = vmatmul.mubr.msk.f32.vlgmr.msra.gmra.mrb[24].mxu1 %vm322_vm4, %v3127_v22 }
0x241f   :  { %6355 = vmatpush3.bf16.msra.mxu1 %v7479_v8  ;;  %6026 = vmatprep.mubr.msk.f32.mxu1 %vm6838_vm0, %v6839_v1 }
0x2420   :  { %6356 = vmatprep.subr.bf16.mxu1 %v6837_v0 }
0x2422   :  { %v3267_v4 = vpop.f32.mrb[32].mxu0 }
0x2423   :  { %v3280_v55 = vadd.f32 %v3267_v4, %v7455_v39  ;;  %v6017_v50 = vpop.f32.mrb[33].mxu0  ;;  %6358 = vmatpush3.bf16.msra.mxu1 %v7485_v10 }
0x2424   :  { %6359 = vmatprep.subr.bf16.mxu1 %v6837_v0 }
0x2425   :  { %3282 = vrot.lane.b32.xlu1 %v3280_v55, %s6840_s2 }
0x2497   :  { %v3283_v32 = vpop.permute.xlu1 %3282 }
0x24f1   :  { %v3197_v51 = vpop.f32.mrb[24].mxu1 }
0x24f2   :  { %v3271_v17 = vadd.f32 %v3267_v4, %v3197_v51  ;;  %v6006_v23 = vpop.f32.mrb[25].mxu1  ;;  %v3279_v38 = vadd.f32 %v3197_v51, %v7466_v9 }
0x24f4   :  { %v3272_v54 = vadd.f32 %v3271_v17, %v7461_v47 }
0x24f6   :  { %v5470_v18 = vmul.f32 -1.442695, %v3272_v54  ;;  %v2976_v54 = vsub.f32 1.0, %v7623_v43 }
0x24f8   :  { %6519 = vpow2.f32 %v5470_v18 }
0x2502   :  { %v6520_v56 = vpop.eup %6519 }
0x2503   :  { %v3276_v57 = vadd.f32 1.0, %v6520_v56  ;;  %v7687_v56 = vmul.f32 %v2976_v54, %v7607_v53 }
0x2505   :  { %6521 = vrcp.f32 %v3276_v57  ;;  %vm3420_vm12 = vcmp.gt.f32.partialorder %v7687_v56, 0.0 }
0x250f   :  { %v6522_v59 = vpop.eup %6521 }
0x2510   :  { %v3285_v49 = vmul.f32 %v6522_v59, %v3283_v32  ;;  %v3292_v13 = vsub.f32 1.0, %v6522_v59  ;;  %v3298_v6 = vmul.f32 %v6522_v59, %v7580_v2 }
0x2512   :  { %3287 = vrot.lane.b32.xlu0 %v3285_v49, %s6840_s2 }
0x2584   :  { %v3288_v60 = vpop.permute.xlu0 %3287 }
0x2585   :  { %v3290_v62 = vadd.f32 %v3288_v60, %v3279_v38 }
0x2587   :  { %6523 = vtanh.f32 %v3290_v62 }
0x2591   :  { %v6524_v63 = vpop.eup %6523 }
0x2592   :  { %3294 = vrot.lane.b32.xlu1 %v6524_v63, %s6841_s8 }
0x2604   :  { %v3295_v40 = vpop.permute.xlu1 %3294 }
0x2605   :  { %v3297_v7 = vmul.f32 %v3295_v40, %v3292_v13 }
0x2607   :  { %v7660_v12 = vadd.f32 %v3298_v6, %v3297_v7 }
0x2609   :  { %3301 = vrot.lane.b32.xlu1 %v7660_v12, %s6841_s8 }
0x267b   :  { %v7664_v24 = vpop.permute.xlu1 %3301 }
0x267c   :  { %6027 = vmatmul.mubr.msk.f32.vlgmr.msra.gmra.mrb[26].mxu1 %vm322_vm4, %v7664_v24 }
0x267d   :  { %6361 = vmatpush3.bf16.msra.mxu1 %v7332_v21  ;;  %6047 = vmatprep.mubr.msk.f32.mxu1 %vm6838_vm0, %v6839_v1 }
0x267e   :  { %6362 = vmatprep.subr.bf16.mxu1 %v6837_v0 }
0x2681   :  { %6364 = vmatpush3.bf16.msra.mxu1 %v7336_v3 }
0x2682   :  { %6371 = vmatprep.subr.bf16.mxu1 %v6837_v0 }
0x274f   :  { %v3371_v2 = vpop.f32.mrb[26].mxu1 }
0x2750   :  { %v3382_v27 = vrot.slane %v3371_v2, %v7358_v30  ;;  %v6028_v19 = vpop.f32.mrb[27].mxu1 }
0x2752   :  { %v3383_v35 = vcombine.high %v3382_v27, %v3382_v27  ;;  %v3390_v11 = vrot.slane %v3382_v27, %v7358_v30 }
0x2754   :  { %v3397_v25 = vrot.slane %v3383_v35, %v7358_v30  ;;  %v3401_v45 = vrot.slane %v3390_v11, %v7102_v20 }
0x2756   :  { %v3405_v46 = vrot.slane %v3397_v25, %v7102_v20  ;;  %v3408_v26 = vadd.f32 %v3401_v45, %v7452_v36 }
0x2758   :  { %v3409_v22 = vadd.f32 %v7450_v34, %v3405_v46  ;;  %6525 = vtanh.f32 %v3408_v26 }
0x275a   :  { %6527 = vtanh.f32 %v3409_v22 }
0x2762   :  { %v6526_v4 = vpop.eup %6525 }
0x2763   :  { %v3412_v55 = vmul.f32 %v6526_v4, %v7514_v42 }
0x2764   :  { %v6528_v50 = vpop.eup %6527 }
0x2765   :  { %v3414_v51 = vsel %vm322_vm4, %v3412_v55, 0.0  ;;  %v3413_v17 = vmul.f32 %v6528_v50, %v7514_v42 }
0x2766   :  { %3415 = vadd.xlane.f32.xlu0 %v3414_v51 }
0x2767   :  { %v3417_v23 = vsel %vm322_vm4, %v3413_v17, 0.0 }
0x2768   :  { %3418 = vadd.xlane.f32.xlu1 %v3417_v23 }
0x27f3   :  { %v3416_v18 = vpop.xlane.xlu0 %3415 }
0x27f4   :  { %v3426_v59 = vrot.slane %v3416_v18, %v7526_v48 }
0x27f5   :  { %v3419_v57 = vpop.xlane.xlu1 %3418 }
0x27f6   :  { %v3430_v32 = vrot.slane %v3419_v57, %v7526_v48 }
0x27f8   :  { %v3431_v49 = vsel %vm320_vm3, %v3430_v32, %v3426_v59 }
0x27f9   :  { %v3433_v38 = vsel %vm3420_vm12, %v3431_v49, -1e+09 }
0x27fa   :  { %v3434_v60 = vsel %vm2464_vm13, %v3433_v38, -inf }
0x27fb   :  { %3435 = vmax.xlane.f32.xlu0 %v3434_v60 }
0x2888   :  { %v3436_v62 = vpop.xlane.xlu0 %3435 }
0x2889   :  { %vm3437_vm14 = vcmp.ge.f32.partialorder %v3433_v38, %v3436_v62 }
0x288a   :  { %v3438_v43 = vsel %vm3437_vm14, %v7521_v44, 8 }
0x288b   :  { %v3439_v53 = vsel %vm2464_vm13, %v3438_v43, 2147483647 }
0x288c   :  { %v3441_v63 = vshra.s32 %v3439_v53, 16  ;;  %v3440_v40 = vand.u32 65535, %v3439_v53 }
0x288e   :  { %v3443_v13 = vcvt.s32.f32 %v3441_v63  ;;  %v3442_v7 = vcvt.s32.f32 %v3440_v40 }
0x2890   :  { %3444 = vmin.xlane.f32.xlu0 %v3443_v13 }
0x291d   :  { %v3445_v6 = vpop.xlane.xlu0 %3444 }
0x291e   :  { %vm3446_vm15 = vcmp.eq.f32.partialorder %v3443_v13, %v3445_v6  ;;  %v3451_v27 = vcvt.f32.s32 %v3445_v6 }
0x291f   :  { %v3447_v2 = vsel %vm3446_vm15, %v3442_v7, inf }
0x2920   :  { %3448 = vmin.xlane.f32.xlu1 %v3447_v2  ;;  %v3452_v35 = vshll.u32 %v3451_v27, 16 }
0x29ad   :  { %v3449_v19 = vpop.xlane.xlu1 %3448 }
0x29ae   :  { %v3450_v11 = vcvt.f32.s32 %v3449_v19 }
0x29b0   :  { %v3453_v25 = vadd.s32 %v3452_v35, %v3450_v11 }
0x29b2   :  { %vm3454_vm6 = vcmp.eq.s32.totalorder %v7521_v44, %v3453_v25  ;;  %v7699_v45 = vsel %vm3457_vm2, %v3453_v25, %v7620_v5  ;;  %vm4423_vm2 = vcmp.eq.s32.totalorder %v7521_v44, 5 }
0x29b3   :  { %v7702_v46 = vsel %vm3454_vm6, 1.0, %v6839_v1 }
0x29b4   :  { %6032 = vmatmul.mubr.msk.f32.vlgmr.msra.gmra.mrb[34].mxu0 %vm2493_vm1, %v7702_v46  ;;  %v3534_v26 = vrot.slane %v7702_v46, 1 }
0x29b5   :  { %6035 = vmatpush3.msra.mxu0 %v7431_v28  ;;  %6036 = vmatprep.mubr.msk.f32.mxu0 %vm6838_vm0, %v6839_v1 }
0x29b6   :  { %6365 = vmatprep.subr.bf16.mxu0 %v6837_v0 }
0x29b8   :  { %6037 = vmatmul.mubr.msk.f32.vlgmr.msra.gmra.mrb[36].mxu0 %vm2493_vm1, %v3534_v26 }
0x29b9   :  { %6367 = vmatpush3.bf16.msra.mxu0 %v7427_v16  ;;  %6058 = vmatprep.mubr.msk.f32.mxu0 %vm6838_vm0, %v6839_v1 }
0x29ba   :  { %6368 = vmatprep.subr.bf16.mxu0 %v6837_v0 }
0x29bd   :  { %6370 = vmatpush3.bf16.msra.mxu0 %v7436_v31 }
0x29be   :  { %6072 = vmatprep.subr.mxu0 %v6839_v1 }
0x29c0   :  { %6059 = vmatmul.mubr.msk.f32.vlgmr.msra.gmra.mrb[38].mxu0 %vm322_vm4, %v7664_v24 }
0x29c1   :  { %6073 = vmatpush3.msra.mxu0 %v7425_v15  ;;  %6074 = vmatprep.mubr.msk.f32.mxu0 %vm6838_vm0, %v6839_v1 }
0x29c2   :  { %6077 = vmatprep.subr.mxu0 %v6839_v1 }
0x2a87   :  { %v3530_v5 = vpop.f32.mrb[34].mxu0 }
0x2a88   :  { %v6033_v22 = vpop.f32.mrb[35].mxu0 }
0x2a8b   :  { %v3603_v4 = vpop.f32.mrb[36].mxu0 }
0x2a8c   :  { %v3608_v55 = vrot.slane %v3603_v4, 7  ;;  %v6038_v50 = vpop.f32.mrb[37].mxu0 }
0x2a8e   :  { %v3610_v51 = vsel %vm1998_vm5, %v3530_v5, %v3608_v55 }
0x2a8f   :  { %6048 = vmatmul.mubr.msk.f32.vlgmr.msra.gmra.mrb[28].mxu1 %vm322_vm4, %v3610_v51 }
0x2a90   :  { %6373 = vmatpush3.bf16.msra.mxu1 %v7479_v8  ;;  %6069 = vmatprep.mubr.msk.f32.mxu1 %vm6838_vm0, %v6839_v1 }
0x2a91   :  { %6374 = vmatprep.subr.bf16.mxu1 %v6837_v0 }
0x2a93   :  { %v3750_v24 = vpop.f32.mrb[38].mxu0 }
0x2a94   :  { %v3763_v17 = vadd.f32 %v3750_v24, %v7455_v39  ;;  %v6060_v23 = vpop.f32.mrb[39].mxu0  ;;  %6376 = vmatpush3.bf16.msra.mxu1 %v7485_v10 }
0x2a95   :  { %6377 = vmatprep.subr.bf16.mxu1 %v6837_v0 }
0x2a96   :  { %3765 = vrot.lane.b32.xlu0 %v3763_v17, %s6840_s2 }
0x2b08   :  { %v3766_v62 = vpop.permute.xlu0 %3765 }
0x2b62   :  { %v3680_v54 = vpop.f32.mrb[28].mxu1 }
0x2b63   :  { %v3754_v18 = vadd.f32 %v3750_v24, %v3680_v54  ;;  %v6049_v57 = vpop.f32.mrb[29].mxu1  ;;  %v3762_v53 = vadd.f32 %v3680_v54, %v7466_v9 }
0x2b65   :  { %v3755_v59 = vadd.f32 %v3754_v18, %v7461_v47 }
0x2b67   :  { %v5477_v32 = vmul.f32 -1.442695, %v3755_v59  ;;  %v3459_v59 = vsub.f32 1.0, %v7702_v46 }
0x2b69   :  { %6529 = vpow2.f32 %v5477_v32 }
0x2b73   :  { %v6530_v49 = vpop.eup %6529 }
0x2b74   :  { %v3759_v38 = vadd.f32 1.0, %v6530_v49  ;;  %v7766_v49 = vmul.f32 %v3459_v59, %v7687_v56 }
0x2b76   :  { %6531 = vrcp.f32 %v3759_v38  ;;  %vm3903_vm7 = vcmp.gt.f32.partialorder %v7766_v49, 0.0 }
0x2b80   :  { %v6532_v60 = vpop.eup %6531 }
0x2b81   :  { %v3768_v43 = vmul.f32 %v6532_v60, %v3766_v62  ;;  %v3775_v6 = vsub.f32 1.0, %v6532_v60  ;;  %v3781_v2 = vmul.f32 %v6532_v60, %v7660_v12 }
0x2b83   :  { %3770 = vrot.lane.b32.xlu1 %v3768_v43, %s6840_s2 }
0x2bf5   :  { %v3771_v63 = vpop.permute.xlu1 %3770 }
0x2bf6   :  { %v3773_v13 = vadd.f32 %v3771_v63, %v3762_v53 }
0x2bf8   :  { %6533 = vtanh.f32 %v3773_v13 }
0x2c02   :  { %v6534_v40 = vpop.eup %6533 }
0x2c03   :  { %3777 = vrot.lane.b32.xlu1 %v6534_v40, %s6841_s8 }
0x2c75   :  { %v3778_v7 = vpop.permute.xlu1 %3777 }
0x2c76   :  { %v3780_v27 = vmul.f32 %v3778_v7, %v3775_v6 }
0x2c78   :  { %v7739_v19 = vadd.f32 %v3781_v2, %v3780_v27 }
0x2c7a   :  { %3784 = vrot.lane.b32.xlu0 %v7739_v19, %s6841_s8 }
0x2cec   :  { %v7743_v35 = vpop.permute.xlu0 %3784 }
0x2ced   :  { %6070 = vmatmul.mubr.msk.f32.vlgmr.msra.gmra.mrb[30].mxu1 %vm322_vm4, %v7743_v35 }
0x2cee   :  { %6379 = vmatpush3.bf16.msra.mxu1 %v7332_v21  ;;  %6090 = vmatprep.mubr.msk.f32.mxu1 %vm6838_vm0, %v6839_v1 }
0x2cef   :  { %6380 = vmatprep.subr.bf16.mxu1 %v6837_v0 }
0x2cf2   :  { %6382 = vmatpush3.bf16.msra.mxu1 %v7336_v3 }
0x2cf3   :  { %6389 = vmatprep.subr.bf16.mxu1 %v6837_v0 }
0x2dc0   :  { %v3854_v12 = vpop.f32.mrb[30].mxu1 }
0x2dc1   :  { %v3865_v11 = vrot.slane %v3854_v12, %v7358_v30  ;;  %v6071_v25 = vpop.f32.mrb[31].mxu1 }
0x2dc3   :  { %v3866_v26 = vcombine.high %v3865_v11, %v3865_v11  ;;  %v3873_v5 = vrot.slane %v3865_v11, %v7358_v30 }
0x2dc5   :  { %v3880_v22 = vrot.slane %v3866_v26, %v7358_v30  ;;  %v3884_v4 = vrot.slane %v3873_v5, %v7102_v20 }
0x2dc7   :  { %v3888_v55 = vrot.slane %v3880_v22, %v7102_v20  ;;  %v3891_v50 = vadd.f32 %v3884_v4, %v7452_v36 }
0x2dc9   :  { %v3892_v51 = vadd.f32 %v7450_v34, %v3888_v55  ;;  %6535 = vtanh.f32 %v3891_v50 }
0x2dcb   :  { %6537 = vtanh.f32 %v3892_v51 }
0x2dd3   :  { %v6536_v24 = vpop.eup %6535 }
0x2dd4   :  { %v3895_v17 = vmul.f32 %v6536_v24, %v7514_v42 }
0x2dd5   :  { %v6538_v23 = vpop.eup %6537 }
0x2dd6   :  { %v3897_v54 = vsel %vm322_vm4, %v3895_v17, 0.0  ;;  %v3896_v18 = vmul.f32 %v6538_v23, %v7514_v42 }
0x2dd7   :  { %3898 = vadd.xlane.f32.xlu1 %v3897_v54 }
0x2dd8   :  { %v3900_v57 = vsel %vm322_vm4, %v3896_v18, 0.0 }
0x2dd9   :  { %3901 = vadd.xlane.f32.xlu0 %v3900_v57 }
0x2e64   :  { %v3899_v32 = vpop.xlane.xlu1 %3898 }
0x2e65   :  { %v3909_v60 = vrot.slane %v3899_v32, %v7526_v48 }
0x2e66   :  { %v3902_v38 = vpop.xlane.xlu0 %3901 }
0x2e67   :  { %v3913_v62 = vrot.slane %v3902_v38, %v7526_v48 }
0x2e69   :  { %v3914_v43 = vsel %vm320_vm3, %v3913_v62, %v3909_v60 }
0x2e6a   :  { %v3916_v53 = vsel %vm3903_vm7, %v3914_v43, -1e+09 }
0x2e6b   :  { %v3917_v63 = vsel %vm2464_vm13, %v3916_v53, -inf }
0x2e6c   :  { %3918 = vmax.xlane.f32.xlu0 %v3917_v63 }
0x2ef9   :  { %v3919_v13 = vpop.xlane.xlu0 %3918 }
0x2efa   :  { %vm3920_vm8 = vcmp.ge.f32.partialorder %v3916_v53, %v3919_v13 }
0x2efb   :  { %v3921_v46 = vsel %vm3920_vm8, %v7521_v44, 8 }
0x2efc   :  { %v3922_v56 = vsel %vm2464_vm13, %v3921_v46, 2147483647 }
0x2efd   :  { %v3924_v40 = vshra.s32 %v3922_v56, 16  ;;  %v3923_v7 = vand.u32 65535, %v3922_v56 }
0x2eff   :  { %v3926_v6 = vcvt.s32.f32 %v3924_v40  ;;  %v3925_v27 = vcvt.s32.f32 %v3923_v7 }
0x2f01   :  { %3927 = vmin.xlane.f32.xlu1 %v3926_v6 }
0x2f8e   :  { %v3928_v2 = vpop.xlane.xlu1 %3927 }
0x2f8f   :  { %vm3929_vm9 = vcmp.eq.f32.partialorder %v3926_v6, %v3928_v2  ;;  %v3934_v11 = vcvt.f32.s32 %v3928_v2 }
0x2f90   :  { %v3930_v12 = vsel %vm3929_vm9, %v3925_v27, inf }
0x2f91   :  { %3931 = vmin.xlane.f32.xlu0 %v3930_v12  ;;  %v3935_v26 = vshll.u32 %v3934_v11, 16 }
0x301e   :  { %v3932_v25 = vpop.xlane.xlu0 %3931 }
0x301f   :  { %v3933_v5 = vcvt.f32.s32 %v3932_v25 }
0x3021   :  { %v3936_v22 = vadd.s32 %v3935_v26, %v3933_v5 }
0x3023   :  { %vm3937_vm11 = vcmp.eq.s32.totalorder %v7521_v44, %v3936_v22  ;;  %v7778_v4 = vsel %vm3940_vm10, %v3936_v22, %v7699_v45  ;;  %vm4906_vm10 = vcmp.eq.s32.totalorder %v7521_v44, 6 }
0x3024   :  { %v7781_v55 = vsel %vm3937_vm11, 1.0, %v6839_v1 }
0x3025   :  { %6075 = vmatmul.mubr.msk.f32.vlgmr.msra.gmra.mrb[40].mxu0 %vm2493_vm1, %v7781_v55  ;;  %v4017_v50 = vrot.slane %v7781_v55, 1 }
0x3026   :  { %6078 = vmatpush3.msra.mxu0 %v7431_v28  ;;  %6079 = vmatprep.mubr.msk.f32.mxu0 %vm6838_vm0, %v6839_v1 }
0x3027   :  { %6383 = vmatprep.subr.bf16.mxu0 %v6837_v0 }
0x3029   :  { %6080 = vmatmul.mubr.msk.f32.vlgmr.msra.gmra.mrb[42].mxu0 %vm2493_vm1, %v4017_v50 }
0x302a   :  { %6385 = vmatpush3.bf16.msra.mxu0 %v7427_v16  ;;  %6101 = vmatprep.mubr.msk.f32.mxu0 %vm6838_vm0, %v6839_v1 }
0x302b   :  { %6386 = vmatprep.subr.bf16.mxu0 %v6837_v0 }
0x302e   :  { %6388 = vmatpush3.bf16.msra.mxu0 %v7436_v31 }
0x302f   :  { %6115 = vmatprep.subr.mxu0 %v6839_v1 }
0x3031   :  { %6102 = vmatmul.mubr.msk.f32.vlgmr.msra.gmra.mrb[44].mxu0 %vm322_vm4, %v7743_v35 }
0x3032   :  { %6116 = vmatpush3.msra.mxu0 %v7425_v15  ;;  %6117 = vmatprep.mubr.msk.f32.mxu0 %vm6838_vm0, %v6839_v1 }
0x3033   :  { %6120 = vmatprep.subr.mxu0 %v6839_v1 }
0x30f8   :  { %v4013_v45 = vpop.f32.mrb[40].mxu0 }
0x30f9   :  { %v6076_v51 = vpop.f32.mrb[41].mxu0 }
0x30fc   :  { %v4086_v24 = vpop.f32.mrb[42].mxu0 }
0x30fd   :  { %v4091_v17 = vrot.slane %v4086_v24, 7  ;;  %v6081_v23 = vpop.f32.mrb[43].mxu0 }
0x30ff   :  { %v4093_v54 = vsel %vm1998_vm5, %v4013_v45, %v4091_v17 }
0x3100   :  { %6091 = vmatmul.mubr.msk.f32.vlgmr.msra.gmra.mrb[32].mxu1 %vm322_vm4, %v4093_v54 }
0x3101   :  { %6391 = vmatpush3.bf16.msra.mxu1 %v7479_v8  ;;  %6112 = vmatprep.mubr.msk.f32.mxu1 %vm6838_vm0, %v6839_v1 }
0x3102   :  { %6392 = vmatprep.subr.bf16.mxu1 %v6837_v0 }
0x3104   :  { %v4233_v35 = vpop.f32.mrb[44].mxu0 }
0x3105   :  { %v4246_v18 = vadd.f32 %v4233_v35, %v7455_v39  ;;  %v6103_v57 = vpop.f32.mrb[45].mxu0  ;;  %6394 = vmatpush3.bf16.msra.mxu1 %v7485_v10 }
0x3106   :  { %6395 = vmatprep.subr.bf16.mxu1 %v6837_v0 }
0x3107   :  { %4248 = vrot.lane.b32.xlu1 %v4246_v18, %s6840_s2 }
0x3179   :  { %v4249_v13 = vpop.permute.xlu1 %4248 }
0x31d3   :  { %v4163_v59 = vpop.f32.mrb[32].mxu1 }
0x31d4   :  { %v4237_v32 = vadd.f32 %v4233_v35, %v4163_v59  ;;  %v6092_v38 = vpop.f32.mrb[33].mxu1  ;;  %v4245_v56 = vadd.f32 %v4163_v59, %v7466_v9 }
0x31d6   :  { %v4238_v60 = vadd.f32 %v4237_v32, %v7461_v47 }
0x31d8   :  { %v5484_v62 = vmul.f32 -1.442695, %v4238_v60  ;;  %v3942_v60 = vsub.f32 1.0, %v7781_v55 }
0x31da   :  { %6539 = vpow2.f32 %v5484_v62 }
0x31e4   :  { %v6540_v43 = vpop.eup %6539 }
0x31e5   :  { %v4242_v53 = vadd.f32 1.0, %v6540_v43  ;;  %v7845_v43 = vmul.f32 %v3942_v60, %v7766_v49 }
0x31e7   :  { %6541 = vrcp.f32 %v4242_v53  ;;  %vm4386_vm12 = vcmp.gt.f32.partialorder %v7845_v43, 0.0 }
0x31f1   :  { %v6542_v63 = vpop.eup %6541 }
0x31f2   :  { %v4251_v46 = vmul.f32 %v6542_v63, %v4249_v13  ;;  %v4258_v2 = vsub.f32 1.0, %v6542_v63  ;;  %v4264_v12 = vmul.f32 %v6542_v63, %v7739_v19 }
0x31f4   :  { %4253 = vrot.lane.b32.xlu0 %v4251_v46, %s6840_s2 }
0x3266   :  { %v4254_v40 = vpop.permute.xlu0 %4253 }
0x3267   :  { %v4256_v6 = vadd.f32 %v4254_v40, %v4245_v56 }
0x3269   :  { %6543 = vtanh.f32 %v4256_v6 }
0x3273   :  { %v6544_v7 = vpop.eup %6543 }
0x3274   :  { %4260 = vrot.lane.b32.xlu1 %v6544_v7, %s6841_s8 }
0x32e6   :  { %v4261_v27 = vpop.permute.xlu1 %4260 }
0x32e7   :  { %v4263_v11 = vmul.f32 %v4261_v27, %v4258_v2 }
0x32e9   :  { %v7818_v25 = vadd.f32 %v4264_v12, %v4263_v11 }
0x32eb   :  { %4267 = vrot.lane.b32.xlu1 %v7818_v25, %s6841_s8 }
0x335d   :  { %v7822_v26 = vpop.permute.xlu1 %4267 }
0x335e   :  { %6113 = vmatmul.mubr.msk.f32.vlgmr.msra.gmra.mrb[34].mxu1 %vm322_vm4, %v7822_v26 }
0x335f   :  { %6397 = vmatpush3.bf16.msra.mxu1 %v7332_v21  ;;  %6133 = vmatprep.mubr.msk.f32.mxu1 %vm6838_vm0, %v6839_v1 }
0x3360   :  { %6398 = vmatprep.subr.bf16.mxu1 %v6837_v0 }
0x3363   :  { %6400 = vmatpush3.bf16.msra.mxu1 %v7336_v3 }
0x3364   :  { %6407 = vmatprep.subr.bf16.mxu1 %v6837_v0 }
0x3431   :  { %v4337_v19 = vpop.f32.mrb[34].mxu1 }
0x3432   :  { %v4348_v5 = vrot.slane %v4337_v19, %v7358_v30  ;;  %v6114_v22 = vpop.f32.mrb[35].mxu1 }
0x3434   :  { %v4349_v50 = vcombine.high %v4348_v5, %v4348_v5  ;;  %v4356_v45 = vrot.slane %v4348_v5, %v7358_v30 }
0x3436   :  { %v4363_v51 = vrot.slane %v4349_v50, %v7358_v30  ;;  %v4367_v24 = vrot.slane %v4356_v45, %v7102_v20 }
0x3438   :  { %v4371_v17 = vrot.slane %v4363_v51, %v7102_v20  ;;  %v4374_v23 = vadd.f32 %v4367_v24, %v7452_v36 }
0x343a   :  { %v4375_v54 = vadd.f32 %v7450_v34, %v4371_v17  ;;  %6545 = vtanh.f32 %v4374_v23 }
0x343c   :  { %6547 = vtanh.f32 %v4375_v54 }
0x3444   :  { %v6546_v35 = vpop.eup %6545 }
0x3445   :  { %v4378_v18 = vmul.f32 %v6546_v35, %v7514_v42 }
0x3446   :  { %v6548_v57 = vpop.eup %6547 }
0x3447   :  { %v4380_v59 = vsel %vm322_vm4, %v4378_v18, 0.0  ;;  %v4379_v32 = vmul.f32 %v6548_v57, %v7514_v42 }
0x3448   :  { %4381 = vadd.xlane.f32.xlu0 %v4380_v59 }
0x3449   :  { %v4383_v38 = vsel %vm322_vm4, %v4379_v32, 0.0 }
0x344a   :  { %4384 = vadd.xlane.f32.xlu1 %v4383_v38 }
0x34d5   :  { %v4382_v62 = vpop.xlane.xlu0 %4381 }
0x34d6   :  { %v4392_v63 = vrot.slane %v4382_v62, %v7526_v48 }
0x34d7   :  { %v4385_v53 = vpop.xlane.xlu1 %4384 }
0x34d8   :  { %v4396_v13 = vrot.slane %v4385_v53, %v7526_v48 }
0x34da   :  { %v4397_v46 = vsel %vm320_vm3, %v4396_v13, %v4392_v63 }
0x34db   :  { %v4399_v42 = vsel %vm4386_vm12, %v4397_v46, -1e+09  ;;  %vm2035_vm12 = vcmask 785408  }
0x34dc   :  { %v4400_v56 = vsel %vm2464_vm13, %v4399_v42, -inf }
0x34dd   :  { %4401 = vmax.xlane.f32.xlu0 %v4400_v56 }
0x356a   :  { %v4402_v40 = vpop.xlane.xlu0 %4401 }
0x356b   :  { %vm4403_vm14 = vcmp.ge.f32.partialorder %v4399_v42, %v4402_v40 }
0x356c   :  { %v4404_v55 = vsel %vm4403_vm14, %v7521_v44, 8  ;;  %vm5386_vm14 = vcmp.eq.s32.totalorder %v7521_v44, 7 }
0x356d   :  { %v4405_v49 = vsel %vm2464_vm13, %v4404_v55, 2147483647 }
0x356e   :  { %v4407_v6 = vshra.s32 %v4405_v49, 16  ;;  %v4406_v2 = vand.u32 65535, %v4405_v49 }
0x3570   :  { %v4409_v7 = vcvt.s32.f32 %v4407_v6  ;;  %v4408_v12 = vcvt.s32.f32 %v4406_v2 }
0x3572   :  { %4410 = vmin.xlane.f32.xlu0 %v4409_v7 }
0x35ff   :  { %v4411_v27 = vpop.xlane.xlu0 %4410 }
0x3600   :  { %vm4412_vm15 = vcmp.eq.f32.partialorder %v4409_v7, %v4411_v27  ;;  %v4417_v19 = vcvt.f32.s32 %v4411_v27 }
0x3601   :  { %v4413_v11 = vsel %vm4412_vm15, %v4408_v12, inf }
0x3602   :  { %4414 = vmin.xlane.f32.xlu1 %v4413_v11  ;;  %v4418_v22 = vshll.u32 %v4417_v19, 16 }
0x368f   :  { %v4415_v5 = vpop.xlane.xlu1 %4414 }
0x3690   :  { %v4416_v50 = vcvt.f32.s32 %v4415_v5 }
0x3692   :  { %v4419_v45 = vadd.s32 %v4418_v22, %v4416_v50 }
0x3694   :  { %vm4420_vm6 = vcmp.eq.s32.totalorder %v7521_v44, %v4419_v45  ;;  %v7857_v51 = vsel %vm4423_vm2, %v4419_v45, %v7778_v4 }
0x3695   :  { %v7860_v24 = vsel %vm4420_vm6, 1.0, %v6839_v1 }
0x3696   :  { %6118 = vmatmul.mubr.msk.f32.vlgmr.msra.gmra.mrb[46].mxu0 %vm2493_vm1, %v7860_v24  ;;  %v4500_v17 = vrot.slane %v7860_v24, 1 }
0x3697   :  { %6121 = vmatpush3.msra.mxu0 %v7431_v28  ;;  %6122 = vmatprep.mubr.msk.f32.mxu0 %vm6838_vm0, %v6839_v1 }
0x3698   :  { %6401 = vmatprep.subr.bf16.mxu0 %v6837_v0 }
0x369a   :  { %6123 = vmatmul.mubr.msk.f32.vlgmr.msra.gmra.mrb[48].mxu0 %vm2493_vm1, %v4500_v17 }
0x369b   :  { %6403 = vmatpush3.bf16.msra.mxu0 %v7427_v16  ;;  %6144 = vmatprep.mubr.msk.f32.mxu0 %vm6838_vm0, %v6839_v1 }
0x369c   :  { %6404 = vmatprep.subr.bf16.mxu0 %v6837_v0 }
0x369f   :  { %6406 = vmatpush3.bf16.msra.mxu0 %v7436_v31 }
0x36a0   :  { %6158 = vmatprep.subr.mxu0 %v6839_v1 }
0x36a2   :  { %6145 = vmatmul.mubr.msk.f32.vlgmr.msra.gmra.mrb[50].mxu0 %vm322_vm4, %v7822_v26 }
0x36a3   :  { %6159 = vmatpush3.msra.mxu0 %v7425_v15  ;;  %6160 = vmatprep.mubr.msk.f32.mxu0 %vm6838_vm0, %v6839_v1 }
0x36a4   :  { %6163 = vmatprep.subr.mxu0 %v6839_v1 }
0x3769   :  { %v4496_v4 = vpop.f32.mrb[46].mxu0 }
0x376a   :  { %v6119_v23 = vpop.f32.mrb[47].mxu0 }
0x376d   :  { %v4569_v54 = vpop.f32.mrb[48].mxu0 }
0x376e   :  { %v4574_v35 = vrot.slane %v4569_v54, 7  ;;  %v6124_v18 = vpop.f32.mrb[49].mxu0 }
0x3770   :  { %v4576_v57 = vsel %vm1998_vm5, %v4496_v4, %v4574_v35  ;;  %v7921_v35 = vld [vmem:[%s8048_s13] ss:$0 sm:$0xff]  ;;  %s6843_s13 = smov 32  }
0x3771   :  { %6134 = vmatmul.mubr.msk.f32.vlgmr.msra.gmra.mrb[36].mxu1 %vm322_vm4, %v4576_v57 }
0x3772   :  { %6409 = vmatpush3.bf16.msra.mxu1 %v7479_v8  ;;  %6155 = vmatprep.mubr.msk.f32.mxu1 %vm6838_vm0, %v6839_v1 }
0x3773   :  { %6410 = vmatprep.subr.bf16.mxu1 %v6837_v0 }
0x3775   :  { %v4716_v15 = vpop.f32.mrb[50].mxu0 }
0x3776   :  { %v4729_v26 = vadd.f32 %v4716_v15, %v7455_v39  ;;  %v6146_v59 = vpop.f32.mrb[51].mxu0  ;;  %6412 = vmatpush3.bf16.msra.mxu1 %v7485_v10 }
0x3777   :  { %6413 = vmatprep.subr.bf16.mxu1 %v6837_v0 }
0x3778   :  { %4731 = vrot.lane.b32.xlu0 %v4729_v26, %s6840_s2 }
0x37ea   :  { %v4732_v42 = vpop.permute.xlu0 %4731 }
0x3844   :  { %v4646_v32 = vpop.f32.mrb[36].mxu1 }
0x3845   :  { %v4720_v38 = vadd.f32 %v4716_v15, %v4646_v32  ;;  %v6135_v60 = vpop.f32.mrb[37].mxu1  ;;  %v4728_v40 = vadd.f32 %v4646_v32, %v7466_v9  ;;  %v4425_v32 = vsub.f32 1.0, %v7860_v24 }
0x3847   :  { %v4721_v62 = vadd.f32 %v4720_v38, %v7461_v47  ;;  %v7929_v60 = vmul.f32 %v4425_v32, %v7845_v43 }
0x3849   :  { %v5491_v53 = vmul.f32 -1.442695, %v4721_v62  ;;  %vm4869_vm7 = vcmp.gt.f32.partialorder %v7929_v60, 0.0 }
0x384b   :  { %6549 = vpow2.f32 %v5491_v53 }
0x3855   :  { %v6550_v63 = vpop.eup %6549 }
0x3856   :  { %v4725_v13 = vadd.f32 1.0, %v6550_v63 }
0x3858   :  { %6551 = vrcp.f32 %v4725_v13 }
0x3862   :  { %v6552_v46 = vpop.eup %6551 }
0x3863   :  { %v4734_v56 = vmul.f32 %v6552_v46, %v4732_v42  ;;  %v4741_v7 = vsub.f32 1.0, %v6552_v46  ;;  %v4747_v27 = vmul.f32 %v6552_v46, %v7818_v25 }
0x3865   :  { %4736 = vrot.lane.b32.xlu1 %v4734_v56, %s6840_s2 }
0x38d7   :  { %v4737_v55 = vpop.permute.xlu1 %4736 }
0x38d8   :  { %v4739_v49 = vadd.f32 %v4737_v55, %v4728_v40 }
0x38da   :  { %6553 = vtanh.f32 %v4739_v49 }
0x38e4   :  { %v6554_v6 = vpop.eup %6553 }
0x38e5   :  { %4743 = vrot.lane.b32.xlu1 %v6554_v6, %s6841_s8 }
0x3957   :  { %v4744_v2 = vpop.permute.xlu1 %4743 }
0x3958   :  { %v4746_v12 = vmul.f32 %v4744_v2, %v4741_v7 }
0x395a   :  { %v7897_v11 = vadd.f32 %v4747_v27, %v4746_v12 }
0x395c   :  { %4750 = vrot.lane.b32.xlu0 %v7897_v11, %s6841_s8 }
0x39ce   :  { %v7901_v19 = vpop.permute.xlu0 %4750 }
0x39cf   :  { %6156 = vmatmul.mubr.msk.f32.vlgmr.msra.gmra.mrb[38].mxu1 %vm322_vm4, %v7901_v19 }
0x39d0   :  { %6415 = vmatpush3.bf16.msra.mxu1 %v7332_v21  ;;  %6176 = vmatprep.mubr.msk.f32.mxu1 %vm6838_vm0, %v6839_v1 }
0x39d1   :  { %6416 = vmatprep.subr.bf16.mxu1 %v6837_v0 }
0x39d4   :  { %6418 = vmatpush3.bf16.msra.mxu1 %v7336_v3 }
0x39d5   :  { %6425 = vmatprep.subr.bf16.mxu1 %v6837_v0 }
0x3aa2   :  { %v4820_v25 = vpop.f32.mrb[38].mxu1 }
0x3aa3   :  { %v4831_v5 = vrot.slane %v4820_v25, %v7358_v30  ;;  %v6157_v22 = vpop.f32.mrb[39].mxu1 }
0x3aa5   :  { %v4832_v50 = vcombine.high %v4831_v5, %v4831_v5  ;;  %v4839_v45 = vrot.slane %v4831_v5, %v7358_v30 }
0x3aa7   :  { %v4846_v17 = vrot.slane %v4832_v50, %v7358_v30  ;;  %v4850_v21 = vrot.slane %v4839_v45, %v7102_v20 }
0x3aa9   :  { %v4854_v4 = vrot.slane %v4846_v17, %v7102_v20  ;;  %v4857_v23 = vadd.f32 %v4850_v21, %v7452_v36 }
0x3aab   :  { %v4858_v54 = vadd.f32 %v7450_v34, %v4854_v4  ;;  %6555 = vtanh.f32 %v4857_v23 }
0x3aad   :  { %6557 = vtanh.f32 %v4858_v54 }
0x3ab5   :  { %v6556_v3 = vpop.eup %6555 }
0x3ab6   :  { %v4861_v18 = vmul.f32 %v7921_v35, %v6556_v3 }
0x3ab7   :  { %v6558_v57 = vpop.eup %6557 }
0x3ab8   :  { %v4863_v15 = vsel %vm322_vm4, %v4861_v18, 0.0  ;;  %v4862_v26 = vmul.f32 %v7921_v35, %v6558_v57 }
0x3ab9   :  { %4864 = vadd.xlane.f32.xlu1 %v4863_v15 }
0x3aba   :  { %v4866_v59 = vsel %vm322_vm4, %v4862_v26, 0.0 }
0x3abb   :  { %4867 = vadd.xlane.f32.xlu0 %v4866_v59 }
0x3b46   :  { %v4865_v38 = vpop.xlane.xlu1 %4864 }
0x3b47   :  { %v4875_v53 = vrot.slane %v4865_v38, %v7526_v48 }
0x3b48   :  { %v4868_v62 = vpop.xlane.xlu0 %4867 }
0x3b49   :  { %v4879_v63 = vrot.slane %v4868_v62, %v7526_v48 }
0x3b4b   :  { %v4880_v13 = vsel %vm320_vm3, %v4879_v63, %v4875_v53 }
0x3b4c   :  { %v4882_v46 = vsel %vm4869_vm7, %v4880_v13, -1e+09 }
0x3b4d   :  { %v4883_v42 = vsel %vm2464_vm13, %v4882_v46, -inf }
0x3b4e   :  { %4884 = vmax.xlane.f32.xlu0 %v4883_v42 }
0x3bdb   :  { %v4885_v56 = vpop.xlane.xlu0 %4884 }
0x3bdc   :  { %vm4886_vm8 = vcmp.ge.f32.partialorder %v4882_v46, %v4885_v56 }
0x3bdd   :  { %v4887_v24 = vsel %vm4886_vm8, %v7521_v44, 8 }
0x3bde   :  { %v4888_v43 = vsel %vm2464_vm13, %v4887_v24, 2147483647 }
0x3bdf   :  { %v4890_v40 = vshra.s32 %v4888_v43, 16  ;;  %v4889_v49 = vand.u32 65535, %v4888_v43 }
0x3be1   :  { %v4892_v55 = vcvt.s32.f32 %v4890_v40  ;;  %v4891_v7 = vcvt.s32.f32 %v4889_v49 }
0x3be3   :  { %4893 = vmin.xlane.f32.xlu1 %v4892_v55 }
0x3c70   :  { %v4894_v6 = vpop.xlane.xlu1 %4893 }
0x3c71   :  { %vm4895_vm9 = vcmp.eq.f32.partialorder %v4892_v55, %v4894_v6  ;;  %v4900_v27 = vcvt.f32.s32 %v4894_v6 }
0x3c72   :  { %v4896_v2 = vsel %vm4895_vm9, %v4891_v7, inf }
0x3c73   :  { %4897 = vmin.xlane.f32.xlu0 %v4896_v2  ;;  %v4901_v25 = vshll.u32 %v4900_v27, 16 }
0x3d00   :  { %v4898_v12 = vpop.xlane.xlu0 %4897 }
0x3d01   :  { %v4899_v5 = vcvt.f32.s32 %v4898_v12 }
0x3d03   :  { %v4902_v22 = vadd.s32 %v4901_v25, %v4899_v5 }
0x3d05   :  { %vm4903_vm11 = vcmp.eq.s32.totalorder %v7521_v44, %v4902_v22  ;;  %v7941_v50 = vsel %vm4906_vm10, %v4902_v22, %v7857_v51 }
0x3d06   :  { %v7944_v45 = vsel %vm4903_vm11, 1.0, %v6839_v1 }
0x3d07   :  { %6161 = vmatmul.mubr.msk.f32.vlgmr.msra.gmra.mrb[52].mxu0 %vm2493_vm1, %v7944_v45  ;;  %v4983_v17 = vrot.slane %v7944_v45, 1 }
0x3d08   :  { %6164 = vmatpush3.msra.mxu0 %v7431_v28  ;;  %6165 = vmatprep.mubr.msk.f32.mxu0 %vm6838_vm0, %v6839_v1 }
0x3d09   :  { %6419 = vmatprep.subr.bf16.mxu0 %v6837_v0 }
0x3d0b   :  { %6166 = vmatmul.mubr.msk.f32.vlgmr.msra.gmra.mrb[54].mxu0 %vm2493_vm1, %v4983_v17  ;;  %vm2033_vm1 = vcmask 523264  }
0x3d0c   :  { %6421 = vmatpush3.bf16.msra.mxu0 %v7427_v16  ;;  %6187 = vmatprep.mubr.msk.f32.mxu0 %vm6838_vm0, %v6839_v1 }
0x3d0d   :  { %6422 = vmatprep.subr.bf16.mxu0 %v6837_v0 }
0x3d10   :  { %6424 = vmatpush3.bf16.msra.mxu0 %v7436_v31 }
0x3d13   :  { %6188 = vmatmul.mubr.msk.f32.vlgmr.msra.gmra.mrb[56].mxu0 %vm322_vm4, %v7901_v19 }
0x3dda   :  { %v4979_v28 = vpop.f32.mrb[52].mxu0 }
0x3ddb   :  { %v6162_v51 = vpop.f32.mrb[53].mxu0 }
0x3dde   :  { %v5052_v21 = vpop.f32.mrb[54].mxu0 }
0x3ddf   :  { %v5057_v4 = vrot.slane %v5052_v21, 7  ;;  %v6167_v23 = vpop.f32.mrb[55].mxu0 }
0x3de1   :  { %v5059_v54 = vsel %vm1998_vm5, %v4979_v28, %v5057_v4 }
0x3de2   :  { %6177 = vmatmul.mubr.msk.f32.vlgmr.msra.gmra.mrb[40].mxu1 %vm322_vm4, %v5059_v54 }
0x3de3   :  { %6427 = vmatpush3.bf16.msra.mxu1 %v7479_v8  ;;  %6198 = vmatprep.mubr.msk.f32.mxu1 %vm6838_vm0, %v6839_v1 }
0x3de4   :  { %6428 = vmatprep.subr.bf16.mxu1 %v6837_v0 }
0x3de6   :  { %v5199_v16 = vpop.f32.mrb[56].mxu0 }
0x3de7   :  { %v5212_v31 = vadd.f32 %v5199_v16, %v7455_v39  ;;  %v6189_v19 = vpop.f32.mrb[57].mxu0  ;;  %6430 = vmatpush3.bf16.msra.mxu1 %v7485_v10 }
0x3de9   :  { %5214 = vrot.lane.b32.xlu1 %v5212_v31, %s6840_s2 }
0x3e5b   :  { %v5215_v0 = vpop.permute.xlu1 %5214 }
0x3eb5   :  { %v5129_v3 = vpop.f32.mrb[40].mxu1 }
0x3eb6   :  { %v5203_v18 = vadd.f32 %v5199_v16, %v5129_v3  ;;  %v6178_v57 = vpop.f32.mrb[41].mxu1  ;;  %v5211_v39 = vadd.f32 %v5129_v3, %v7466_v9 }
0x3eb8   :  { %v5204_v15 = vadd.f32 %v5203_v18, %v7461_v47 }
0x3eba   :  { %v5498_v26 = vmul.f32 -1.442695, %v5204_v15 }
0x3ebc   :  { %6559 = vpow2.f32 %v5498_v26 }
0x3ec6   :  { %v6560_v8 = vpop.eup %6559 }
0x3ec7   :  { %v5208_v59 = vadd.f32 1.0, %v6560_v8 }
0x3ec9   :  { %6561 = vrcp.f32 %v5208_v59 }
0x3ed3   :  { %v6562_v1 = vpop.eup %6561 }
0x3ed4   :  { %v5217_v32 = vmul.f32 %v6562_v1, %v5215_v0  ;;  %v5224_v53 = vsub.f32 1.0, %v6562_v1  ;;  %v5230_v63 = vmul.f32 %v6562_v1, %v7897_v11 }
0x3ed6   :  { %5219 = vrot.lane.b32.xlu0 %v5217_v32, %s6840_s2 }
0x3f48   :  { %v5220_v10 = vpop.permute.xlu0 %5219 }
0x3f49   :  { %v5222_v38 = vadd.f32 %v5220_v10, %v5211_v39 }
0x3f4b   :  { %6563 = vtanh.f32 %v5222_v38 }
0x3f55   :  { %v6564_v62 = vpop.eup %6563 }
0x3f56   :  { %5226 = vrot.lane.b32.xlu1 %v6564_v62, %s6841_s8 }
0x3fc8   :  { %v5227_v47 = vpop.permute.xlu1 %5226 }
0x3fc9   :  { %v5229_v13 = vmul.f32 %v5227_v47, %v5224_v53 }
0x3fcb   :  { %v5231_v46 = vadd.f32 %v5230_v63, %v5229_v13 }
0x3fcd   :  { %5233 = vrot.lane.b32.xlu1 %v5231_v46, %s6841_s8 }
0x403f   :  { %v5234_v42 = vpop.permute.xlu1 %5233 }
0x4040   :  { %6199 = vmatmul.mubr.msk.f32.vlgmr.msra.gmra.mrb[42].mxu1 %vm322_vm4, %v5234_v42 }
0x4113   :  { %v5303_v56 = vpop.f32.mrb[42].mxu1 }
0x4114   :  { %v5314_v9 = vrot.slane %v5303_v56, %v7358_v30  ;;  %v6200_v24 = vpop.f32.mrb[43].mxu1 }
0x4116   :  { %v5315_v43 = vcombine.high %v5314_v9, %v5314_v9  ;;  %v5322_v40 = vrot.slane %v5314_v9, %v7358_v30 }
0x4118   :  { %v5329_v55 = vrot.slane %v5315_v43, %v7358_v30  ;;  %v5333_v49 = vrot.slane %v5322_v40, %v7102_v20 }
0x411a   :  { %v5337_v11 = vrot.slane %v5329_v55, %v7102_v20  ;;  %v5340_v6 = vadd.f32 %v5333_v49, %v7452_v36  ;;  %v4908_v20 = vsub.f32 1.0, %v7944_v45 }
0x411c   :  { %v5341_v7 = vadd.f32 %v7450_v34, %v5337_v11  ;;  %6565 = vtanh.f32 %v5340_v6  ;;  %v4909_v36 = vmul.f32 %v4908_v20, %v7929_v60 }
0x411e   :  { %6567 = vtanh.f32 %v5341_v7  ;;  %vm5352_vm0 = vcmp.gt.f32.partialorder %v4909_v36, 0.0 }
0x4126   :  { %v6566_v2 = vpop.eup %6565 }
0x4127   :  { %v5344_v27 = vmul.f32 %v7921_v35, %v6566_v2 }
0x4128   :  { %v6568_v12 = vpop.eup %6567 }
0x4129   :  { %v5346_v25 = vsel %vm322_vm4, %v5344_v27, 0.0  ;;  %v5345_v5 = vmul.f32 %v7921_v35, %v6568_v12 }
0x412a   :  { %5347 = vadd.xlane.f32.xlu0 %v5346_v25 }
0x412b   :  { %v5349_v30 = vsel %vm322_vm4, %v5345_v5, 0.0 }
0x412c   :  { %5350 = vadd.xlane.f32.xlu1 %v5349_v30 }
0x413d   :  { %2026 = vrot.lane.b32.xlu1 %v7328_v14, %s6843_s13 }
0x41b7   :  { %v5348_v34 = vpop.xlane.xlu0 %5347 }
0x41b8   :  { %v5358_v17 = vrot.slane %v5348_v34, %v7526_v48 }
0x41b9   :  { %v5351_v22 = vpop.xlane.xlu1 %5350 }
0x41ba   :  { %v5362_v28 = vrot.slane %v5351_v22, %v7526_v48 }
0x41bc   :  { %v5363_v35 = vsel %vm320_vm3, %v5362_v28, %v5358_v17 }
0x41bd   :  { %v5365_v51 = vsel %vm5352_vm0, %v5363_v35, -1e+09  ;;  %v2027_v19 = vpop.permute.xlu1 %2026 }
0x41be   :  { %v5366_v21 = vsel %vm2464_vm13, %v5365_v51, -inf }
0x41bf   :  { %5367 = vmax.xlane.f32.xlu0 %v5366_v21 }
0x424c   :  { %v5368_v4 = vpop.xlane.xlu0 %5367 }
0x424d   :  { %vm5369_vm5 = vcmp.ge.f32.partialorder %v5365_v51, %v5368_v4 }
0x424e   :  { %v5370_v14 = vsel %vm5369_vm5, %v7521_v44, 8 }
0x424f   :  { %v5371_v45 = vsel %vm2464_vm13, %v5370_v14, 2147483647 }
0x4250   :  { %v5373_v23 = vshra.s32 %v5371_v45, 16  ;;  %v5372_v48 = vand.u32 65535, %v5371_v45 }
0x4252   :  { %v5375_v60 = vcvt.s32.f32 %v5373_v23  ;;  %v5374_v16 = vcvt.s32.f32 %v5372_v48 }
0x4254   :  { %5376 = vmin.xlane.f32.xlu0 %v5375_v60 }
0x426a   :  { %2019 = vrot.lane.b32.xlu0 %v7249_v37, %s6843_s13 }
0x426e   :  { %2029 = vrot.lane.b32.xlu0 %v7392_v29, %s6840_s2  ;;  %v2037_v29 = vsel %vm322_vm4, %v7291_v33, %v7309_v52 }
0x426f   :  { %v2038_v59 = vsel %vm2033_vm1, %v2037_v29, %v2027_v19 }
0x42e1   :  { %v5377_v54 = vpop.xlane.xlu0 %5376 }
0x42e2   :  { %vm5378_vm3 = vcmp.eq.f32.partialorder %v5375_v60, %v5377_v54  ;;  %v5383_v18 = vcvt.f32.s32 %v5377_v54 }
0x42e3   :  { %v5379_v31 = vsel %vm5378_vm3, %v5374_v16, inf }
0x42e4   :  { %5380 = vmin.xlane.f32.xlu1 %v5379_v31  ;;  %v5384_v15 = vshll.u32 %v5383_v18, 16 }
0x42e5   :  { %v2020_v3 = vpop.permute.xlu0 %2019 }
0x42e9   :  { %v2030_v37 = vpop.permute.xlu0 %2029 }
0x42ea   :  { %v2039_v32 = vsel %vm2035_vm12, %v2038_v59, %v2030_v37 }
0x42f5   :  { %2022 = vrot.lane.b32.xlu1 %v7268_v58, %s6840_s2  ;;  %v2032_v58 = vsel %vm322_vm4, %v7214_v41, %v7230_v61 }
0x42f6   :  { %v2034_v1 = vsel %vm2033_vm1, %v2032_v58, %v2020_v3 }
0x4371   :  { %v5381_v57 = vpop.xlane.xlu1 %5380 }
0x4372   :  { %v5382_v26 = vcvt.f32.s32 %v5381_v57 }
0x4374   :  { %v5385_v8 = vadd.s32 %v5384_v15, %v5382_v26 }
0x4375   :  { %v2023_v0 = vpop.permute.xlu1 %2022 }
0x4376   :  { %v2036_v39 = vsel %vm2035_vm12, %v2034_v1, %v2023_v0  ;;  %v5387_v10 = vsel %vm5386_vm14, %v5385_v8, %v7941_v50 }
0x4377   :  { %v2042_v44 = vcombine.low %v2036_v39, %v2039_v32  ;;  %5388 = vst.msk [vmem:[#allocation17] sm:$0x3] %vm2464_vm13, %v5387_v10 }
0x4378   :  { %6779 = shalt.err (!%p6776_p6)
}
0x4379   :  { %s6780_s30 = scalar_lea.hbm %s8049_s14, 32 }
0x437a   :  { %p6781_p7 = scmp.ne.s32.totalorder %s8049_s14, %s6780_s30  ;;  %p6784_p8 = scmp.lt.u32.totalorder %s6780_s30, %s8049_s14 }
0x437c   :  { %p6786_p9 = pnand %p6784_p8, %p6781_p7 }
0x437e   :  { %6789 = shalt.err (!%p6786_p9)
}
0x437f   :  { %5398 = dma.vmem_to_hbm [thread:$0]  %s5396_s11, 32, %s8049_s14, [#allocation4]   ;;  %5449 = vst.sshfl [vmem:[#allocation18] sm:$0x33 pattern:$0x76325410] %v2042_v44 }
0x4380   :  { %s6790_s7 = scalar_lea.vmem %s5406_s29, 64  ;;  %p6795_p11 = scmp.lt.s32.totalorder %s5406_s29, %s5406_s29 }
0x4381   :  { %p6791_p10 = scmp.ne.s32.totalorder %s5406_s29, %s6790_s7  ;;  %p6796_p12 = scmp.lt.s32.totalorder %s6790_s7, %s6790_s7 }
0x4383   :  { %p6797_p13 = por %p6796_p12, %p6795_p11 }
0x4385   :  { %p6798_p0 = pnand %p6797_p13, %p6791_p10 }
0x4387   :  { %6801 = shalt.err (!%p6798_p0)
}
0x4388   :  { %s8053_s10 = sld [smem:[#allocation27_spill]] }
0x438e   :  { %s6802_s3 = scalar_lea.hbm %s8053_s10, 64 }
0x438f   :  { %p6803_p1 = scmp.ne.s32.totalorder %s8053_s10, %s6802_s3  ;;  %p6806_p2 = scmp.lt.u32.totalorder %s6802_s3, %s8053_s10 }
0x4391   :  { %p6808_p3 = pnand %p6806_p2, %p6803_p1 }
0x4393   :  { %6811 = shalt.err (!%p6808_p3)
}
0x4394   :  { %5408 = dma.vmem_to_hbm [thread:$0]  %s5406_s29, 64, %s8053_s10, [#allocation19]  }
0x4395   :  { %6822 = dma.done.wait [#allocation4], 32  }
0x4396   :  { %6823 = vsyncadd [#allocation4], 4294967264 }
0x4397   :  { %6824 = dma.done.wait [#allocation19], 64  }
0x4398   :  { %6825 = vsyncadd [#allocation19], 4294967232 }
0x4399   :  { %5415 = vsyncpa [#allocation3], 1 }
0x439a   :  { %5416 = vsyncpa [#allocation6], 1 }
0x439b   :  { %5417 = vsyncpa [#allocation9], 1 }
0x439c   :  { %5418 = vsyncpa [#allocation12], 1 }
0x439d   :  { %5419 = vsyncpa [#allocation15], 1 }
0x439e   :  { %5420 = vsyncpa [#allocation4], 1 }
0x439f   :  { %5421 = vsyncpa [#allocation19], 1 }

</bundles_post_ra>
